<compile_context>
chip_gen: v7x
topology: tpu7x:2x2x1
jax: 0.10.0
libtpu: 0.0.40
codegen_flags: <defaults>
</compile_context>

<pallas_src>
import jax
import jax.numpy as jnp
from jax import lax
from jax.experimental import pallas as pl
from jax.experimental.pallas import tpu as pltpu

EPS = 1e-5          # nn.BatchNorm1d default eps
NEG_SLOPE = 0.01    # nn.LeakyReLU default negative_slope

IN_FEATURES = 784
H1 = 1024
H2 = 256
OUT_FEATURES = 10
OUT_PADDED = 128    # lane-dense output, sliced to 10 outside the kernel


def _bn_leaky(h, gamma, beta):
    """Fused BatchNorm1d (training mode, biased var, centered form) + LeakyReLU, f32."""
    mean = jnp.mean(h, axis=0, keepdims=True)
    d = h - mean
    var = jnp.mean(d * d, axis=0, keepdims=True)
    h = d * (gamma * lax.rsqrt(var + EPS)) + beta     # rsqrt -> EUP slot
    return jnp.maximum(h, NEG_SLOPE * h)              # LeakyReLU as a single max


def mnist_mlp_kernel(x_ref,
                     w1_ref, g1_ref, be1_ref,
                     w2_ref, g2_ref, be2_ref,
                     w3_ref, b3_ref,
                     o_ref):
    # ---- Layer 1: Linear(784,1024) (bias cancels under BN) + BN + LeakyReLU ----
    x = x_ref[...].astype(jnp.bfloat16)
    h1 = jnp.dot(x, w1_ref[...], preferred_element_type=jnp.float32)
    h1 = _bn_leaky(h1, g1_ref[...], be1_ref[...])

    # ---- Layer 2: Linear(1024,256) (bias cancels under BN) + BN + LeakyReLU ----
    h2 = jnp.dot(h1.astype(jnp.bfloat16), w2_ref[...],
                 preferred_element_type=jnp.float32)
    h2 = _bn_leaky(h2, g2_ref[...], be2_ref[...])

    # ---- Layer 3: Linear(256, 128-padded) + bias ----
    o_ref[...] = jnp.dot(h2.astype(jnp.bfloat16), w3_ref[...],
                         preferred_element_type=jnp.float32) + b3_ref[...]


def mnist_classifier_forward(x_nchw, kparams):
    """x_nchw: (B, 1, 28, 28) float32. kparams: prepared (padded / bf16) params.
    Returns (B, 10) float32 logits."""
    B = x_nchw.shape[0]
    x2d = x_nchw.reshape(B, IN_FEATURES)              # f32; cast to bf16 in-kernel

    flops = 2 * B * (IN_FEATURES * H1 + H1 * H2 + H2 * OUT_PADDED)
    bytes_accessed = (
        2 * (IN_FEATURES * H1 + H1 * H2 + H2 * OUT_PADDED)   # bf16 weights
        + 4 * B * IN_FEATURES + 4 * B * OUT_PADDED           # f32 activations in/out
        + 4 * (2 * H1 + 2 * H2 + OUT_PADDED))                # f32 BN params / bias

    out_padded = pl.pallas_call(
        mnist_mlp_kernel,
        out_shape=jax.ShapeDtypeStruct((B, OUT_PADDED), jnp.float32),
        grid_spec=pltpu.PrefetchScalarGridSpec(
            num_scalar_prefetch=0,
            grid=(1,),                                       # single step, all resident
            in_specs=[
                pl.BlockSpec((B, IN_FEATURES), lambda j: (0, 0)),     # x
                pl.BlockSpec((IN_FEATURES, H1), lambda j: (0, 0)),    # w1 (bf16)
                pl.BlockSpec((1, H1), lambda j: (0, 0)),              # gamma1
                pl.BlockSpec((1, H1), lambda j: (0, 0)),              # beta1
                pl.BlockSpec((H1, H2), lambda j: (0, 0)),             # w2 (bf16)
                pl.BlockSpec((1, H2), lambda j: (0, 0)),              # gamma2
                pl.BlockSpec((1, H2), lambda j: (0, 0)),              # beta2
                pl.BlockSpec((H2, OUT_PADDED), lambda j: (0, 0)),     # w3 (bf16, padded)
                pl.BlockSpec((1, OUT_PADDED), lambda j: (0, 0)),      # b3 (padded)
            ],
            out_specs=pl.BlockSpec((B, OUT_PADDED), lambda j: (0, 0)),
        ),
        compiler_params=pltpu.CompilerParams(
            dimension_semantics=("arbitrary",),
            vmem_limit_bytes=32 * 1024 * 1024,
        ),
        cost_estimate=pl.CostEstimate(
            flops=flops, transcendentals=H1 + H2, bytes_accessed=bytes_accessed),
    )(x2d,
      kparams["w1"], kparams["g1"], kparams["be1"],
      kparams["w2"], kparams["g2"], kparams["be2"],
      kparams["w3"], kparams["b3"])

    return out_padded[:, :OUT_FEATURES]


def init_params(key):
    """Deterministic synthetic parameters in PyTorch-equivalent (logical) shapes,
    weights stored as (in, out)."""
    ks = jax.random.split(key, 6)

    def lin(kw, kb, fan_in, fan_out):
        bound = 1.0 / jnp.sqrt(fan_in)
        w = jax.random.uniform(kw, (fan_in, fan_out), jnp.float32, -bound, bound)
        b = jax.random.uniform(kb, (1, fan_out), jnp.float32, -bound, bound)
        return w, b

    w1, b1 = lin(ks[0], ks[1], IN_FEATURES, H1)
    w2, b2 = lin(ks[2], ks[3], H1, H2)
    w3, b3 = lin(ks[4], ks[5], H2, OUT_FEATURES)
    return {
        "w1": w1, "b1": b1,
        "g1": jnp.ones((1, H1), jnp.float32), "be1": jnp.zeros((1, H1), jnp.float32),
        "w2": w2, "b2": b2,
        "g2": jnp.ones((1, H2), jnp.float32), "be2": jnp.zeros((1, H2), jnp.float32),
        "w3": w3, "b3": b3,
    }


def prepare_params(p):
    """Kernel-side params: bf16 weights, lane-dense output padding (N 10 -> 128).
    b1/b2 are dropped: they cancel exactly under training-mode BatchNorm."""
    w1 = p["w1"].astype(jnp.bfloat16)
    w2 = p["w2"].astype(jnp.bfloat16)
    w3 = jnp.pad(p["w3"], ((0, 0), (0, OUT_PADDED - OUT_FEATURES))).astype(jnp.bfloat16)
    b3 = jnp.pad(p["b3"], ((0, 0), (0, OUT_PADDED - OUT_FEATURES)))
    return {
        "w1": w1, "g1": p["g1"], "be1": p["be1"],
        "w2": w2, "g2": p["g2"], "be2": p["be2"],
        "w3": w3, "b3": b3,
    }


def _reference_forward(x_nchw, p):
    """Pure-JAX reference mirroring PyTorch semantics and the kernel's numerics
    (bf16 matmul inputs, f32 accumulation, f32 BN/LeakyReLU), including the b1/b2
    biases that cancel under BN."""
    x = x_nchw.reshape(x_nchw.shape[0], IN_FEATURES)

    def bn(h, gamma, beta):
        mean = jnp.mean(h, axis=0, keepdims=True)
        var = jnp.mean((h - mean) ** 2, axis=0, keepdims=True)
        return (h - mean) * lax.rsqrt(var + EPS) * gamma + beta

    def leaky(h):
        return jnp.where(h > 0, h, NEG_SLOPE * h)

    h = jnp.dot(x.astype(jnp.bfloat16), p["w1"].astype(jnp.bfloat16),
                preferred_element_type=jnp.float32) + p["b1"]
    h = leaky(bn(h, p["g1"], p["be1"]))
    h = jnp.dot(h.astype(jnp.bfloat16), p["w2"].astype(jnp.bfloat16),
                preferred_element_type=jnp.float32) + p["b2"]
    h = leaky(bn(h, p["g2"], p["be2"]))
    return jnp.dot(h.astype(jnp.bfloat16), p["w3"].astype(jnp.bfloat16),
                   preferred_element_type=jnp.float32) + p["b3"]


if __name__ == "__main__":
    key = jax.random.PRNGKey(0)
    k_x, k_p = jax.random.split(key)

    B = 16  # multiple of 16 for bf16 sublane packing
    x = jax.random.normal(k_x, (B, 1, 28, 28), jnp.float32)  # NCHW, like MNIST
    params = init_params(k_p)
    kparams = prepare_params(params)

    out = mnist_classifier_forward(x, kparams)
    out = jax.block_until_ready(out)

    ref = _reference_forward(x, params)
    assert out.shape == (B, OUT_FEATURES), out.shape
    err = float(jnp.max(jnp.abs(out - ref)))
    assert jnp.allclose(out, ref, atol=1e-3, rtol=1e-3), f"mismatch vs reference, max err={err}"
    print("KERNEL_OK")
</pallas_src>

<mosaic_0001>
module attributes {stable_mosaic.version = 11 : i64} {
  func.func @mnist_mlp_kernel(%arg0: i32, %arg1: memref<16x784xf32, #tpu.memory_space<vmem>>, %arg2: memref<784x1024xbf16, #tpu.memory_space<vmem>>, %arg3: memref<1x1024xf32, #tpu.memory_space<vmem>>, %arg4: memref<1x1024xf32, #tpu.memory_space<vmem>>, %arg5: memref<1024x256xbf16, #tpu.memory_space<vmem>>, %arg6: memref<1x256xf32, #tpu.memory_space<vmem>>, %arg7: memref<1x256xf32, #tpu.memory_space<vmem>>, %arg8: memref<256x128xbf16, #tpu.memory_space<vmem>>, %arg9: memref<1x128xf32, #tpu.memory_space<vmem>>, %arg10: memref<16x128xf32, #tpu.memory_space<vmem>>) attributes {dimension_semantics = [#tpu.dimension_semantics<arbitrary>], iteration_bounds = array<i64: 1>, scalar_prefetch = 0 : i64, scratch_operands = 0 : i64, tpu.core_type = #tpu.core_type<tc>, window_params = [{pipeline_mode = #tpu.pipeline_mode<synchronous>, transform_indices = @transform_0, window_bounds = array<i64: 16, 784>}, {pipeline_mode = #tpu.pipeline_mode<synchronous>, transform_indices = @transform_1, window_bounds = array<i64: 784, 1024>}, {pipeline_mode = #tpu.pipeline_mode<synchronous>, transform_indices = @transform_2, window_bounds = array<i64: 1, 1024>}, {pipeline_mode = #tpu.pipeline_mode<synchronous>, transform_indices = @transform_3, window_bounds = array<i64: 1, 1024>}, {pipeline_mode = #tpu.pipeline_mode<synchronous>, transform_indices = @transform_4, window_bounds = array<i64: 1024, 256>}, {pipeline_mode = #tpu.pipeline_mode<synchronous>, transform_indices = @transform_5, window_bounds = array<i64: 1, 256>}, {pipeline_mode = #tpu.pipeline_mode<synchronous>, transform_indices = @transform_6, window_bounds = array<i64: 1, 256>}, {pipeline_mode = #tpu.pipeline_mode<synchronous>, transform_indices = @transform_7, window_bounds = array<i64: 256, 128>}, {pipeline_mode = #tpu.pipeline_mode<synchronous>, transform_indices = @transform_8, window_bounds = array<i64: 1, 128>}, {pipeline_mode = #tpu.pipeline_mode<synchronous>, transform_indices = @transform_9, window_bounds = array<i64: 16, 128>}]} {
    %c0 = arith.constant 0 : index
    %c0_0 = arith.constant 0 : index
    %0 = vector.load %arg1[%c0, %c0_0] : memref<16x784xf32, #tpu.memory_space<vmem>>, vector<16x784xf32>
    %1 = arith.truncf %0 : vector<16x784xf32> to vector<16x784xbf16>
    %c0_1 = arith.constant 0 : index
    %c0_2 = arith.constant 0 : index
    %2 = vector.load %arg2[%c0_1, %c0_2] : memref<784x1024xbf16, #tpu.memory_space<vmem>>, vector<784x1024xbf16>
    %cst = arith.constant dense<0.000000e+00> : vector<16x1024xf32>
    %3 = tpu.matmul %1, %2, %cst {dimension_numbers = #tpu.dot_dimension_numbers<[1], [0], [0], [1], [0, 0, 1, 1], [], []>} : vector<16x784xbf16>, vector<784x1024xbf16>, vector<16x1024xf32> -> vector<16x1024xf32>
    %c0_3 = arith.constant 0 : index
    %c0_4 = arith.constant 0 : index
    %4 = vector.load %arg3[%c0_3, %c0_4] : memref<1x1024xf32, #tpu.memory_space<vmem>>, vector<1x1024xf32>
    %c0_5 = arith.constant 0 : index
    %c0_6 = arith.constant 0 : index
    %5 = vector.load %arg4[%c0_5, %c0_6] : memref<1x1024xf32, #tpu.memory_space<vmem>>, vector<1x1024xf32>
    %cst_7 = arith.constant dense<0.000000e+00> : vector<1024xf32>
    %6 = vector.multi_reduction <add>, %3, %cst_7 [0] : vector<16x1024xf32> to vector<1024xf32>
    %7 = vector.shape_cast %6 : vector<1024xf32> to vector<1x1024xf32>
    %cst_8 = arith.constant 1.600000e+01 : f32
    %8 = vector.broadcast %cst_8 : f32 to vector<1x1024xf32>
    %9 = arith.divf %7, %8 : vector<1x1024xf32>
    %10 = vector.broadcast %9 : vector<1x1024xf32> to vector<16x1024xf32>
    %11 = arith.subf %3, %10 : vector<16x1024xf32>
    %12 = arith.mulf %11, %11 : vector<16x1024xf32>
    %cst_9 = arith.constant dense<0.000000e+00> : vector<1024xf32>
    %13 = vector.multi_reduction <add>, %12, %cst_9 [0] : vector<16x1024xf32> to vector<1024xf32>
    %14 = vector.shape_cast %13 : vector<1024xf32> to vector<1x1024xf32>
    %cst_10 = arith.constant 1.600000e+01 : f32
    %15 = vector.broadcast %cst_10 : f32 to vector<1x1024xf32>
    %16 = arith.divf %14, %15 : vector<1x1024xf32>
    %cst_11 = arith.constant 9.99999974E-6 : f32
    %17 = vector.broadcast %cst_11 : f32 to vector<1x1024xf32>
    %18 = arith.addf %16, %17 : vector<1x1024xf32>
    %19 = math.rsqrt %18 : vector<1x1024xf32>
    %20 = arith.mulf %4, %19 : vector<1x1024xf32>
    %21 = vector.broadcast %20 : vector<1x1024xf32> to vector<16x1024xf32>
    %22 = arith.mulf %11, %21 : vector<16x1024xf32>
    %23 = vector.broadcast %5 : vector<1x1024xf32> to vector<16x1024xf32>
    %24 = arith.addf %22, %23 : vector<16x1024xf32>
    %cst_12 = arith.constant 0.00999999977 : f32
    %25 = vector.broadcast %cst_12 : f32 to vector<16x1024xf32>
    %26 = arith.mulf %25, %24 : vector<16x1024xf32>
    %27 = arith.maximumf %24, %26 : vector<16x1024xf32>
    %28 = arith.truncf %27 : vector<16x1024xf32> to vector<16x1024xbf16>
    %c0_13 = arith.constant 0 : index
    %c0_14 = arith.constant 0 : index
    %29 = vector.load %arg5[%c0_13, %c0_14] : memref<1024x256xbf16, #tpu.memory_space<vmem>>, vector<1024x256xbf16>
    %cst_15 = arith.constant dense<0.000000e+00> : vector<16x256xf32>
    %30 = tpu.matmul %28, %29, %cst_15 {dimension_numbers = #tpu.dot_dimension_numbers<[1], [0], [0], [1], [0, 0, 1, 1], [], []>} : vector<16x1024xbf16>, vector<1024x256xbf16>, vector<16x256xf32> -> vector<16x256xf32>
    %c0_16 = arith.constant 0 : index
    %c0_17 = arith.constant 0 : index
    %31 = vector.load %arg6[%c0_16, %c0_17] : memref<1x256xf32, #tpu.memory_space<vmem>>, vector<1x256xf32>
    %c0_18 = arith.constant 0 : index
    %c0_19 = arith.constant 0 : index
    %32 = vector.load %arg7[%c0_18, %c0_19] : memref<1x256xf32, #tpu.memory_space<vmem>>, vector<1x256xf32>
    %cst_20 = arith.constant dense<0.000000e+00> : vector<256xf32>
    %33 = vector.multi_reduction <add>, %30, %cst_20 [0] : vector<16x256xf32> to vector<256xf32>
    %34 = vector.shape_cast %33 : vector<256xf32> to vector<1x256xf32>
    %cst_21 = arith.constant 1.600000e+01 : f32
    %35 = vector.broadcast %cst_21 : f32 to vector<1x256xf32>
    %36 = arith.divf %34, %35 : vector<1x256xf32>
    %37 = vector.broadcast %36 : vector<1x256xf32> to vector<16x256xf32>
    %38 = arith.subf %30, %37 : vector<16x256xf32>
    %39 = arith.mulf %38, %38 : vector<16x256xf32>
    %cst_22 = arith.constant dense<0.000000e+00> : vector<256xf32>
    %40 = vector.multi_reduction <add>, %39, %cst_22 [0] : vector<16x256xf32> to vector<256xf32>
    %41 = vector.shape_cast %40 : vector<256xf32> to vector<1x256xf32>
    %cst_23 = arith.constant 1.600000e+01 : f32
    %42 = vector.broadcast %cst_23 : f32 to vector<1x256xf32>
    %43 = arith.divf %41, %42 : vector<1x256xf32>
    %cst_24 = arith.constant 9.99999974E-6 : f32
    %44 = vector.broadcast %cst_24 : f32 to vector<1x256xf32>
    %45 = arith.addf %43, %44 : vector<1x256xf32>
    %46 = math.rsqrt %45 : vector<1x256xf32>
    %47 = arith.mulf %31, %46 : vector<1x256xf32>
    %48 = vector.broadcast %47 : vector<1x256xf32> to vector<16x256xf32>
    %49 = arith.mulf %38, %48 : vector<16x256xf32>
    %50 = vector.broadcast %32 : vector<1x256xf32> to vector<16x256xf32>
    %51 = arith.addf %49, %50 : vector<16x256xf32>
    %cst_25 = arith.constant 0.00999999977 : f32
    %52 = vector.broadcast %cst_25 : f32 to vector<16x256xf32>
    %53 = arith.mulf %52, %51 : vector<16x256xf32>
    %54 = arith.maximumf %51, %53 : vector<16x256xf32>
    %55 = arith.truncf %54 : vector<16x256xf32> to vector<16x256xbf16>
    %c0_26 = arith.constant 0 : index
    %c0_27 = arith.constant 0 : index
    %56 = vector.load %arg8[%c0_26, %c0_27] : memref<256x128xbf16, #tpu.memory_space<vmem>>, vector<256x128xbf16>
    %cst_28 = arith.constant dense<0.000000e+00> : vector<16x128xf32>
    %57 = tpu.matmul %55, %56, %cst_28 {dimension_numbers = #tpu.dot_dimension_numbers<[1], [0], [0], [1], [0, 0, 1, 1], [], []>} : vector<16x256xbf16>, vector<256x128xbf16>, vector<16x128xf32> -> vector<16x128xf32>
    %c0_29 = arith.constant 0 : index
    %c0_30 = arith.constant 0 : index
    %58 = vector.load %arg9[%c0_29, %c0_30] : memref<1x128xf32, #tpu.memory_space<vmem>>, vector<1x128xf32>
    %59 = vector.broadcast %58 : vector<1x128xf32> to vector<16x128xf32>
    %60 = arith.addf %57, %59 : vector<16x128xf32>
    %c0_31 = arith.constant 0 : index
    %c0_32 = arith.constant 0 : index
    %61 = vector.load %arg10[%c0_31, %c0_32] : memref<16x128xf32, #tpu.memory_space<vmem>>, vector<16x128xf32>
    tpu.vector_store %arg10[%c0_31, %c0_32], %60 {strides = array<i32>} : memref<16x128xf32, #tpu.memory_space<vmem>>, vector<16x128xf32>,
    return
  }
  func.func @transform_0(%arg0: i32) -> (i32, i32) {
    %c0_i32 = arith.constant 0 : i32
    %c0_i32_0 = arith.constant 0 : i32
    %c0_i32_1 = arith.constant 0 : i32
    return %c0_i32, %c0_i32_0 : i32, i32
  }
  func.func @transform_1(%arg0: i32) -> (i32, i32) {
    %c0_i32 = arith.constant 0 : i32
    %c0_i32_0 = arith.constant 0 : i32
    %c0_i32_1 = arith.constant 0 : i32
    return %c0_i32, %c0_i32_0 : i32, i32
  }
  func.func @transform_2(%arg0: i32) -> (i32, i32) {
    %c0_i32 = arith.constant 0 : i32
    %c0_i32_0 = arith.constant 0 : i32
    %c0_i32_1 = arith.constant 0 : i32
    return %c0_i32, %c0_i32_0 : i32, i32
  }
  func.func @transform_3(%arg0: i32) -> (i32, i32) {
    %c0_i32 = arith.constant 0 : i32
    %c0_i32_0 = arith.constant 0 : i32
    %c0_i32_1 = arith.constant 0 : i32
    return %c0_i32, %c0_i32_0 : i32, i32
  }
  func.func @transform_4(%arg0: i32) -> (i32, i32) {
    %c0_i32 = arith.constant 0 : i32
    %c0_i32_0 = arith.constant 0 : i32
    %c0_i32_1 = arith.constant 0 : i32
    return %c0_i32, %c0_i32_0 : i32, i32
  }
  func.func @transform_5(%arg0: i32) -> (i32, i32) {
    %c0_i32 = arith.constant 0 : i32
    %c0_i32_0 = arith.constant 0 : i32
    %c0_i32_1 = arith.constant 0 : i32
    return %c0_i32, %c0_i32_0 : i32, i32
  }
  func.func @transform_6(%arg0: i32) -> (i32, i32) {
    %c0_i32 = arith.constant 0 : i32
    %c0_i32_0 = arith.constant 0 : i32
    %c0_i32_1 = arith.constant 0 : i32
    return %c0_i32, %c0_i32_0 : i32, i32
  }
  func.func @transform_7(%arg0: i32) -> (i32, i32) {
    %c0_i32 = arith.constant 0 : i32
    %c0_i32_0 = arith.constant 0 : i32
    %c0_i32_1 = arith.constant 0 : i32
    return %c0_i32, %c0_i32_0 : i32, i32
  }
  func.func @transform_8(%arg0: i32) -> (i32, i32) {
    %c0_i32 = arith.constant 0 : i32
    %c0_i32_0 = arith.constant 0 : i32
    %c0_i32_1 = arith.constant 0 : i32
    return %c0_i32, %c0_i32_0 : i32, i32
  }
  func.func @transform_9(%arg0: i32) -> (i32, i32) {
    %c0_i32 = arith.constant 0 : i32
    %c0_i32_0 = arith.constant 0 : i32
    %c0_i32_1 = arith.constant 0 : i32
    return %c0_i32, %c0_i32_0 : i32, i32
  }
}

</mosaic_0001>

<bundles_post_ra>
// kernel: tpu_custom_call.1
= control target key start
LH: loop header
LB: loop body
LE: loop exit
PB: predicated region body
PF: predicated region fallthrough
CT: control target
= control target key end

     0   :  { %14 = vsyncpa [#allocation3], 0  ;;  %s6398_s0 = inlined_call_operand.hbm [shape: f32[16,784], index: 0, kind: input, shape index: {}]   ;;  %s6399_s1 = inlined_call_operand.hbm [shape: bf16[784,1024], index: 1, kind: input, shape index: {}]   ;;  %s6400_s2 = inlined_call_operand.hbm [shape: f32[1,1024], index: 2, kind: input, shape index: {}]   ;;  %s6401_s3 = inlined_call_operand.hbm [shape: f32[1,1024], index: 3, kind: input, shape index: {}]   ;;  %s6402_s4 = inlined_call_operand.hbm [shape: bf16[1024,256], index: 4, kind: input, shape index: {}]   ;;  %s6403_s5 = inlined_call_operand.hbm [shape: f32[1,256], index: 5, kind: input, shape index: {}]   ;;  %s6404_s6 = inlined_call_operand.hbm [shape: f32[1,256], index: 6, kind: input, shape index: {}]   ;;  %s6405_s7 = inlined_call_operand.hbm [shape: bf16[256,128], index: 7, kind: input, shape index: {}]   ;;  %s6406_s8 = inlined_call_operand.hbm [shape: f32[1,128], index: 8, kind: input, shape index: {}]   ;;  %s6407_s9 = inlined_call_operand.hbm [shape: f32[16,128], index: 9, kind: output, shape index: {}]  }
   0x1   :  { %15 = vsyncpa [#allocation6], 0 }
   0x2   :  { %16 = vsyncpa [#allocation9], 0 }
   0x3   :  { %17 = vsyncpa [#allocation12], 0 }
   0x4   :  { %18 = vsyncpa [#allocation15], 0 }
   0x5   :  { %19 = vsyncpa [#allocation4], 0  ;;  %s5950_s30 = smov [#allocation5]   ;;  %s5718_s13 = scalar_lea.hbm %s6399_s1, 50176 }
   0x6   :  { %s37_s10 = sshll.u32 %s5950_s30, 4  ;;  %p5719_p0 = scmp.ne.s32.totalorder %s6399_s1, %s5718_s13  ;;  %s38_s10 = int_to_ptr.vmem [resolvable:$true] %s37_s10 }
   0x7   :  { %p5722_p1 = scmp.lt.u32.totalorder %s5718_s13, %s6399_s1 }
   0x9   :  { %p5724_p2 = pnand %p5722_p1, %p5719_p0 }
   0xb   :  { %5727 = shalt.err (!%p5724_p2)
}
   0xc   :  { %s5728_s18 = scalar_lea.vmem %s38_s10, 50176  ;;  %p5733_p4 = scmp.lt.s32.totalorder %s38_s10, %s38_s10 }
   0xd   :  { %p5729_p3 = scmp.ne.s32.totalorder %s38_s10, %s5728_s18  ;;  %p5734_p5 = scmp.lt.s32.totalorder %s5728_s18, %s5728_s18 }
   0xf   :  { %p5735_p6 = por %p5734_p5, %p5733_p4 }
  0x11   :  { %p5736_p7 = pnand %p5735_p6, %p5729_p3 }
  0x13   :  { %5739 = shalt.err (!%p5736_p7)
}
  0x14   :  { %s5951_s19 = smov 512   ;;  %s5952_s20 = smov 32  }
  0x15   :  { %43 = dma.hbm_to_vmem [thread:$0]  %s6399_s1, 50176, %s38_s10, [#allocation6], %s5951_s19, %s5951_s19, %s5952_s20  }
  0x16   :  { %s5953_s23 = smov [#allocation8]   ;;  %s5954_s25 = smov [#allocation11]  }
  0x17   :  { %s60_s24 = sshll.u32 %s5953_s23, 4  ;;  %s82_s26 = sshll.u32 %s5954_s25, 4  ;;  %s61_s24 = int_to_ptr.vmem [resolvable:$true] %s60_s24  ;;  %s83_s26 = int_to_ptr.vmem [resolvable:$true] %s82_s26 }
  0x18   :  { %s5740_s29 = scalar_lea.hbm %s6401_s3, 128 }
  0x19   :  { %p5741_p8 = scmp.ne.s32.totalorder %s6401_s3, %s5740_s29  ;;  %p5744_p9 = scmp.lt.u32.totalorder %s5740_s29, %s6401_s3 }
  0x1b   :  { %p5746_p10 = pnand %p5744_p9, %p5741_p8 }
  0x1d   :  { %5749 = shalt.err (!%p5746_p10)
}
  0x1e   :  { %s5750_s1 = scalar_lea.vmem %s61_s24, 128  ;;  %p5755_p12 = scmp.lt.s32.totalorder %s61_s24, %s61_s24 }
  0x1f   :  { %p5751_p11 = scmp.ne.s32.totalorder %s61_s24, %s5750_s1  ;;  %p5756_p13 = scmp.lt.s32.totalorder %s5750_s1, %s5750_s1 }
  0x21   :  { %p5757_p0 = por %p5756_p13, %p5755_p12 }
  0x23   :  { %p5758_p1 = pnand %p5757_p0, %p5751_p11 }
  0x25   :  { %5761 = shalt.err (!%p5758_p1)
}
  0x26   :  { %63 = dma.hbm_to_vmem [thread:$0]  %s6401_s3, 128, %s61_s24, [#allocation9]  }
  0x27   :  { %s5762_s17 = scalar_lea.hbm %s6403_s5, 32 }
  0x28   :  { %p5763_p2 = scmp.ne.s32.totalorder %s6403_s5, %s5762_s17  ;;  %p5766_p3 = scmp.lt.u32.totalorder %s5762_s17, %s6403_s5 }
  0x2a   :  { %p5768_p4 = pnand %p5766_p3, %p5763_p2 }
  0x2c   :  { %5771 = shalt.err (!%p5768_p4)
}
  0x2d   :  { %s5772_s22 = scalar_lea.vmem %s83_s26, 32  ;;  %p5777_p6 = scmp.lt.s32.totalorder %s83_s26, %s83_s26 }
  0x2e   :  { %p5773_p5 = scmp.ne.s32.totalorder %s83_s26, %s5772_s22  ;;  %p5778_p7 = scmp.lt.s32.totalorder %s5772_s22, %s5772_s22 }
  0x30   :  { %p5779_p8 = por %p5778_p7, %p5777_p6 }
  0x32   :  { %p5780_p9 = pnand %p5779_p8, %p5773_p5 }
  0x34   :  { %5783 = shalt.err (!%p5780_p9)
}
  0x35   :  { %85 = dma.hbm_to_vmem [thread:$0]  %s6403_s5, 32, %s83_s26, [#allocation12]  }
  0x36   :  { %s5955_s24 = smov [#allocation14]   ;;  %s5784_s29 = scalar_lea.hbm %s6405_s7, 2048 }
  0x37   :  { %s101_s25 = sshll.u32 %s5955_s24, 4  ;;  %p5785_p10 = scmp.ne.s32.totalorder %s6405_s7, %s5784_s29  ;;  %s102_s25 = int_to_ptr.vmem [resolvable:$true] %s101_s25 }
  0x38   :  { %p5788_p11 = scmp.lt.u32.totalorder %s5784_s29, %s6405_s7 }
  0x3a   :  { %p5790_p12 = pnand %p5788_p11, %p5785_p10 }
  0x3c   :  { %5793 = shalt.err (!%p5790_p12)
}
  0x3d   :  { %s5794_s1 = scalar_lea.vmem %s102_s25, 2048  ;;  %p5799_p0 = scmp.lt.s32.totalorder %s102_s25, %s102_s25 }
  0x3e   :  { %p5795_p13 = scmp.ne.s32.totalorder %s102_s25, %s5794_s1  ;;  %p5800_p1 = scmp.lt.s32.totalorder %s5794_s1, %s5794_s1 }
  0x40   :  { %p5801_p2 = por %p5800_p1, %p5799_p0 }
  0x42   :  { %p5802_p3 = pnand %p5801_p2, %p5795_p13 }
  0x44   :  { %5805 = shalt.err (!%p5802_p3)
}
  0x45   :  { %s5956_s5 = smov 64   ;;  %s5957_s26 = smov 4  }
  0x46   :  { %107 = dma.hbm_to_vmem [thread:$0]  %s6405_s7, 2048, %s102_s25, [#allocation15], %s5956_s5, %s5956_s5, %s5957_s26  }
  0x47   :  { %s5958_s15 = smov [#allocation2]   ;;  %s5806_s19 = scalar_lea.hbm %s6398_s0, 1792 }
  0x48   :  { %s25_s16 = sshll.u32 %s5958_s15, 4  ;;  %p5807_p4 = scmp.ne.s32.totalorder %s6398_s0, %s5806_s19  ;;  %s26_s16 = int_to_ptr.vmem [resolvable:$true] %s25_s16 }
  0x49   :  { %p5810_p5 = scmp.lt.u32.totalorder %s5806_s19, %s6398_s0 }
  0x4b   :  { %p5812_p6 = pnand %p5810_p5, %p5807_p4 }
  0x4d   :  { %5815 = shalt.err (!%p5812_p6)
}
  0x4e   :  { %s5816_s23 = scalar_lea.vmem %s26_s16, 1792  ;;  %p5821_p8 = scmp.lt.s32.totalorder %s26_s16, %s26_s16 }
  0x4f   :  { %p5817_p7 = scmp.ne.s32.totalorder %s26_s16, %s5816_s23  ;;  %p5822_p9 = scmp.lt.s32.totalorder %s5816_s23, %s5816_s23 }
  0x51   :  { %p5823_p10 = por %p5822_p9, %p5821_p8 }
  0x53   :  { %p5824_p11 = pnand %p5823_p10, %p5817_p7 }
  0x55   :  { %5827 = shalt.err (!%p5824_p11)
}
  0x56   :  { %s5959_s7 = smov 896   ;;  %s5960_s24 = smov 56  }
  0x57   :  { %31 = dma.hbm_to_vmem [thread:$0]  %s6398_s0, 1792, %s26_s16, [#allocation3], %s5959_s7, %s5959_s7, %s5960_s24  }
  0x58   :  { %s5961_s28 = smov [#allocation7]   ;;  %s5962_s30 = smov [#allocation10]  }
  0x59   :  { %s50_s29 = sshll.u32 %s5961_s28, 4  ;;  %s69_s11 = sshll.u32 %s5962_s30, 4  ;;  %s51_s29 = int_to_ptr.vmem [resolvable:$true] %s50_s29  ;;  %s70_s11 = int_to_ptr.vmem [resolvable:$true] %s69_s11 }
  0x5a   :  { %s5828_s1 = scalar_lea.hbm %s6400_s2, 128 }
  0x5b   :  { %p5829_p12 = scmp.ne.s32.totalorder %s6400_s2, %s5828_s1  ;;  %p5832_p13 = scmp.lt.u32.totalorder %s5828_s1, %s6400_s2 }
  0x5d   :  { %p5834_p0 = pnand %p5832_p13, %p5829_p12 }
  0x5f   :  { %5837 = shalt.err (!%p5834_p0)
}
  0x60   :  { %s5838_s0 = scalar_lea.vmem %s51_s29, 128  ;;  %p5843_p2 = scmp.lt.s32.totalorder %s51_s29, %s51_s29 }
  0x61   :  { %p5839_p1 = scmp.ne.s32.totalorder %s51_s29, %s5838_s0  ;;  %p5844_p3 = scmp.lt.s32.totalorder %s5838_s0, %s5838_s0 }
  0x63   :  { %p5845_p4 = por %p5844_p3, %p5843_p2 }
  0x65   :  { %p5846_p5 = pnand %p5845_p4, %p5839_p1 }
  0x67   :  { %5849 = shalt.err (!%p5846_p5)
}
  0x68   :  { %53 = dma.hbm_to_vmem [thread:$0]  %s6400_s2, 128, %s51_s29, [#allocation6]  }
  0x69   :  { %s5850_s19 = scalar_lea.hbm %s6402_s4, 16384 }
  0x6a   :  { %p5851_p6 = scmp.ne.s32.totalorder %s6402_s4, %s5850_s19  ;;  %p5854_p7 = scmp.lt.u32.totalorder %s5850_s19, %s6402_s4 }
  0x6c   :  { %p5856_p8 = pnand %p5854_p7, %p5851_p6 }
  0x6e   :  { %5859 = shalt.err (!%p5856_p8)
}
  0x6f   :  { %s5860_s23 = scalar_lea.vmem %s70_s11, 16384  ;;  %p5865_p10 = scmp.lt.s32.totalorder %s70_s11, %s70_s11 }
  0x70   :  { %p5861_p9 = scmp.ne.s32.totalorder %s70_s11, %s5860_s23  ;;  %p5866_p11 = scmp.lt.s32.totalorder %s5860_s23, %s5860_s23 }
  0x72   :  { %p5867_p12 = por %p5866_p11, %p5865_p10 }
  0x74   :  { %p5868_p13 = pnand %p5867_p12, %p5861_p9 }
  0x76   :  { %5871 = shalt.err (!%p5868_p13)
}
  0x77   :  { %s5963_s2 = smov 128   ;;  %s5964_s7 = smov 8  }
  0x78   :  { %75 = dma.hbm_to_vmem [thread:$0]  %s6402_s4, 16384, %s70_s11, [#allocation9], %s5963_s2, %s5963_s2, %s5964_s7  }
  0x79   :  { %s5965_s27 = smov [#allocation13]   ;;  %s5966_s29 = smov [#allocation16]  }
  0x7a   :  { %s92_s28 = sshll.u32 %s5965_s27, 4  ;;  %s114_s30 = sshll.u32 %s5966_s29, 4  ;;  %s93_s28 = int_to_ptr.vmem [resolvable:$true] %s92_s28  ;;  %s115_s30 = int_to_ptr.vmem [resolvable:$true] %s114_s30 }
  0x7b   :  { %s5872_s1 = scalar_lea.hbm %s6404_s6, 32 }
  0x7c   :  { %p5873_p0 = scmp.ne.s32.totalorder %s6404_s6, %s5872_s1  ;;  %p5876_p1 = scmp.lt.u32.totalorder %s5872_s1, %s6404_s6 }
  0x7e   :  { %p5878_p2 = pnand %p5876_p1, %p5873_p0 }
  0x80   :  { %5881 = shalt.err (!%p5878_p2)
}
  0x81   :  { %s5882_s4 = scalar_lea.vmem %s93_s28, 32  ;;  %p5887_p4 = scmp.lt.s32.totalorder %s93_s28, %s93_s28 }
  0x82   :  { %p5883_p3 = scmp.ne.s32.totalorder %s93_s28, %s5882_s4  ;;  %p5888_p5 = scmp.lt.s32.totalorder %s5882_s4, %s5882_s4 }
  0x84   :  { %p5889_p6 = por %p5888_p5, %p5887_p4 }
  0x86   :  { %p5890_p7 = pnand %p5889_p6, %p5883_p3 }
  0x88   :  { %5893 = shalt.err (!%p5890_p7)
}
  0x89   :  { %95 = dma.hbm_to_vmem [thread:$0]  %s6404_s6, 32, %s93_s28, [#allocation12]  }
  0x8a   :  { %s5894_s17 = scalar_lea.hbm %s6406_s8, 16 }
  0x8b   :  { %p5895_p8 = scmp.ne.s32.totalorder %s6406_s8, %s5894_s17  ;;  %p5898_p9 = scmp.lt.u32.totalorder %s5894_s17, %s6406_s8 }
  0x8d   :  { %p5900_p10 = pnand %p5898_p9, %p5895_p8 }
  0x8f   :  { %5903 = shalt.err (!%p5900_p10)
}
  0x90   :  { %s5904_s22 = scalar_lea.vmem %s115_s30, 16  ;;  %s5908_s3 = scalar_lea.vmem %s115_s30, 32 }
  0x91   :  { %p5905_p11 = scmp.ne.s32.totalorder %s115_s30, %s5904_s22  ;;  %p5909_p12 = scmp.lt.s32.totalorder %s115_s30, %s115_s30 }
  0x92   :  { %p5910_p13 = scmp.lt.s32.totalorder %s5908_s3, %s5904_s22 }
  0x94   :  { %p5911_p0 = por %p5910_p13, %p5909_p12 }
  0x96   :  { %p5912_p1 = pnand %p5911_p0, %p5905_p11 }
  0x98   :  { %5915 = shalt.err (!%p5912_p1)
}
  0x99   :  { %117 = dma.hbm_to_vmem [thread:$0]  %s6406_s8, 16, %s115_s30, [#allocation15]  }
  0x9a   :  { %5938 = dma.done.wait [#allocation3], 1792  }
  0x9b   :  { %5939 = vsyncadd [#allocation3], 4294965504 }
  0x9c   :  { %5940 = dma.done.wait [#allocation6], 50304  }
  0x9d   :  { %5941 = vsyncadd [#allocation6], 4294916992 }
  0x9e   :  { %5942 = dma.done.wait [#allocation9], 16512  }
  0x9f   :  { %5943 = vsyncadd [#allocation9], 4294950784 }
  0xa0   :  { %5944 = dma.done.wait [#allocation12], 64  }
  0xa1   :  { %5945 = vsyncadd [#allocation12], 4294967232 }
  0xa2   :  { %5946 = dma.done.wait [#allocation15], 2064  }
  0xa3   :  { %5947 = vsyncadd [#allocation15], 4294965232  ;;  %v167_v0 = vld [vmem:[#allocation5] sm:$0xff]  ;;  %v147_v27 = vld [vmem:[#allocation2 + $0x8] sm:$0xff]  ;;  %vm2519_vm0 = vcmask 130048   ;;  %s5969_s8 = smov [#allocation17]  }
  0xa4   :  { %v171_v1 = vld [vmem:[#allocation5 + $0x20] sm:$0xff]  ;;  %v154_v30 = vld [vmem:[#allocation2 + $0x40] sm:$0xff]  ;;  %s4831_s24 = sshll.u32 %s5969_s8, 4  ;;  %s4832_s24 = int_to_ptr.vmem [resolvable:$true] %s4831_s24 }
  0xa5   :  { %v175_v2 = vld [vmem:[#allocation5 + $0x40] sm:$0xff]  ;;  %v4848_v3 = vcombine.high %v167_v0, %v171_v1  ;;  %v4847_v4 = vcombine.low %v167_v0, %v171_v1  ;;  %v6131_v34 = vpack.c.bf16 %v154_v30, %v147_v27  ;;  %s5916_s25 = scalar_lea.vmem %s4832_s24, 256  ;;  %p5921_p3 = scmp.lt.s32.totalorder %s4832_s24, %s4832_s24 }
  0xa6   :  { %v179_v5 = vld [vmem:[#allocation5 + $0x60] sm:$0xff]  ;;  %p5917_p2 = scmp.ne.s32.totalorder %s4832_s24, %s5916_s25  ;;  %p5922_p4 = scmp.lt.s32.totalorder %s5916_s25, %s5916_s25 }
  0xa7   :  { %v4856_v6 = vcombine.high %v175_v2, %v179_v5  ;;  %v183_v7 = vld [vmem:[#allocation5 + $0x80] sm:$0xff]  ;;  %2523 = vmatprep.subr.bf16.mxu1 %v4848_v3  ;;  %v4855_v9 = vcombine.low %v175_v2, %v179_v5  ;;  %2555 = vmatprep.mubr.bf16.mxu1 %v6131_v34  ;;  %v151_v5 = vld [vmem:[#allocation2 + $0x28] sm:$0xff] }
  0xa8   :  { %v187_v8 = vld [vmem:[#allocation5 + $0xa0] sm:$0xff]  ;;  %2524 = vmatpush1.bf16.msra.mxu1 %v4847_v4  ;;  %p5923_p5 = por %p5922_p4, %p5921_p3 }
  0xa9   :  { %2525 = vmatprep.subr.bf16.mxu1 %v4856_v6  ;;  %v4864_v10 = vcombine.high %v183_v7, %v187_v8  ;;  %v191_v11 = vld [vmem:[#allocation5 + $0xc0] sm:$0xff]  ;;  %v4863_v13 = vcombine.low %v183_v7, %v187_v8  ;;  %v158_v6 = vld [vmem:[#allocation2 + $0x60] sm:$0xff] }
  0xaa   :  { %v195_v12 = vld [vmem:[#allocation5 + $0xe0] sm:$0xff]  ;;  %v6134_v8 = vpack.c.bf16 %v158_v6, %v151_v5  ;;  %v149_v6 = vld [vmem:[#allocation2 + $0x18] sm:$0xff]  ;;  %p5924_p6 = pnand %p5923_p5, %p5917_p2 }
  0xab   :  { %v4872_v14 = vcombine.high %v191_v11, %v195_v12  ;;  %v423_v15 = vld [vmem:[#allocation5 + $0x800] sm:$0xff]  ;;  %v4871_v23 = vcombine.low %v191_v11, %v195_v12 }
  0xac   :  { %2526 = vmatpush1.bf16.msra.mxu1 %v4855_v9  ;;  %v427_v16 = vld [vmem:[#allocation5 + $0x820] sm:$0xff]  ;;  %2641 = vmatprep.mubr.bf16.mxu0 %v6134_v8 }
  0xad   :  { %2527 = vmatprep.subr.bf16.mxu1 %v4864_v10  ;;  %v199_v17 = vld [vmem:[#allocation5 + $0x100] sm:$0xff]  ;;  %v5104_v19 = vcombine.high %v423_v15, %v427_v16  ;;  %v5103_v20 = vcombine.low %v423_v15, %v427_v16 }
  0xae   :  { %v203_v18 = vld [vmem:[#allocation5 + $0x120] sm:$0xff] }
  0xaf   :  { %v431_v21 = vld [vmem:[#allocation5 + $0x840] sm:$0xff]  ;;  %2609 = vmatprep.subr.bf16.mxu0 %v5104_v19  ;;  %v4880_v28 = vcombine.high %v199_v17, %v203_v18  ;;  %v4879_v37 = vcombine.low %v199_v17, %v203_v18 }
  0xb0   :  { %v435_v22 = vld [vmem:[#allocation5 + $0x860] sm:$0xff]  ;;  %2528 = vmatpush1.bf16.msra.mxu1 %v4863_v13  ;;  %2610 = vmatpush1.bf16.msra.mxu0 %v5103_v20 }
  0xb1   :  { %v5112_v24 = vcombine.high %v431_v21, %v435_v22  ;;  %v439_v25 = vld [vmem:[#allocation5 + $0x880] sm:$0xff]  ;;  %2529 = vmatprep.subr.bf16.mxu1 %v4872_v14  ;;  %v5111_v29 = vcombine.low %v431_v21, %v435_v22 }
  0xb2   :  { %v443_v26 = vld [vmem:[#allocation5 + $0x8a0] sm:$0xff] }
  0xb3   :  { %v207_v31 = vld [vmem:[#allocation5 + $0x140] sm:$0xff]  ;;  %2611 = vmatprep.subr.bf16.mxu0 %v5112_v24  ;;  %v5120_v33 = vcombine.high %v439_v25, %v443_v26  ;;  %v5119_v39 = vcombine.low %v439_v25, %v443_v26 }
  0xb4   :  { %v211_v32 = vld [vmem:[#allocation5 + $0x160] sm:$0xff]  ;;  %2530 = vmatpush1.bf16.msra.mxu1 %v4871_v23  ;;  %2612 = vmatpush1.bf16.msra.mxu0 %v5111_v29 }
  0xb5   :  { %v447_v35 = vld [vmem:[#allocation5 + $0x8c0] sm:$0xff]  ;;  %2531 = vmatprep.subr.bf16.mxu1 %v4880_v28  ;;  %v4888_v38 = vcombine.high %v207_v31, %v211_v32  ;;  %2613 = vmatprep.subr.bf16.mxu0 %v5120_v33  ;;  %v4887_v45 = vcombine.low %v207_v31, %v211_v32 }
  0xb6   :  { %v451_v36 = vld [vmem:[#allocation5 + $0x8e0] sm:$0xff] }
  0xb7   :  { %v215_v40 = vld [vmem:[#allocation5 + $0x180] sm:$0xff]  ;;  %v5128_v42 = vcombine.high %v447_v35, %v451_v36  ;;  %v5127_v47 = vcombine.low %v447_v35, %v451_v36 }
  0xb8   :  { %v219_v41 = vld [vmem:[#allocation5 + $0x1a0] sm:$0xff]  ;;  %2532 = vmatpush1.bf16.msra.mxu1 %v4879_v37  ;;  %2614 = vmatpush1.bf16.msra.mxu0 %v5119_v39 }
  0xb9   :  { %v455_v43 = vld [vmem:[#allocation5 + $0x900] sm:$0xff]  ;;  %2533 = vmatprep.subr.bf16.mxu1 %v4888_v38  ;;  %v4896_v46 = vcombine.high %v215_v40, %v219_v41  ;;  %2615 = vmatprep.subr.bf16.mxu0 %v5128_v42  ;;  %v4895_v53 = vcombine.low %v215_v40, %v219_v41 }
  0xba   :  { %v459_v44 = vld [vmem:[#allocation5 + $0x920] sm:$0xff] }
  0xbb   :  { %v223_v48 = vld [vmem:[#allocation5 + $0x1c0] sm:$0xff]  ;;  %v5136_v50 = vcombine.high %v455_v43, %v459_v44  ;;  %v5135_v55 = vcombine.low %v455_v43, %v459_v44 }
  0xbc   :  { %v227_v49 = vld [vmem:[#allocation5 + $0x1e0] sm:$0xff]  ;;  %2534 = vmatpush1.bf16.msra.mxu1 %v4887_v45  ;;  %2616 = vmatpush1.bf16.msra.mxu0 %v5127_v47 }
  0xbd   :  { %v463_v51 = vld [vmem:[#allocation5 + $0x940] sm:$0xff]  ;;  %2535 = vmatprep.subr.bf16.mxu1 %v4896_v46  ;;  %v4904_v54 = vcombine.high %v223_v48, %v227_v49  ;;  %2617 = vmatprep.subr.bf16.mxu0 %v5136_v50  ;;  %v4903_v61 = vcombine.low %v223_v48, %v227_v49 }
  0xbe   :  { %v467_v52 = vld [vmem:[#allocation5 + $0x960] sm:$0xff] }
  0xbf   :  { %v231_v56 = vld [vmem:[#allocation5 + $0x200] sm:$0xff]  ;;  %v5144_v58 = vcombine.high %v463_v51, %v467_v52  ;;  %v5143_v63 = vcombine.low %v463_v51, %v467_v52 }
  0xc0   :  { %v235_v57 = vld [vmem:[#allocation5 + $0x220] sm:$0xff]  ;;  %2536 = vmatpush1.bf16.msra.mxu1 %v4895_v53  ;;  %2618 = vmatpush1.bf16.msra.mxu0 %v5135_v55 }
  0xc1   :  { %v471_v59 = vld [vmem:[#allocation5 + $0x980] sm:$0xff]  ;;  %2537 = vmatprep.subr.bf16.mxu1 %v4904_v54  ;;  %v4912_v62 = vcombine.high %v231_v56, %v235_v57  ;;  %2619 = vmatprep.subr.bf16.mxu0 %v5144_v58  ;;  %v4911_v7 = vcombine.low %v231_v56, %v235_v57 }
  0xc2   :  { %v475_v60 = vld [vmem:[#allocation5 + $0x9a0] sm:$0xff] }
  0xc3   :  { %v239_v0 = vld [vmem:[#allocation5 + $0x240] sm:$0xff]  ;;  %v5152_v2 = vcombine.high %v471_v59, %v475_v60  ;;  %v5151_v10 = vcombine.low %v471_v59, %v475_v60 }
  0xc4   :  { %v243_v1 = vld [vmem:[#allocation5 + $0x260] sm:$0xff]  ;;  %2538 = vmatpush1.bf16.msra.mxu1 %v4903_v61  ;;  %2620 = vmatpush1.bf16.msra.mxu0 %v5143_v63 }
  0xc5   :  { %v479_v3 = vld [vmem:[#allocation5 + $0x9c0] sm:$0xff]  ;;  %2539 = vmatprep.subr.bf16.mxu1 %v4912_v62  ;;  %v4920_v9 = vcombine.high %v239_v0, %v243_v1  ;;  %2621 = vmatprep.subr.bf16.mxu0 %v5152_v2  ;;  %v4919_v16 = vcombine.low %v239_v0, %v243_v1  ;;  %v146_v0 = vld [vmem:[#allocation2] sm:$0xff]  ;;  %v153_v1 = vld [vmem:[#allocation2 + $0x38] sm:$0xff] }
  0xc6   :  { %v483_v4 = vld [vmem:[#allocation5 + $0x9e0] sm:$0xff] }
  0xc7   :  { %v247_v11 = vld [vmem:[#allocation5 + $0x280] sm:$0xff]  ;;  %v5160_v13 = vcombine.high %v479_v3, %v483_v4  ;;  %v5159_v18 = vcombine.low %v479_v3, %v483_v4 }
  0xc8   :  { %v251_v12 = vld [vmem:[#allocation5 + $0x2a0] sm:$0xff]  ;;  %2540 = vmatpush1.bf16.msra.mxu1 %v4911_v7  ;;  %2622 = vmatpush1.bf16.msra.mxu0 %v5151_v10 }
  0xc9   :  { %v487_v14 = vld [vmem:[#allocation5 + $0xa00] sm:$0xff]  ;;  %2541 = vmatprep.subr.bf16.mxu1 %v4920_v9  ;;  %v4928_v17 = vcombine.high %v247_v11, %v251_v12  ;;  %2623 = vmatprep.subr.bf16.mxu0 %v5160_v13  ;;  %v4927_v24 = vcombine.low %v247_v11, %v251_v12 }
  0xca   :  { %v491_v15 = vld [vmem:[#allocation5 + $0xa20] sm:$0xff] }
  0xcb   :  { %v255_v19 = vld [vmem:[#allocation5 + $0x2c0] sm:$0xff]  ;;  %v5168_v21 = vcombine.high %v487_v14, %v491_v15  ;;  %v5167_v26 = vcombine.low %v487_v14, %v491_v15  ;;  %v6137_v14 = vpack.c.bf16 %v153_v1, %v146_v0 }
  0xcc   :  { %v259_v20 = vld [vmem:[#allocation5 + $0x2e0] sm:$0xff]  ;;  %2542 = vmatpush1.bf16.msra.mxu1 %v4919_v16  ;;  %2624 = vmatpush1.bf16.msra.mxu0 %v5159_v18 }
  0xcd   :  { %v495_v22 = vld [vmem:[#allocation5 + $0xa40] sm:$0xff]  ;;  %2543 = vmatprep.subr.bf16.mxu1 %v4928_v17  ;;  %v4936_v25 = vcombine.high %v255_v19, %v259_v20  ;;  %2625 = vmatprep.subr.bf16.mxu0 %v5168_v21  ;;  %v4935_v32 = vcombine.low %v255_v19, %v259_v20 }
  0xce   :  { %v499_v23 = vld [vmem:[#allocation5 + $0xa60] sm:$0xff] }
  0xcf   :  { %v263_v27 = vld [vmem:[#allocation5 + $0x300] sm:$0xff]  ;;  %v5176_v29 = vcombine.high %v495_v22, %v499_v23  ;;  %v5175_v35 = vcombine.low %v495_v22, %v499_v23 }
  0xd0   :  { %v267_v28 = vld [vmem:[#allocation5 + $0x320] sm:$0xff]  ;;  %2544 = vmatpush1.bf16.msra.mxu1 %v4927_v24  ;;  %2626 = vmatpush1.bf16.msra.mxu0 %v5167_v26 }
  0xd1   :  { %v503_v30 = vld [vmem:[#allocation5 + $0xa80] sm:$0xff]  ;;  %2545 = vmatprep.subr.bf16.mxu1 %v4936_v25  ;;  %v4944_v33 = vcombine.high %v263_v27, %v267_v28  ;;  %2627 = vmatprep.subr.bf16.mxu0 %v5176_v29  ;;  %v4943_v41 = vcombine.low %v263_v27, %v267_v28  ;;  %v150_v27 = vld [vmem:[#allocation2 + $0x20] sm:$0xff]  ;;  %v157_v28 = vld [vmem:[#allocation2 + $0x58] sm:$0xff] }
  0xd2   :  { %v507_v31 = vld [vmem:[#allocation5 + $0xaa0] sm:$0xff] }
  0xd3   :  { %v271_v36 = vld [vmem:[#allocation5 + $0x340] sm:$0xff]  ;;  %v5184_v38 = vcombine.high %v503_v30, %v507_v31  ;;  %v5183_v43 = vcombine.low %v503_v30, %v507_v31  ;;  %v552_v31 = vld [vmem:[#allocation5 + $0xc08] sm:$0xff] }
  0xd4   :  { %v275_v37 = vld [vmem:[#allocation5 + $0x360] sm:$0xff]  ;;  %2546 = vmatpush1.bf16.msra.mxu1 %v4935_v32  ;;  %2628 = vmatpush1.bf16.msra.mxu0 %v5175_v35  ;;  %v556_v32 = vld [vmem:[#allocation5 + $0xc28] sm:$0xff] }
  0xd5   :  { %v511_v39 = vld [vmem:[#allocation5 + $0xac0] sm:$0xff]  ;;  %2547 = vmatprep.subr.bf16.mxu1 %v4944_v33  ;;  %v4952_v42 = vcombine.high %v271_v36, %v275_v37  ;;  %2629 = vmatprep.subr.bf16.mxu0 %v5184_v38  ;;  %v4951_v49 = vcombine.low %v271_v36, %v275_v37  ;;  %v6143_v37 = vpack.c.bf16 %v157_v28, %v150_v27  ;;  %v201_v28 = vld [vmem:[#allocation5 + $0x110] sm:$0xff] }
  0xd6   :  { %v515_v40 = vld [vmem:[#allocation5 + $0xae0] sm:$0xff] }
  0xd7   :  { %v279_v44 = vld [vmem:[#allocation5 + $0x380] sm:$0xff]  ;;  %v5192_v46 = vcombine.high %v511_v39, %v515_v40  ;;  %v5191_v51 = vcombine.low %v511_v39, %v515_v40 }
  0xd8   :  { %v283_v45 = vld [vmem:[#allocation5 + $0x3a0] sm:$0xff]  ;;  %2548 = vmatpush1.bf16.msra.mxu1 %v4943_v41  ;;  %2630 = vmatpush1.bf16.msra.mxu0 %v5183_v43  ;;  %v5234_v41 = vcombine.high %v552_v31, %v556_v32 }
  0xd9   :  { %v519_v47 = vld [vmem:[#allocation5 + $0xb00] sm:$0xff]  ;;  %2549 = vmatprep.subr.bf16.mxu1 %v4952_v42  ;;  %v4960_v50 = vcombine.high %v279_v44, %v283_v45  ;;  %2631 = vmatprep.subr.bf16.mxu0 %v5192_v46  ;;  %v4959_v57 = vcombine.low %v279_v44, %v283_v45  ;;  %v5967_v46 = vmov 0  }
  0xda   :  { %v523_v48 = vld [vmem:[#allocation5 + $0xb20] sm:$0xff] }
  0xdb   :  { %v287_v52 = vld [vmem:[#allocation5 + $0x3c0] sm:$0xff]  ;;  %v5200_v54 = vcombine.high %v519_v47, %v523_v48  ;;  %v5199_v61 = vcombine.low %v519_v47, %v523_v48 }
  0xdc   :  { %v291_v53 = vld [vmem:[#allocation5 + $0x3e0] sm:$0xff]  ;;  %2550 = vmatpush1.bf16.msra.mxu1 %v4951_v49  ;;  %2632 = vmatpush1.bf16.msra.mxu0 %v5191_v51  ;;  %v159_v51 = vld [vmem:[#allocation2 + $0x68] sm:$0xff] }
  0xdd   :  { %v527_v55 = vld [vmem:[#allocation5 + $0xb40] sm:$0xff]  ;;  %2551 = vmatprep.subr.bf16.mxu1 %v4960_v50  ;;  %v4968_v60 = vcombine.high %v287_v52, %v291_v53  ;;  %2633 = vmatprep.subr.bf16.mxu0 %v5200_v54  ;;  %v4967_v3 = vcombine.low %v287_v52, %v291_v53  ;;  %v169_v53 = vld [vmem:[#allocation5 + $0x10] sm:$0xff] }
  0xde   :  { %v531_v56 = vld [vmem:[#allocation5 + $0xb60] sm:$0xff]  ;;  %v173_v54 = vld [vmem:[#allocation5 + $0x30] sm:$0xff] }
  0xdf   :  { %v295_v58 = vld [vmem:[#allocation5 + $0x400] sm:$0xff]  ;;  %v5208_v2 = vcombine.high %v527_v55, %v531_v56  ;;  %v5207_v9 = vcombine.low %v527_v55, %v531_v56 }
  0xe0   :  { %v299_v59 = vld [vmem:[#allocation5 + $0x420] sm:$0xff]  ;;  %2552 = vmatpush1.bf16.msra.mxu1 %v4959_v57  ;;  %2634 = vmatpush1.bf16.msra.mxu0 %v5199_v61  ;;  %v4852_v61 = vcombine.high %v169_v53, %v173_v54 }
  0xe1   :  { %v535_v62 = vld [vmem:[#allocation5 + $0xb80] sm:$0xff]  ;;  %2553 = vmatprep.subr.bf16.mxu1 %v4968_v60  ;;  %v4976_v7 = vcombine.high %v295_v58, %v299_v59  ;;  %2635 = vmatprep.subr.bf16.mxu0 %v5208_v2  ;;  %v4975_v15 = vcombine.low %v295_v58, %v299_v59  ;;  %v5233_v60 = vcombine.low %v552_v31, %v556_v32  ;;  %v177_v2 = vld [vmem:[#allocation5 + $0x50] sm:$0xff] }
  0xe2   :  { %v539_v63 = vld [vmem:[#allocation5 + $0xba0] sm:$0xff] }
  0xe3   :  { %v303_v4 = vld [vmem:[#allocation5 + $0x440] sm:$0xff]  ;;  %v5216_v13 = vcombine.high %v535_v62, %v539_v63  ;;  %v5215_v20 = vcombine.low %v535_v62, %v539_v63 }
  0xe4   :  { %v307_v5 = vld [vmem:[#allocation5 + $0x460] sm:$0xff]  ;;  %2554 = vmatpush1.bf16.msra.mxu1 %v4967_v3  ;;  %2636 = vmatpush1.bf16.msra.mxu0 %v5207_v9  ;;  %v181_v3 = vld [vmem:[#allocation5 + $0x70] sm:$0xff]  ;;  %v4851_v9 = vcombine.low %v169_v53, %v173_v54 }
  0xe5   :  { %v543_v10 = vld [vmem:[#allocation5 + $0xbc0] sm:$0xff]  ;;  %2566 = vmatprep.subr.bf16.mxu1 %v4976_v7  ;;  %v4984_v19 = vcombine.high %v303_v4, %v307_v5  ;;  %2637 = vmatprep.subr.bf16.mxu0 %v5216_v13  ;;  %v4983_v24 = vcombine.low %v303_v4, %v307_v5 }
  0xe6   :  { %v547_v11 = vld [vmem:[#allocation5 + $0xbe0] sm:$0xff] }
  0xe7   :  { %v156_v12 = vld [vmem:[#allocation2 + $0x50] sm:$0xff]  ;;  %v5224_v23 = vcombine.high %v543_v10, %v547_v11  ;;  %2556 = vmatmul.mubr.bf16.vlgmr.msra.gmra.mrb[0].mxu1 %v6137_v14  ;;  %v5223_v30 = vcombine.low %v543_v10, %v547_v11  ;;  %v185_v10 = vld [vmem:[#allocation5 + $0x90] sm:$0xff] }
  0xe8   :  { %v311_v16 = vld [vmem:[#allocation5 + $0x480] sm:$0xff]  ;;  %v6139_v18 = vpack.c.bf16 %v156_v12, %v149_v6  ;;  %2567 = vmatpush1.bf16.msra.mxu1 %v4975_v15  ;;  %2638 = vmatpush1.bf16.msra.mxu0 %v5215_v20  ;;  %v189_v11 = vld [vmem:[#allocation5 + $0xb0] sm:$0xff]  ;;  %v4860_v12 = vcombine.high %v177_v2, %v181_v3 }
  0xe9   :  { %v315_v17 = vld [vmem:[#allocation5 + $0x4a0] sm:$0xff]  ;;  %2568 = vmatprep.subr.bf16.mxu1 %v4984_v19  ;;  %2639 = vmatprep.subr.bf16.mxu0 %v5224_v23  ;;  %v4859_v19 = vcombine.low %v177_v2, %v181_v3  ;;  %v193_v20 = vld [vmem:[#allocation5 + $0xd0] sm:$0xff]  ;;  %v4867_v27 = vcombine.low %v185_v10, %v189_v11 }
  0xea   :  { %v551_v21 = vld [vmem:[#allocation5 + $0xc00] sm:$0xff]  ;;  %2598 = vmatprep.mubr.bf16.mxu1 %v6139_v18  ;;  %v4992_v29 = vcombine.high %v311_v16, %v315_v17  ;;  %v4991_v35 = vcombine.low %v311_v16, %v315_v17 }
  0xeb   :  { %v555_v22 = vld [vmem:[#allocation5 + $0xc20] sm:$0xff] }
  0xec   :  { %v319_v25 = vld [vmem:[#allocation5 + $0x4c0] sm:$0xff]  ;;  %v5232_v33 = vcombine.high %v551_v21, %v555_v22  ;;  %2569 = vmatpush1.bf16.msra.mxu1 %v4983_v24  ;;  %2640 = vmatpush1.bf16.msra.mxu0 %v5223_v30  ;;  %v5231_v40 = vcombine.low %v551_v21, %v555_v22  ;;  %v197_v21 = vld [vmem:[#allocation5 + $0xf0] sm:$0xff]  ;;  %v4868_v22 = vcombine.high %v185_v10, %v189_v11 }
  0xed   :  { %v323_v26 = vld [vmem:[#allocation5 + $0x4e0] sm:$0xff]  ;;  %2570 = vmatprep.subr.bf16.mxu1 %v4992_v29  ;;  %v205_v29 = vld [vmem:[#allocation5 + $0x130] sm:$0xff]  ;;  %v4876_v30 = vcombine.high %v193_v20, %v197_v21 }
  0xee   :  { %v327_v36 = vld [vmem:[#allocation5 + $0x500] sm:$0xff]  ;;  %v5000_v38 = vcombine.high %v319_v25, %v323_v26  ;;  %2652 = vmatprep.subr.bf16.mxu0 %v5232_v33  ;;  %v4999_v42 = vcombine.low %v319_v25, %v323_v26  ;;  %v245_v10 = vld [vmem:[#allocation5 + $0x270] sm:$0xff] }
  0xef   :  { %v331_v39 = vld [vmem:[#allocation5 + $0x520] sm:$0xff]  ;;  %2642 = vmatmul.mubr.bf16.vlgmr.msra.gmra.mrb[0].mxu0 %v6143_v37 }
  0xf0   :  { %2571 = vmatpush1.bf16.msra.mxu1 %v4991_v35  ;;  %v335_v43 = vld [vmem:[#allocation5 + $0x540] sm:$0xff]  ;;  %v5008_v44 = vcombine.high %v327_v36, %v331_v39  ;;  %2653 = vmatpush1.bf16.msra.mxu0 %v5231_v40  ;;  %v5007_v47 = vcombine.low %v327_v36, %v331_v39  ;;  %v4875_v36 = vcombine.low %v193_v20, %v197_v21  ;;  %v213_v39 = vld [vmem:[#allocation5 + $0x170] sm:$0xff] }
  0xf1   :  { %2572 = vmatprep.subr.bf16.mxu1 %v5000_v38  ;;  %v339_v45 = vld [vmem:[#allocation5 + $0x560] sm:$0xff]  ;;  %2684 = vmatprep.mubr.bf16.mxu0 %v5967_v46  ;;  %v209_v38 = vld [vmem:[#allocation5 + $0x150] sm:$0xff]  ;;  %v4884_v40 = vcombine.high %v201_v28, %v205_v29 }
  0xf2   :  { %2824 = vmatprep.subr.bf16.mxu0 %v5234_v41  ;;  %v343_v48 = vld [vmem:[#allocation5 + $0x580] sm:$0xff]  ;;  %v5016_v52 = vcombine.high %v335_v43, %v339_v45  ;;  %v5015_v55 = vcombine.low %v335_v43, %v339_v45  ;;  %v4883_v45 = vcombine.low %v201_v28, %v205_v29  ;;  %v4891_v54 = vcombine.low %v209_v38, %v213_v39  ;;  %v249_v21 = vld [vmem:[#allocation5 + $0x290] sm:$0xff] }
  0xf3   :  { %v347_v49 = vld [vmem:[#allocation5 + $0x5a0] sm:$0xff] }
  0xf4   :  { %2573 = vmatpush1.bf16.msra.mxu1 %v4999_v42  ;;  %v152_v50 = vld [vmem:[#allocation2 + $0x30] sm:$0xff]  ;;  %v5024_v58 = vcombine.high %v343_v48, %v347_v49  ;;  %v5023_v62 = vcombine.low %v343_v48, %v347_v49  ;;  %v221_v48 = vld [vmem:[#allocation5 + $0x1b0] sm:$0xff]  ;;  %v4892_v49 = vcombine.high %v209_v38, %v213_v39  ;;  %v196_v38 = vld [vmem:[#allocation5 + $0xe8] sm:$0xff] }
  0xf5   :  { %2574 = vmatprep.subr.bf16.mxu1 %v5008_v44  ;;  %v351_v56 = vld [vmem:[#allocation5 + $0x5c0] sm:$0xff]  ;;  %v6147_v57 = vpack.c.bf16 %v159_v51, %v152_v50 }
  0xf6   :  { %v355_v59 = vld [vmem:[#allocation5 + $0x5e0] sm:$0xff] }
  0xf7   :  { %v359_v63 = vld [vmem:[#allocation5 + $0x600] sm:$0xff]  ;;  %v5032_v1 = vcombine.high %v351_v56, %v355_v59  ;;  %v5031_v4 = vcombine.low %v351_v56, %v355_v59  ;;  %v229_v56 = vld [vmem:[#allocation5 + $0x1f0] sm:$0xff] }
  0xf8   :  { %2575 = vmatpush1.bf16.msra.mxu1 %v5007_v47  ;;  %v363_v0 = vld [vmem:[#allocation5 + $0x620] sm:$0xff]  ;;  %v217_v47 = vld [vmem:[#allocation5 + $0x190] sm:$0xff] }
  0xf9   :  { %2576 = vmatprep.subr.bf16.mxu1 %v5016_v52  ;;  %v367_v5 = vld [vmem:[#allocation5 + $0x640] sm:$0xff]  ;;  %v5040_v7 = vcombine.high %v359_v63, %v363_v0  ;;  %v5039_v13 = vcombine.low %v359_v63, %v363_v0  ;;  %v4899_v63 = vcombine.low %v217_v47, %v221_v48  ;;  %v233_v0 = vld [vmem:[#allocation5 + $0x210] sm:$0xff] }
  0xfa   :  { %v371_v6 = vld [vmem:[#allocation5 + $0x660] sm:$0xff] }
  0xfb   :  { %5239 = vmatmul.mubr.msk.bf16.vlgmr.msra.gmra.mrb[0].mxu0 %vm2519_vm0, %v6147_v57  ;;  %v375_v15 = vld [vmem:[#allocation5 + $0x680] sm:$0xff]  ;;  %v5048_v17 = vcombine.high %v367_v5, %v371_v6  ;;  %v5047_v23 = vcombine.low %v367_v5, %v371_v6  ;;  %v172_v5 = vld [vmem:[#allocation5 + $0x28] sm:$0xff] }
  0xfc   :  { %2577 = vmatpush1.bf16.msra.mxu1 %v5015_v55  ;;  %2825 = vmatpush1.bf16.msra.mxu0 %v5233_v60  ;;  %v379_v16 = vld [vmem:[#allocation5 + $0x6a0] sm:$0xff]  ;;  %v225_v55 = vld [vmem:[#allocation5 + $0x1d0] sm:$0xff] }
  0xfd   :  { %2578 = vmatprep.subr.bf16.mxu1 %v5024_v58  ;;  %2856 = vmatprep.mubr.bf16.mxu0 %v5967_v46  ;;  %v383_v24 = vld [vmem:[#allocation5 + $0x6c0] sm:$0xff]  ;;  %v5056_v26 = vcombine.high %v375_v15, %v379_v16  ;;  %v5055_v31 = vcombine.low %v375_v15, %v379_v16  ;;  %v4900_v58 = vcombine.high %v217_v47, %v221_v48  ;;  %v155_v15 = vld [vmem:[#allocation2 + $0x48] sm:$0xff]  ;;  %v176_v16 = vld [vmem:[#allocation5 + $0x48] sm:$0xff] }
  0xfe   :  { %2867 = vmatprep.subr.bf16.mxu0 %v4852_v61  ;;  %v387_v25 = vld [vmem:[#allocation5 + $0x6e0] sm:$0xff]  ;;  %v4908_v2 = vcombine.high %v225_v55, %v229_v56  ;;  %v200_v47 = vld [vmem:[#allocation5 + $0x108] sm:$0xff] }
  0xff   :  { %v391_v32 = vld [vmem:[#allocation5 + $0x700] sm:$0xff]  ;;  %v5064_v35 = vcombine.high %v383_v24, %v387_v25  ;;  %v5063_v41 = vcombine.low %v383_v24, %v387_v25  ;;  %v204_v48 = vld [vmem:[#allocation5 + $0x128] sm:$0xff] }
 0x100   :  { %2579 = vmatpush1.bf16.msra.mxu1 %v5023_v62  ;;  %v395_v33 = vld [vmem:[#allocation5 + $0x720] sm:$0xff] }
 0x101   :  { %2580 = vmatprep.subr.bf16.mxu1 %v5032_v1  ;;  %v399_v42 = vld [vmem:[#allocation5 + $0x740] sm:$0xff]  ;;  %v5072_v44 = vcombine.high %v391_v32, %v395_v33  ;;  %v5071_v50 = vcombine.low %v391_v32, %v395_v33  ;;  %v237_v1 = vld [vmem:[#allocation5 + $0x230] sm:$0xff] }
 0x102   :  { %v403_v43 = vld [vmem:[#allocation5 + $0x760] sm:$0xff]  ;;  %v4915_v20 = vcombine.low %v233_v0, %v237_v1 }
 0x103   :  { %5240 = vmatmul.mubr.msk.bf16.vlgmr.msra.gmra.mrb[4].mxu0 %vm2519_vm0, %v6147_v57  ;;  %v407_v51 = vld [vmem:[#allocation5 + $0x780] sm:$0xff]  ;;  %v5080_v53 = vcombine.high %v399_v42, %v403_v43  ;;  %v5079_v59 = vcombine.low %v399_v42, %v403_v43  ;;  %v269_v42 = vld [vmem:[#allocation5 + $0x330] sm:$0xff] }
 0x104   :  { %2581 = vmatpush1.bf16.msra.mxu1 %v5031_v4  ;;  %2868 = vmatpush1.bf16.msra.mxu0 %v4851_v9  ;;  %v411_v52 = vld [vmem:[#allocation5 + $0x7a0] sm:$0xff]  ;;  %v168_v4 = vld [vmem:[#allocation5 + $0x8] sm:$0xff]  ;;  %v241_v9 = vld [vmem:[#allocation5 + $0x250] sm:$0xff] }
 0x105   :  { %2582 = vmatprep.subr.bf16.mxu1 %v5040_v7  ;;  %2869 = vmatprep.subr.bf16.mxu0 %v4860_v12  ;;  %v415_v60 = vld [vmem:[#allocation5 + $0x7c0] sm:$0xff]  ;;  %v5088_v62 = vcombine.high %v407_v51, %v411_v52  ;;  %v5087_v3 = vcombine.low %v407_v51, %v411_v52  ;;  %v4907_v7 = vcombine.low %v225_v55, %v229_v56  ;;  %v277_v51 = vld [vmem:[#allocation5 + $0x370] sm:$0xff]  ;;  %v208_v55 = vld [vmem:[#allocation5 + $0x148] sm:$0xff] }
 0x106   :  { %2899 = vmatprep.mubr.bf16.mxu0 %v6131_v34  ;;  %v419_v61 = vld [vmem:[#allocation5 + $0x7e0] sm:$0xff]  ;;  %v4916_v12 = vcombine.high %v233_v0, %v237_v1  ;;  %v4849_v25 = vcombine.low %v168_v4, %v172_v5  ;;  %v4923_v29 = vcombine.low %v241_v9, %v245_v10  ;;  %v212_v56 = vld [vmem:[#allocation5 + $0x168] sm:$0xff] }
 0x107   :  { %v5096_v6 = vcombine.high %v415_v60, %v419_v61  ;;  %v148_v11 = vld [vmem:[#allocation2 + $0x10] sm:$0xff]  ;;  %v216_v0 = vld [vmem:[#allocation5 + $0x188] sm:$0xff] }
 0x108   :  { %2583 = vmatpush1.bf16.msra.mxu1 %v5039_v13  ;;  %2870 = vmatpush1.bf16.msra.mxu0 %v4859_v19  ;;  %v5095_v13 = vcombine.low %v415_v60, %v419_v61  ;;  %v4850_v19 = vcombine.high %v168_v4, %v172_v5  ;;  %v6155_v24 = vpack.c.bf16 %v155_v15, %v148_v11  ;;  %v285_v60 = vld [vmem:[#allocation5 + $0x3b0] sm:$0xff]  ;;  %v220_v1 = vld [vmem:[#allocation5 + $0x1a8] sm:$0xff] }
 0x109   :  { %2584 = vmatprep.subr.bf16.mxu1 %v5048_v17  ;;  %2871 = vmatprep.subr.bf16.mxu0 %v4868_v22  ;;  %v180_v17 = vld [vmem:[#allocation5 + $0x68] sm:$0xff]  ;;  %v253_v22 = vld [vmem:[#allocation5 + $0x2b0] sm:$0xff]  ;;  %v4881_v61 = vcombine.low %v200_v47, %v204_v48  ;;  %v4889_v5 = vcombine.low %v208_v55, %v212_v56  ;;  %v4897_v15 = vcombine.low %v216_v0, %v220_v1 }
 0x10a   :  { %v4858_v28 = vcombine.high %v176_v16, %v180_v17  ;;  %v4932_v32 = vcombine.high %v249_v21, %v253_v22  ;;  %v4857_v33 = vcombine.low %v176_v16, %v180_v17  ;;  %v4931_v39 = vcombine.low %v249_v21, %v253_v22  ;;  %v293_v4 = vld [vmem:[#allocation5 + $0x3f0] sm:$0xff] }
 0x10b   :  { %v305_v22 = vld [vmem:[#allocation5 + $0x450] sm:$0xff] }
 0x10c   :  { %2585 = vmatpush1.bf16.msra.mxu1 %v5047_v23  ;;  %2872 = vmatpush1.bf16.msra.mxu0 %v4867_v27  ;;  %v4924_v23 = vcombine.high %v241_v9, %v245_v10  ;;  %v188_v27 = vld [vmem:[#allocation5 + $0xa8] sm:$0xff] }
 0x10d   :  { %2586 = vmatprep.subr.bf16.mxu1 %v5056_v26  ;;  %2873 = vmatprep.subr.bf16.mxu0 %v4876_v30  ;;  %v184_v26 = vld [vmem:[#allocation5 + $0x88] sm:$0xff]  ;;  %v257_v30 = vld [vmem:[#allocation5 + $0x2d0] sm:$0xff] }
 0x10e   :  { %v4865_v43 = vcombine.low %v184_v26, %v188_v27  ;;  %v224_v9 = vld [vmem:[#allocation5 + $0x1c8] sm:$0xff] }
 0x10f   :  { %v228_v10 = vld [vmem:[#allocation5 + $0x1e8] sm:$0xff] }
 0x110   :  { %2587 = vmatpush1.bf16.msra.mxu1 %v5055_v31  ;;  %2874 = vmatpush1.bf16.msra.mxu0 %v4875_v36  ;;  %v261_v31 = vld [vmem:[#allocation5 + $0x2f0] sm:$0xff]  ;;  %v4866_v36 = vcombine.high %v184_v26, %v188_v27  ;;  %v4906_v16 = vcombine.high %v224_v9, %v228_v10 }
 0x111   :  { %2588 = vmatprep.subr.bf16.mxu1 %v5064_v35  ;;  %2875 = vmatprep.subr.bf16.mxu0 %v4884_v40  ;;  %v192_v35 = vld [vmem:[#allocation5 + $0xc8] sm:$0xff]  ;;  %v4940_v40 = vcombine.high %v257_v30, %v261_v31 }
 0x112   :  { %v4873_v52 = vcombine.low %v192_v35, %v196_v38 }
 0x114   :  { %2589 = vmatpush1.bf16.msra.mxu1 %v5063_v41  ;;  %2876 = vmatpush1.bf16.msra.mxu0 %v4883_v45  ;;  %v265_v41 = vld [vmem:[#allocation5 + $0x310] sm:$0xff]  ;;  %v4939_v45 = vcombine.low %v257_v30, %v261_v31 }
 0x115   :  { %2590 = vmatprep.subr.bf16.mxu1 %v5072_v44  ;;  %2877 = vmatprep.subr.bf16.mxu0 %v4892_v49  ;;  %v4874_v44 = vcombine.high %v192_v35, %v196_v38  ;;  %v4948_v49 = vcombine.high %v265_v41, %v269_v42  ;;  %v313_v31 = vld [vmem:[#allocation5 + $0x490] sm:$0xff]  ;;  %v248_v38 = vld [vmem:[#allocation5 + $0x288] sm:$0xff] }
 0x118   :  { %2591 = vmatpush1.bf16.msra.mxu1 %v5071_v50  ;;  %2878 = vmatpush1.bf16.msra.mxu0 %v4891_v54  ;;  %v273_v50 = vld [vmem:[#allocation5 + $0x350] sm:$0xff]  ;;  %v4947_v54 = vcombine.low %v265_v41, %v269_v42 }
 0x119   :  { %2592 = vmatprep.subr.bf16.mxu1 %v5080_v53  ;;  %2879 = vmatprep.subr.bf16.mxu0 %v4900_v58  ;;  %v4882_v53 = vcombine.high %v200_v47, %v204_v48  ;;  %v4956_v58 = vcombine.high %v273_v50, %v277_v51  ;;  %v321_v41 = vld [vmem:[#allocation5 + $0x4d0] sm:$0xff]  ;;  %v256_v47 = vld [vmem:[#allocation5 + $0x2c8] sm:$0xff] }
 0x11a   :  { %v325_v42 = vld [vmem:[#allocation5 + $0x4f0] sm:$0xff]  ;;  %v260_v48 = vld [vmem:[#allocation5 + $0x2e8] sm:$0xff] }
 0x11c   :  { %2593 = vmatpush1.bf16.msra.mxu1 %v5079_v59  ;;  %2880 = vmatpush1.bf16.msra.mxu0 %v4899_v63  ;;  %v281_v59 = vld [vmem:[#allocation5 + $0x390] sm:$0xff]  ;;  %v4955_v63 = vcombine.low %v273_v50, %v277_v51 }
 0x11d   :  { %2594 = vmatprep.subr.bf16.mxu1 %v5088_v62  ;;  %2881 = vmatprep.subr.bf16.mxu0 %v4908_v2  ;;  %v4890_v62 = vcombine.high %v208_v55, %v212_v56  ;;  %v4964_v2 = vcombine.high %v281_v59, %v285_v60  ;;  %v329_v50 = vld [vmem:[#allocation5 + $0x510] sm:$0xff]  ;;  %v264_v55 = vld [vmem:[#allocation5 + $0x308] sm:$0xff] }
 0x11e   :  { %v333_v51 = vld [vmem:[#allocation5 + $0x530] sm:$0xff]  ;;  %v268_v56 = vld [vmem:[#allocation5 + $0x328] sm:$0xff] }
 0x120   :  { %2595 = vmatpush1.bf16.msra.mxu1 %v5087_v3  ;;  %2882 = vmatpush1.bf16.msra.mxu0 %v4907_v7  ;;  %v289_v3 = vld [vmem:[#allocation5 + $0x3d0] sm:$0xff]  ;;  %v4963_v7 = vcombine.low %v281_v59, %v285_v60 }
 0x121   :  { %2596 = vmatprep.subr.bf16.mxu1 %v5096_v6  ;;  %2883 = vmatprep.subr.bf16.mxu0 %v4916_v12  ;;  %v4898_v6 = vcombine.high %v216_v0, %v220_v1  ;;  %v4972_v11 = vcombine.high %v289_v3, %v293_v4  ;;  %v297_v12 = vld [vmem:[#allocation5 + $0x410] sm:$0xff]  ;;  %v4971_v17 = vcombine.low %v289_v3, %v293_v4  ;;  %v272_v0 = vld [vmem:[#allocation5 + $0x348] sm:$0xff] }
 0x122   :  { %v337_v59 = vld [vmem:[#allocation5 + $0x550] sm:$0xff]  ;;  %v276_v1 = vld [vmem:[#allocation5 + $0x368] sm:$0xff] }
 0x123   :  { %v341_v60 = vld [vmem:[#allocation5 + $0x570] sm:$0xff] }
 0x124   :  { %2597 = vmatpush1.bf16.msra.mxu1 %v5095_v13  ;;  %2884 = vmatpush1.bf16.msra.mxu0 %v4915_v20  ;;  %v301_v13 = vld [vmem:[#allocation5 + $0x430] sm:$0xff]  ;;  %v236_v20 = vld [vmem:[#allocation5 + $0x228] sm:$0xff] }
 0x125   :  { %2695 = vmatprep.subr.bf16.mxu1 %v4850_v19  ;;  %2885 = vmatprep.subr.bf16.mxu0 %v4924_v23  ;;  %v232_v19 = vld [vmem:[#allocation5 + $0x208] sm:$0xff]  ;;  %v4980_v21 = vcombine.high %v297_v12, %v301_v13  ;;  %v309_v23 = vld [vmem:[#allocation5 + $0x470] sm:$0xff]  ;;  %v4979_v27 = vcombine.low %v297_v12, %v301_v13 }
 0x126   :  { %v4914_v26 = vcombine.high %v232_v19, %v236_v20  ;;  %v4988_v30 = vcombine.high %v305_v22, %v309_v23  ;;  %v345_v3 = vld [vmem:[#allocation5 + $0x590] sm:$0xff] }
 0x127   :  { %2599 = vmatmul.mubr.bf16.vlgmr.msra.gmra.mrb[0].mxu1 %v6155_v24  ;;  %v349_v4 = vld [vmem:[#allocation5 + $0x5b0] sm:$0xff] }
 0x128   :  { %2696 = vmatpush1.bf16.msra.mxu1 %v4849_v25  ;;  %2727 = vmatprep.mubr.bf16.mxu1 %v6131_v34  ;;  %v4905_v25 = vcombine.low %v224_v9, %v228_v10  ;;  %v280_v9 = vld [vmem:[#allocation5 + $0x388] sm:$0xff]  ;;  %v353_v12 = vld [vmem:[#allocation5 + $0x5d0] sm:$0xff] }
 0x129   :  { %2697 = vmatprep.subr.bf16.mxu1 %v4858_v28  ;;  %2886 = vmatpush1.bf16.msra.mxu0 %v4923_v29  ;;  %v240_v28 = vld [vmem:[#allocation5 + $0x248] sm:$0xff]  ;;  %v357_v13 = vld [vmem:[#allocation5 + $0x5f0] sm:$0xff] }
 0x12a   :  { %2887 = vmatprep.subr.bf16.mxu0 %v4932_v32  ;;  %v244_v29 = vld [vmem:[#allocation5 + $0x268] sm:$0xff]  ;;  %v317_v32 = vld [vmem:[#allocation5 + $0x4b0] sm:$0xff] }
 0x12b   :  { %v4922_v35 = vcombine.high %v240_v28, %v244_v29  ;;  %v284_v10 = vld [vmem:[#allocation5 + $0x3a8] sm:$0xff] }
 0x12c   :  { %2698 = vmatpush1.bf16.msra.mxu1 %v4857_v33  ;;  %v4913_v33 = vcombine.low %v232_v19, %v236_v20  ;;  %v288_v19 = vld [vmem:[#allocation5 + $0x3c8] sm:$0xff] }
 0x12d   :  { %2699 = vmatprep.subr.bf16.mxu1 %v4866_v36  ;;  %2888 = vmatpush1.bf16.msra.mxu0 %v4931_v39  ;;  %v4987_v36 = vcombine.low %v305_v22, %v309_v23  ;;  %v252_v39 = vld [vmem:[#allocation5 + $0x2a8] sm:$0xff]  ;;  %v361_v22 = vld [vmem:[#allocation5 + $0x610] sm:$0xff] }
 0x12e   :  { %2889 = vmatprep.subr.bf16.mxu0 %v4940_v40  ;;  %v4996_v40 = vcombine.high %v313_v31, %v317_v32  ;;  %v292_v20 = vld [vmem:[#allocation5 + $0x3e8] sm:$0xff]  ;;  %v365_v23 = vld [vmem:[#allocation5 + $0x630] sm:$0xff] }
 0x130   :  { %2700 = vmatpush1.bf16.msra.mxu1 %v4865_v43  ;;  %v4921_v43 = vcombine.low %v240_v28, %v244_v29  ;;  %v296_v28 = vld [vmem:[#allocation5 + $0x408] sm:$0xff] }
 0x131   :  { %2701 = vmatprep.subr.bf16.mxu1 %v4874_v44  ;;  %2890 = vmatpush1.bf16.msra.mxu0 %v4939_v45  ;;  %v4930_v44 = vcombine.high %v248_v38, %v252_v39  ;;  %v4995_v45 = vcombine.low %v313_v31, %v317_v32  ;;  %v300_v29 = vld [vmem:[#allocation5 + $0x428] sm:$0xff]  ;;  %v369_v31 = vld [vmem:[#allocation5 + $0x650] sm:$0xff] }
 0x132   :  { %2891 = vmatprep.subr.bf16.mxu0 %v4948_v49  ;;  %v5004_v49 = vcombine.high %v321_v41, %v325_v42  ;;  %v373_v32 = vld [vmem:[#allocation5 + $0x670] sm:$0xff] }
 0x134   :  { %2702 = vmatpush1.bf16.msra.mxu1 %v4873_v52  ;;  %v4929_v52 = vcombine.low %v248_v38, %v252_v39  ;;  %v304_v38 = vld [vmem:[#allocation5 + $0x448] sm:$0xff] }
 0x135   :  { %2703 = vmatprep.subr.bf16.mxu1 %v4882_v53  ;;  %2892 = vmatpush1.bf16.msra.mxu0 %v4947_v54  ;;  %v4938_v53 = vcombine.high %v256_v47, %v260_v48  ;;  %v5003_v54 = vcombine.low %v321_v41, %v325_v42  ;;  %v308_v39 = vld [vmem:[#allocation5 + $0x468] sm:$0xff]  ;;  %v377_v41 = vld [vmem:[#allocation5 + $0x690] sm:$0xff] }
 0x136   :  { %2893 = vmatprep.subr.bf16.mxu0 %v4956_v58  ;;  %v5012_v58 = vcombine.high %v329_v50, %v333_v51  ;;  %v381_v42 = vld [vmem:[#allocation5 + $0x6b0] sm:$0xff] }
 0x138   :  { %2704 = vmatpush1.bf16.msra.mxu1 %v4881_v61  ;;  %v4937_v61 = vcombine.low %v256_v47, %v260_v48  ;;  %v312_v47 = vld [vmem:[#allocation5 + $0x488] sm:$0xff] }
 0x139   :  { %2705 = vmatprep.subr.bf16.mxu1 %v4890_v62  ;;  %2894 = vmatpush1.bf16.msra.mxu0 %v4955_v63  ;;  %v4946_v62 = vcombine.high %v264_v55, %v268_v56  ;;  %v5011_v63 = vcombine.low %v329_v50, %v333_v51  ;;  %v316_v48 = vld [vmem:[#allocation5 + $0x4a8] sm:$0xff]  ;;  %v385_v50 = vld [vmem:[#allocation5 + $0x6d0] sm:$0xff] }
 0x13a   :  { %2895 = vmatprep.subr.bf16.mxu0 %v4964_v2  ;;  %v5020_v2 = vcombine.high %v337_v59, %v341_v60  ;;  %v389_v51 = vld [vmem:[#allocation5 + $0x6f0] sm:$0xff] }
 0x13c   :  { %2706 = vmatpush1.bf16.msra.mxu1 %v4889_v5  ;;  %v4945_v5 = vcombine.low %v264_v55, %v268_v56  ;;  %v320_v55 = vld [vmem:[#allocation5 + $0x4c8] sm:$0xff] }
 0x13d   :  { %2707 = vmatprep.subr.bf16.mxu1 %v4898_v6  ;;  %2896 = vmatpush1.bf16.msra.mxu0 %v4963_v7  ;;  %v4954_v6 = vcombine.high %v272_v0, %v276_v1  ;;  %v5019_v7 = vcombine.low %v337_v59, %v341_v60  ;;  %v324_v56 = vld [vmem:[#allocation5 + $0x4e8] sm:$0xff]  ;;  %v393_v59 = vld [vmem:[#allocation5 + $0x710] sm:$0xff] }
 0x13e   :  { %2897 = vmatprep.subr.bf16.mxu0 %v4972_v11  ;;  %v5028_v11 = vcombine.high %v345_v3, %v349_v4  ;;  %v397_v60 = vld [vmem:[#allocation5 + $0x730] sm:$0xff] }
 0x140   :  { %2708 = vmatpush1.bf16.msra.mxu1 %v4897_v15  ;;  %v4953_v15 = vcombine.low %v272_v0, %v276_v1  ;;  %v328_v0 = vld [vmem:[#allocation5 + $0x508] sm:$0xff] }
 0x141   :  { %2709 = vmatprep.subr.bf16.mxu1 %v4906_v16  ;;  %2898 = vmatpush1.bf16.msra.mxu0 %v4971_v17  ;;  %v4962_v16 = vcombine.high %v280_v9, %v284_v10  ;;  %v5027_v17 = vcombine.low %v345_v3, %v349_v4  ;;  %v332_v1 = vld [vmem:[#allocation5 + $0x528] sm:$0xff]  ;;  %v401_v3 = vld [vmem:[#allocation5 + $0x750] sm:$0xff] }
 0x142   :  { %2910 = vmatprep.subr.bf16.mxu0 %v4980_v21  ;;  %v5036_v21 = vcombine.high %v353_v12, %v357_v13  ;;  %v405_v4 = vld [vmem:[#allocation5 + $0x770] sm:$0xff] }
 0x144   :  { %2710 = vmatpush1.bf16.msra.mxu1 %v4905_v25  ;;  %2900 = vmatmul.mubr.bf16.vlgmr.msra.gmra.mrb[8].mxu0 %v6137_v14  ;;  %v4961_v25 = vcombine.low %v280_v9, %v284_v10  ;;  %v336_v9 = vld [vmem:[#allocation5 + $0x548] sm:$0xff] }
 0x145   :  { %2711 = vmatprep.subr.bf16.mxu1 %v4914_v26  ;;  %2911 = vmatpush1.bf16.msra.mxu0 %v4979_v27  ;;  %v4970_v26 = vcombine.high %v288_v19, %v292_v20  ;;  %v5035_v27 = vcombine.low %v353_v12, %v357_v13  ;;  %v340_v10 = vld [vmem:[#allocation5 + $0x568] sm:$0xff]  ;;  %v409_v12 = vld [vmem:[#allocation5 + $0x790] sm:$0xff] }
 0x146   :  { %2912 = vmatprep.subr.bf16.mxu0 %v4988_v30  ;;  %2942 = vmatprep.mubr.bf16.mxu0 %v6139_v18  ;;  %v5044_v30 = vcombine.high %v361_v22, %v365_v23  ;;  %v413_v13 = vld [vmem:[#allocation5 + $0x7b0] sm:$0xff] }
 0x148   :  { %2712 = vmatpush1.bf16.msra.mxu1 %v4913_v33  ;;  %v4969_v33 = vcombine.low %v288_v19, %v292_v20  ;;  %v344_v19 = vld [vmem:[#allocation5 + $0x588] sm:$0xff] }
 0x149   :  { %2713 = vmatprep.subr.bf16.mxu1 %v4922_v35  ;;  %2913 = vmatpush1.bf16.msra.mxu0 %v4987_v36  ;;  %v4978_v35 = vcombine.high %v296_v28, %v300_v29  ;;  %v5043_v36 = vcombine.low %v361_v22, %v365_v23  ;;  %v348_v20 = vld [vmem:[#allocation5 + $0x5a8] sm:$0xff]  ;;  %v417_v22 = vld [vmem:[#allocation5 + $0x7d0] sm:$0xff] }
 0x14a   :  { %2914 = vmatprep.subr.bf16.mxu0 %v4996_v40  ;;  %v5052_v40 = vcombine.high %v369_v31, %v373_v32  ;;  %v421_v23 = vld [vmem:[#allocation5 + $0x7f0] sm:$0xff] }
 0x14c   :  { %2714 = vmatpush1.bf16.msra.mxu1 %v4921_v43  ;;  %v4977_v43 = vcombine.low %v296_v28, %v300_v29  ;;  %v352_v28 = vld [vmem:[#allocation5 + $0x5c8] sm:$0xff] }
 0x14d   :  { %2715 = vmatprep.subr.bf16.mxu1 %v4930_v44  ;;  %2915 = vmatpush1.bf16.msra.mxu0 %v4995_v45  ;;  %v4986_v44 = vcombine.high %v304_v38, %v308_v39  ;;  %v5051_v45 = vcombine.low %v369_v31, %v373_v32  ;;  %v356_v29 = vld [vmem:[#allocation5 + $0x5e8] sm:$0xff]  ;;  %v425_v31 = vld [vmem:[#allocation5 + $0x810] sm:$0xff] }
 0x14e   :  { %2916 = vmatprep.subr.bf16.mxu0 %v5004_v49  ;;  %v5060_v49 = vcombine.high %v377_v41, %v381_v42  ;;  %v429_v32 = vld [vmem:[#allocation5 + $0x830] sm:$0xff] }
 0x150   :  { %2716 = vmatpush1.bf16.msra.mxu1 %v4929_v52  ;;  %v4985_v52 = vcombine.low %v304_v38, %v308_v39  ;;  %v360_v38 = vld [vmem:[#allocation5 + $0x608] sm:$0xff] }
 0x151   :  { %2717 = vmatprep.subr.bf16.mxu1 %v4938_v53  ;;  %2917 = vmatpush1.bf16.msra.mxu0 %v5003_v54  ;;  %v4994_v53 = vcombine.high %v312_v47, %v316_v48  ;;  %v5059_v54 = vcombine.low %v377_v41, %v381_v42  ;;  %v364_v39 = vld [vmem:[#allocation5 + $0x628] sm:$0xff]  ;;  %v433_v41 = vld [vmem:[#allocation5 + $0x850] sm:$0xff] }
 0x152   :  { %2918 = vmatprep.subr.bf16.mxu0 %v5012_v58  ;;  %v5068_v58 = vcombine.high %v385_v50, %v389_v51  ;;  %v437_v42 = vld [vmem:[#allocation5 + $0x870] sm:$0xff] }
 0x154   :  { %2718 = vmatpush1.bf16.msra.mxu1 %v4937_v61  ;;  %v4993_v61 = vcombine.low %v312_v47, %v316_v48  ;;  %v368_v47 = vld [vmem:[#allocation5 + $0x648] sm:$0xff] }
 0x155   :  { %2719 = vmatprep.subr.bf16.mxu1 %v4946_v62  ;;  %2919 = vmatpush1.bf16.msra.mxu0 %v5011_v63  ;;  %v5002_v62 = vcombine.high %v320_v55, %v324_v56  ;;  %v5067_v63 = vcombine.low %v385_v50, %v389_v51  ;;  %v372_v48 = vld [vmem:[#allocation5 + $0x668] sm:$0xff]  ;;  %v441_v50 = vld [vmem:[#allocation5 + $0x890] sm:$0xff] }
 0x156   :  { %2920 = vmatprep.subr.bf16.mxu0 %v5020_v2  ;;  %v5076_v2 = vcombine.high %v393_v59, %v397_v60  ;;  %v445_v51 = vld [vmem:[#allocation5 + $0x8b0] sm:$0xff] }
 0x158   :  { %2720 = vmatpush1.bf16.msra.mxu1 %v4945_v5  ;;  %v5001_v5 = vcombine.low %v320_v55, %v324_v56  ;;  %v376_v55 = vld [vmem:[#allocation5 + $0x688] sm:$0xff] }
 0x159   :  { %2721 = vmatprep.subr.bf16.mxu1 %v4954_v6  ;;  %2921 = vmatpush1.bf16.msra.mxu0 %v5019_v7  ;;  %v5010_v6 = vcombine.high %v328_v0, %v332_v1  ;;  %v5075_v7 = vcombine.low %v393_v59, %v397_v60  ;;  %v380_v56 = vld [vmem:[#allocation5 + $0x6a8] sm:$0xff]  ;;  %v449_v59 = vld [vmem:[#allocation5 + $0x8d0] sm:$0xff] }
 0x15a   :  { %2922 = vmatprep.subr.bf16.mxu0 %v5028_v11  ;;  %v5084_v11 = vcombine.high %v401_v3, %v405_v4  ;;  %v453_v60 = vld [vmem:[#allocation5 + $0x8f0] sm:$0xff] }
 0x15c   :  { %2722 = vmatpush1.bf16.msra.mxu1 %v4953_v15  ;;  %v5009_v15 = vcombine.low %v328_v0, %v332_v1  ;;  %v384_v0 = vld [vmem:[#allocation5 + $0x6c8] sm:$0xff] }
 0x15d   :  { %2723 = vmatprep.subr.bf16.mxu1 %v4962_v16  ;;  %2923 = vmatpush1.bf16.msra.mxu0 %v5027_v17  ;;  %v5018_v16 = vcombine.high %v336_v9, %v340_v10  ;;  %v5083_v17 = vcombine.low %v401_v3, %v405_v4  ;;  %v388_v1 = vld [vmem:[#allocation5 + $0x6e8] sm:$0xff]  ;;  %v457_v3 = vld [vmem:[#allocation5 + $0x910] sm:$0xff] }
 0x15e   :  { %2924 = vmatprep.subr.bf16.mxu0 %v5036_v21  ;;  %v5092_v21 = vcombine.high %v409_v12, %v413_v13  ;;  %v461_v4 = vld [vmem:[#allocation5 + $0x930] sm:$0xff] }
 0x160   :  { %2724 = vmatpush1.bf16.msra.mxu1 %v4961_v25  ;;  %v5017_v25 = vcombine.low %v336_v9, %v340_v10  ;;  %v392_v9 = vld [vmem:[#allocation5 + $0x708] sm:$0xff] }
 0x161   :  { %2725 = vmatprep.subr.bf16.mxu1 %v4970_v26  ;;  %2925 = vmatpush1.bf16.msra.mxu0 %v5035_v27  ;;  %v5026_v26 = vcombine.high %v344_v19, %v348_v20  ;;  %v5091_v27 = vcombine.low %v409_v12, %v413_v13  ;;  %v396_v10 = vld [vmem:[#allocation5 + $0x728] sm:$0xff]  ;;  %v465_v12 = vld [vmem:[#allocation5 + $0x950] sm:$0xff] }
 0x162   :  { %2926 = vmatprep.subr.bf16.mxu0 %v5044_v30  ;;  %v5100_v30 = vcombine.high %v417_v22, %v421_v23  ;;  %v469_v13 = vld [vmem:[#allocation5 + $0x970] sm:$0xff] }
 0x164   :  { %2726 = vmatpush1.bf16.msra.mxu1 %v4969_v33  ;;  %v5025_v33 = vcombine.low %v344_v19, %v348_v20  ;;  %v400_v19 = vld [vmem:[#allocation5 + $0x748] sm:$0xff] }
 0x165   :  { %2738 = vmatprep.subr.bf16.mxu1 %v4978_v35  ;;  %2927 = vmatpush1.bf16.msra.mxu0 %v5043_v36  ;;  %v5034_v35 = vcombine.high %v352_v28, %v356_v29  ;;  %v5099_v36 = vcombine.low %v417_v22, %v421_v23  ;;  %v404_v20 = vld [vmem:[#allocation5 + $0x768] sm:$0xff]  ;;  %v473_v22 = vld [vmem:[#allocation5 + $0x990] sm:$0xff] }
 0x166   :  { %2928 = vmatprep.subr.bf16.mxu0 %v5052_v40  ;;  %v5108_v40 = vcombine.high %v425_v31, %v429_v32  ;;  %v477_v23 = vld [vmem:[#allocation5 + $0x9b0] sm:$0xff] }
 0x167   :  { %2728 = vmatmul.mubr.bf16.vlgmr.msra.gmra.mrb[4].mxu1 %v6137_v14 }
 0x168   :  { %2739 = vmatpush1.bf16.msra.mxu1 %v4977_v43  ;;  %2770 = vmatprep.mubr.bf16.mxu1 %v6139_v18  ;;  %v5033_v43 = vcombine.low %v352_v28, %v356_v29  ;;  %v408_v28 = vld [vmem:[#allocation5 + $0x788] sm:$0xff] }
 0x169   :  { %2740 = vmatprep.subr.bf16.mxu1 %v4986_v44  ;;  %2929 = vmatpush1.bf16.msra.mxu0 %v5051_v45  ;;  %v5042_v44 = vcombine.high %v360_v38, %v364_v39  ;;  %v5107_v45 = vcombine.low %v425_v31, %v429_v32  ;;  %v412_v29 = vld [vmem:[#allocation5 + $0x7a8] sm:$0xff]  ;;  %v481_v31 = vld [vmem:[#allocation5 + $0x9d0] sm:$0xff] }
 0x16a   :  { %2930 = vmatprep.subr.bf16.mxu0 %v5060_v49  ;;  %v5116_v49 = vcombine.high %v433_v41, %v437_v42  ;;  %v485_v32 = vld [vmem:[#allocation5 + $0x9f0] sm:$0xff] }
 0x16c   :  { %2741 = vmatpush1.bf16.msra.mxu1 %v4985_v52  ;;  %v5041_v52 = vcombine.low %v360_v38, %v364_v39  ;;  %v416_v38 = vld [vmem:[#allocation5 + $0x7c8] sm:$0xff] }
 0x16d   :  { %2742 = vmatprep.subr.bf16.mxu1 %v4994_v53  ;;  %2931 = vmatpush1.bf16.msra.mxu0 %v5059_v54  ;;  %v5050_v53 = vcombine.high %v368_v47, %v372_v48  ;;  %v5115_v54 = vcombine.low %v433_v41, %v437_v42  ;;  %v420_v39 = vld [vmem:[#allocation5 + $0x7e8] sm:$0xff]  ;;  %v489_v41 = vld [vmem:[#allocation5 + $0xa10] sm:$0xff] }
 0x16e   :  { %2932 = vmatprep.subr.bf16.mxu0 %v5068_v58  ;;  %v5124_v58 = vcombine.high %v441_v50, %v445_v51  ;;  %v493_v42 = vld [vmem:[#allocation5 + $0xa30] sm:$0xff] }
 0x170   :  { %2743 = vmatpush1.bf16.msra.mxu1 %v4993_v61  ;;  %v5049_v61 = vcombine.low %v368_v47, %v372_v48  ;;  %v424_v47 = vld [vmem:[#allocation5 + $0x808] sm:$0xff] }
 0x171   :  { %2744 = vmatprep.subr.bf16.mxu1 %v5002_v62  ;;  %2933 = vmatpush1.bf16.msra.mxu0 %v5067_v63  ;;  %v5058_v62 = vcombine.high %v376_v55, %v380_v56  ;;  %v5123_v63 = vcombine.low %v441_v50, %v445_v51  ;;  %v428_v48 = vld [vmem:[#allocation5 + $0x828] sm:$0xff]  ;;  %v497_v50 = vld [vmem:[#allocation5 + $0xa50] sm:$0xff] }
 0x172   :  { %2934 = vmatprep.subr.bf16.mxu0 %v5076_v2  ;;  %v5132_v2 = vcombine.high %v449_v59, %v453_v60  ;;  %v501_v51 = vld [vmem:[#allocation5 + $0xa70] sm:$0xff] }
 0x174   :  { %2745 = vmatpush1.bf16.msra.mxu1 %v5001_v5  ;;  %v5057_v5 = vcombine.low %v376_v55, %v380_v56  ;;  %v432_v55 = vld [vmem:[#allocation5 + $0x848] sm:$0xff] }
 0x175   :  { %2746 = vmatprep.subr.bf16.mxu1 %v5010_v6  ;;  %2935 = vmatpush1.bf16.msra.mxu0 %v5075_v7  ;;  %v5066_v6 = vcombine.high %v384_v0, %v388_v1  ;;  %v5131_v7 = vcombine.low %v449_v59, %v453_v60  ;;  %v436_v56 = vld [vmem:[#allocation5 + $0x868] sm:$0xff]  ;;  %v505_v59 = vld [vmem:[#allocation5 + $0xa90] sm:$0xff] }
 0x176   :  { %2936 = vmatprep.subr.bf16.mxu0 %v5084_v11  ;;  %v5140_v11 = vcombine.high %v457_v3, %v461_v4  ;;  %v509_v60 = vld [vmem:[#allocation5 + $0xab0] sm:$0xff] }
 0x178   :  { %2747 = vmatpush1.bf16.msra.mxu1 %v5009_v15  ;;  %v5065_v15 = vcombine.low %v384_v0, %v388_v1  ;;  %v440_v0 = vld [vmem:[#allocation5 + $0x888] sm:$0xff] }
 0x179   :  { %2748 = vmatprep.subr.bf16.mxu1 %v5018_v16  ;;  %2937 = vmatpush1.bf16.msra.mxu0 %v5083_v17  ;;  %v5074_v16 = vcombine.high %v392_v9, %v396_v10  ;;  %v5139_v17 = vcombine.low %v457_v3, %v461_v4  ;;  %v444_v1 = vld [vmem:[#allocation5 + $0x8a8] sm:$0xff]  ;;  %v513_v3 = vld [vmem:[#allocation5 + $0xad0] sm:$0xff] }
 0x17a   :  { %2938 = vmatprep.subr.bf16.mxu0 %v5092_v21  ;;  %v5148_v21 = vcombine.high %v465_v12, %v469_v13  ;;  %v517_v4 = vld [vmem:[#allocation5 + $0xaf0] sm:$0xff] }
 0x17c   :  { %2749 = vmatpush1.bf16.msra.mxu1 %v5017_v25  ;;  %v5073_v25 = vcombine.low %v392_v9, %v396_v10  ;;  %v448_v9 = vld [vmem:[#allocation5 + $0x8c8] sm:$0xff] }
 0x17d   :  { %2750 = vmatprep.subr.bf16.mxu1 %v5026_v26  ;;  %2939 = vmatpush1.bf16.msra.mxu0 %v5091_v27  ;;  %v5082_v26 = vcombine.high %v400_v19, %v404_v20  ;;  %v5147_v27 = vcombine.low %v465_v12, %v469_v13  ;;  %v452_v10 = vld [vmem:[#allocation5 + $0x8e8] sm:$0xff]  ;;  %v521_v12 = vld [vmem:[#allocation5 + $0xb10] sm:$0xff] }
 0x17e   :  { %2940 = vmatprep.subr.bf16.mxu0 %v5100_v30  ;;  %v5156_v30 = vcombine.high %v473_v22, %v477_v23  ;;  %v525_v13 = vld [vmem:[#allocation5 + $0xb30] sm:$0xff] }
 0x180   :  { %2751 = vmatpush1.bf16.msra.mxu1 %v5025_v33  ;;  %v5081_v33 = vcombine.low %v400_v19, %v404_v20  ;;  %v456_v19 = vld [vmem:[#allocation5 + $0x908] sm:$0xff] }
 0x181   :  { %2752 = vmatprep.subr.bf16.mxu1 %v5034_v35  ;;  %2941 = vmatpush1.bf16.msra.mxu0 %v5099_v36  ;;  %v5090_v35 = vcombine.high %v408_v28, %v412_v29  ;;  %v5155_v36 = vcombine.low %v473_v22, %v477_v23  ;;  %v460_v20 = vld [vmem:[#allocation5 + $0x928] sm:$0xff]  ;;  %v529_v22 = vld [vmem:[#allocation5 + $0xb50] sm:$0xff] }
 0x182   :  { %2953 = vmatprep.subr.bf16.mxu0 %v5108_v40  ;;  %v5164_v40 = vcombine.high %v481_v31, %v485_v32  ;;  %v533_v23 = vld [vmem:[#allocation5 + $0xb70] sm:$0xff] }
 0x184   :  { %2753 = vmatpush1.bf16.msra.mxu1 %v5033_v43  ;;  %2943 = vmatmul.mubr.bf16.vlgmr.msra.gmra.mrb[8].mxu0 %v6155_v24  ;;  %v5089_v43 = vcombine.low %v408_v28, %v412_v29  ;;  %v464_v28 = vld [vmem:[#allocation5 + $0x948] sm:$0xff] }
 0x185   :  { %2754 = vmatprep.subr.bf16.mxu1 %v5042_v44  ;;  %2954 = vmatpush1.bf16.msra.mxu0 %v5107_v45  ;;  %v5098_v44 = vcombine.high %v416_v38, %v420_v39  ;;  %v5163_v45 = vcombine.low %v481_v31, %v485_v32  ;;  %v468_v29 = vld [vmem:[#allocation5 + $0x968] sm:$0xff]  ;;  %v537_v31 = vld [vmem:[#allocation5 + $0xb90] sm:$0xff] }
 0x186   :  { %2955 = vmatprep.subr.bf16.mxu0 %v5116_v49  ;;  %2985 = vmatprep.mubr.bf16.mxu0 %v6134_v8  ;;  %v5172_v49 = vcombine.high %v489_v41, %v493_v42  ;;  %v541_v32 = vld [vmem:[#allocation5 + $0xbb0] sm:$0xff] }
 0x188   :  { %2755 = vmatpush1.bf16.msra.mxu1 %v5041_v52  ;;  %v5097_v52 = vcombine.low %v416_v38, %v420_v39  ;;  %v472_v38 = vld [vmem:[#allocation5 + $0x988] sm:$0xff] }
 0x189   :  { %2756 = vmatprep.subr.bf16.mxu1 %v5050_v53  ;;  %2956 = vmatpush1.bf16.msra.mxu0 %v5115_v54  ;;  %v5106_v53 = vcombine.high %v424_v47, %v428_v48  ;;  %v5171_v54 = vcombine.low %v489_v41, %v493_v42  ;;  %v476_v39 = vld [vmem:[#allocation5 + $0x9a8] sm:$0xff]  ;;  %v545_v41 = vld [vmem:[#allocation5 + $0xbd0] sm:$0xff] }
 0x18a   :  { %2957 = vmatprep.subr.bf16.mxu0 %v5124_v58  ;;  %v5180_v58 = vcombine.high %v497_v50, %v501_v51  ;;  %v549_v42 = vld [vmem:[#allocation5 + $0xbf0] sm:$0xff] }
 0x18c   :  { %2757 = vmatpush1.bf16.msra.mxu1 %v5049_v61  ;;  %v5105_v61 = vcombine.low %v424_v47, %v428_v48  ;;  %v480_v47 = vld [vmem:[#allocation5 + $0x9c8] sm:$0xff] }
 0x18d   :  { %2758 = vmatprep.subr.bf16.mxu1 %v5058_v62  ;;  %2958 = vmatpush1.bf16.msra.mxu0 %v5123_v63  ;;  %v5114_v62 = vcombine.high %v432_v55, %v436_v56  ;;  %v5179_v63 = vcombine.low %v497_v50, %v501_v51  ;;  %v484_v48 = vld [vmem:[#allocation5 + $0x9e8] sm:$0xff]  ;;  %v553_v50 = vld [vmem:[#allocation5 + $0xc10] sm:$0xff] }
 0x18e   :  { %2959 = vmatprep.subr.bf16.mxu0 %v5132_v2  ;;  %v5188_v2 = vcombine.high %v505_v59, %v509_v60  ;;  %v557_v51 = vld [vmem:[#allocation5 + $0xc30] sm:$0xff] }
 0x190   :  { %2759 = vmatpush1.bf16.msra.mxu1 %v5057_v5  ;;  %v5113_v5 = vcombine.low %v432_v55, %v436_v56  ;;  %v488_v55 = vld [vmem:[#allocation5 + $0xa08] sm:$0xff] }
 0x191   :  { %2760 = vmatprep.subr.bf16.mxu1 %v5066_v6  ;;  %2960 = vmatpush1.bf16.msra.mxu0 %v5131_v7  ;;  %v5122_v6 = vcombine.high %v440_v0, %v444_v1  ;;  %v5187_v7 = vcombine.low %v505_v59, %v509_v60  ;;  %v492_v56 = vld [vmem:[#allocation5 + $0xa28] sm:$0xff]  ;;  %v5161_v59 = vcombine.low %v480_v47, %v484_v48 }
 0x192   :  { %2961 = vmatprep.subr.bf16.mxu0 %v5140_v11  ;;  %v5196_v11 = vcombine.high %v513_v3, %v517_v4  ;;  %v5170_v60 = vcombine.high %v488_v55, %v492_v56 }
 0x194   :  { %2761 = vmatpush1.bf16.msra.mxu1 %v5065_v15  ;;  %v5121_v15 = vcombine.low %v440_v0, %v444_v1  ;;  %v5169_v0 = vcombine.low %v488_v55, %v492_v56  ;;  %v210_v56 = vld [vmem:[#allocation5 + $0x158] sm:$0xff] }
 0x195   :  { %2762 = vmatprep.subr.bf16.mxu1 %v5074_v16  ;;  %2962 = vmatpush1.bf16.msra.mxu0 %v5139_v17  ;;  %v5130_v16 = vcombine.high %v448_v9, %v452_v10  ;;  %v5195_v17 = vcombine.low %v513_v3, %v517_v4  ;;  %v508_v3 = vld [vmem:[#allocation5 + $0xaa8] sm:$0xff] }
 0x196   :  { %2963 = vmatprep.subr.bf16.mxu0 %v5148_v21  ;;  %v5204_v21 = vcombine.high %v521_v12, %v525_v13 }
 0x198   :  { %2763 = vmatpush1.bf16.msra.mxu1 %v5073_v25  ;;  %v5129_v25 = vcombine.low %v448_v9, %v452_v10 }
 0x199   :  { %2764 = vmatprep.subr.bf16.mxu1 %v5082_v26  ;;  %2964 = vmatpush1.bf16.msra.mxu0 %v5147_v27  ;;  %v5138_v26 = vcombine.high %v456_v19, %v460_v20  ;;  %v5203_v27 = vcombine.low %v521_v12, %v525_v13  ;;  %v524_v12 = vld [vmem:[#allocation5 + $0xb28] sm:$0xff] }
 0x19a   :  { %2965 = vmatprep.subr.bf16.mxu0 %v5156_v30  ;;  %v5212_v30 = vcombine.high %v529_v22, %v533_v23 }
 0x19c   :  { %2765 = vmatpush1.bf16.msra.mxu1 %v5081_v33  ;;  %v5137_v33 = vcombine.low %v456_v19, %v460_v20  ;;  %v528_v20 = vld [vmem:[#allocation5 + $0xb48] sm:$0xff] }
 0x19d   :  { %2766 = vmatprep.subr.bf16.mxu1 %v5090_v35  ;;  %2966 = vmatpush1.bf16.msra.mxu0 %v5155_v36  ;;  %v5146_v35 = vcombine.high %v464_v28, %v468_v29  ;;  %v5211_v36 = vcombine.low %v529_v22, %v533_v23 }
 0x19e   :  { %2967 = vmatprep.subr.bf16.mxu0 %v5164_v40  ;;  %v5220_v40 = vcombine.high %v537_v31, %v541_v32 }
 0x1a0   :  { %2767 = vmatpush1.bf16.msra.mxu1 %v5089_v43  ;;  %v5145_v43 = vcombine.low %v464_v28, %v468_v29 }
 0x1a1   :  { %2768 = vmatprep.subr.bf16.mxu1 %v5098_v44  ;;  %2968 = vmatpush1.bf16.msra.mxu0 %v5163_v45  ;;  %v5154_v44 = vcombine.high %v472_v38, %v476_v39  ;;  %v5219_v45 = vcombine.low %v537_v31, %v541_v32  ;;  %v548_v31 = vld [vmem:[#allocation5 + $0xbe8] sm:$0xff] }
 0x1a2   :  { %2969 = vmatprep.subr.bf16.mxu0 %v5172_v49  ;;  %v5228_v49 = vcombine.high %v545_v41, %v549_v42 }
 0x1a4   :  { %2769 = vmatpush1.bf16.msra.mxu1 %v5097_v52  ;;  %v5153_v52 = vcombine.low %v472_v38, %v476_v39  ;;  %v178_v39 = vld [vmem:[#allocation5 + $0x58] sm:$0xff] }
 0x1a5   :  { %2781 = vmatprep.subr.bf16.mxu1 %v5106_v53  ;;  %2970 = vmatpush1.bf16.msra.mxu0 %v5171_v54  ;;  %v5162_v53 = vcombine.high %v480_v47, %v484_v48  ;;  %v5227_v54 = vcombine.low %v545_v41, %v549_v42  ;;  %v194_v48 = vld [vmem:[#allocation5 + $0xd8] sm:$0xff] }
 0x1a6   :  { %2971 = vmatprep.subr.bf16.mxu0 %v5180_v58  ;;  %v5236_v58 = vcombine.high %v553_v50, %v557_v51 }
 0x1a7   :  { %2771 = vmatmul.mubr.bf16.vlgmr.msra.gmra.mrb[4].mxu1 %v6155_v24 }
 0x1a8   :  { %2782 = vmatpush1.bf16.msra.mxu1 %v5105_v61  ;;  %2813 = vmatprep.mubr.bf16.mxu1 %v6134_v8  ;;  %v5235_v61 = vcombine.low %v553_v50, %v557_v51 }
 0x1a9   :  { %2783 = vmatprep.subr.bf16.mxu1 %v5114_v62  ;;  %2972 = vmatpush1.bf16.msra.mxu0 %v5179_v63  ;;  %v496_v62 = vld [vmem:[#allocation5 + $0xa48] sm:$0xff] }
 0x1aa   :  { %2973 = vmatprep.subr.bf16.mxu0 %v5188_v2  ;;  %v500_v63 = vld [vmem:[#allocation5 + $0xa68] sm:$0xff] }
 0x1ab   :  { %v5178_v1 = vcombine.high %v496_v62, %v500_v63  ;;  %v504_v2 = vld [vmem:[#allocation5 + $0xa88] sm:$0xff]  ;;  %v5177_v4 = vcombine.low %v496_v62, %v500_v63 }
 0x1ac   :  { %2784 = vmatpush1.bf16.msra.mxu1 %v5113_v5  ;;  %v5186_v5 = vcombine.high %v504_v2, %v508_v3  ;;  %v5185_v9 = vcombine.low %v504_v2, %v508_v3  ;;  %v230_v2 = vld [vmem:[#allocation5 + $0x1f8] sm:$0xff] }
 0x1ad   :  { %2785 = vmatprep.subr.bf16.mxu1 %v5122_v6  ;;  %2974 = vmatpush1.bf16.msra.mxu0 %v5187_v7  ;;  %v512_v6 = vld [vmem:[#allocation5 + $0xac8] sm:$0xff] }
 0x1ae   :  { %2975 = vmatprep.subr.bf16.mxu0 %v5196_v11  ;;  %v516_v7 = vld [vmem:[#allocation5 + $0xae8] sm:$0xff] }
 0x1af   :  { %v5194_v10 = vcombine.high %v512_v6, %v516_v7  ;;  %v520_v11 = vld [vmem:[#allocation5 + $0xb08] sm:$0xff] }
 0x1b0   :  { %2786 = vmatpush1.bf16.msra.mxu1 %v5121_v15  ;;  %v5193_v15 = vcombine.low %v512_v6, %v516_v7  ;;  %v5201_v23 = vcombine.low %v520_v11, %v524_v12 }
 0x1b1   :  { %2787 = vmatprep.subr.bf16.mxu1 %v5130_v16  ;;  %2976 = vmatpush1.bf16.msra.mxu0 %v5195_v17  ;;  %v5202_v17 = vcombine.high %v520_v11, %v524_v12 }
 0x1b2   :  { %2977 = vmatprep.subr.bf16.mxu0 %v5204_v21  ;;  %v532_v21 = vld [vmem:[#allocation5 + $0xb68] sm:$0xff] }
 0x1b3   :  { %v5209_v28 = vcombine.low %v528_v20, %v532_v21 }
 0x1b4   :  { %2788 = vmatpush1.bf16.msra.mxu1 %v5129_v25  ;;  %v5210_v25 = vcombine.high %v528_v20, %v532_v21 }
 0x1b5   :  { %2789 = vmatprep.subr.bf16.mxu1 %v5138_v26  ;;  %2978 = vmatpush1.bf16.msra.mxu0 %v5203_v27  ;;  %v536_v26 = vld [vmem:[#allocation5 + $0xb88] sm:$0xff] }
 0x1b6   :  { %2979 = vmatprep.subr.bf16.mxu0 %v5212_v30  ;;  %v540_v27 = vld [vmem:[#allocation5 + $0xba8] sm:$0xff] }
 0x1b7   :  { %v5218_v29 = vcombine.high %v536_v26, %v540_v27  ;;  %v544_v30 = vld [vmem:[#allocation5 + $0xbc8] sm:$0xff]  ;;  %v5217_v32 = vcombine.low %v536_v26, %v540_v27  ;;  %v242_v26 = vld [vmem:[#allocation5 + $0x258] sm:$0xff] }
 0x1b8   :  { %2790 = vmatpush1.bf16.msra.mxu1 %v5137_v33  ;;  %v170_v33 = vld [vmem:[#allocation5 + $0x18] sm:$0xff] }
 0x1b9   :  { %2791 = vmatprep.subr.bf16.mxu1 %v5146_v35  ;;  %2980 = vmatpush1.bf16.msra.mxu0 %v5211_v36  ;;  %v174_v35 = vld [vmem:[#allocation5 + $0x38] sm:$0xff]  ;;  %v5225_v36 = vcombine.low %v544_v30, %v548_v31 }
 0x1ba   :  { %2981 = vmatprep.subr.bf16.mxu0 %v5220_v40  ;;  %v4854_v38 = vcombine.high %v170_v33, %v174_v35  ;;  %v182_v40 = vld [vmem:[#allocation5 + $0x78] sm:$0xff]  ;;  %v4853_v41 = vcombine.low %v170_v33, %v174_v35 }
 0x1bb   :  { %v4862_v42 = vcombine.high %v178_v39, %v182_v40  ;;  %v246_v27 = vld [vmem:[#allocation5 + $0x278] sm:$0xff] }
 0x1bc   :  { %2792 = vmatpush1.bf16.msra.mxu1 %v5145_v43  ;;  %v186_v43 = vld [vmem:[#allocation5 + $0x98] sm:$0xff] }
 0x1bd   :  { %2793 = vmatprep.subr.bf16.mxu1 %v5154_v44  ;;  %2982 = vmatpush1.bf16.msra.mxu0 %v5219_v45  ;;  %v190_v44 = vld [vmem:[#allocation5 + $0xb8] sm:$0xff]  ;;  %v4861_v45 = vcombine.low %v178_v39, %v182_v40 }
 0x1be   :  { %2983 = vmatprep.subr.bf16.mxu0 %v5228_v49  ;;  %v4870_v47 = vcombine.high %v186_v43, %v190_v44  ;;  %v198_v49 = vld [vmem:[#allocation5 + $0xf8] sm:$0xff]  ;;  %v4869_v50 = vcombine.low %v186_v43, %v190_v44 }
 0x1bf   :  { %v4878_v51 = vcombine.high %v194_v48, %v198_v49 }
 0x1c0   :  { %2794 = vmatpush1.bf16.msra.mxu1 %v5153_v52  ;;  %v202_v52 = vld [vmem:[#allocation5 + $0x118] sm:$0xff] }
 0x1c1   :  { %2795 = vmatprep.subr.bf16.mxu1 %v5162_v53  ;;  %2984 = vmatpush1.bf16.msra.mxu0 %v5227_v54  ;;  %v206_v53 = vld [vmem:[#allocation5 + $0x138] sm:$0xff]  ;;  %v4877_v54 = vcombine.low %v194_v48, %v198_v49 }
 0x1c2   :  { %2996 = vmatprep.subr.bf16.mxu0 %v5236_v58  ;;  %v4886_v55 = vcombine.high %v202_v52, %v206_v53  ;;  %v214_v58 = vld [vmem:[#allocation5 + $0x178] sm:$0xff] }
 0x1c3   :  { %v4893_v62 = vcombine.low %v210_v56, %v214_v58 }
 0x1c4   :  { %2796 = vmatpush1.bf16.msra.mxu1 %v5161_v59  ;;  %2986 = vmatmul.mubr.bf16.vlgmr.msra.gmra.mrb[8].mxu0 %v6143_v37  ;;  %v4885_v59 = vcombine.low %v202_v52, %v206_v53 }
 0x1c5   :  { %2797 = vmatprep.subr.bf16.mxu1 %v5170_v60  ;;  %2997 = vmatpush1.bf16.msra.mxu0 %v5235_v61  ;;  %v218_v60 = vld [vmem:[#allocation5 + $0x198] sm:$0xff] }
 0x1c6   :  { %3028 = vmatprep.mubr.bf16.mxu0 %v5967_v46  ;;  %v222_v61 = vld [vmem:[#allocation5 + $0x1b8] sm:$0xff] }
 0x1c7   :  { %v4902_v63 = vcombine.high %v218_v60, %v222_v61  ;;  %v4901_v7 = vcombine.low %v218_v60, %v222_v61 }
 0x1c8   :  { %2798 = vmatpush1.bf16.msra.mxu1 %v5169_v0 }
 0x1c9   :  { %2799 = vmatprep.subr.bf16.mxu1 %v5178_v1  ;;  %v226_v1 = vld [vmem:[#allocation5 + $0x1d8] sm:$0xff] }
 0x1ca   :  { %v4910_v11 = vcombine.high %v226_v1, %v230_v2 }
 0x1cc   :  { %2800 = vmatpush1.bf16.msra.mxu1 %v5177_v4 }
 0x1cd   :  { %2801 = vmatprep.subr.bf16.mxu1 %v5186_v5 }
 0x1ce   :  { %v6169_v13 = vpop.f32.mrb[0].mxu0 }
 0x1cf   :  { %v6173_v16 = vpop.f32.mrb[1].mxu0 }
 0x1d0   :  { %2802 = vmatpush1.bf16.msra.mxu1 %v5185_v9  ;;  %5241 = vmatmul.mubr.msk.bf16.vlgmr.msra.gmra.mrb[8].mxu0 %vm2519_vm0, %v6147_v57  ;;  %v6175_v19 = vpop.f32.mrb[2].mxu0 }
 0x1d1   :  { %2803 = vmatprep.subr.bf16.mxu1 %v5194_v10  ;;  %3200 = vmatprep.mubr.bf16.mxu0 %v5967_v46  ;;  %v6178_v22 = vpop.f32.mrb[3].mxu0  ;;  %v5226_v46 = vcombine.high %v544_v30, %v548_v31  ;;  %v4926_v31 = vcombine.high %v242_v26, %v246_v27 }
 0x1d4   :  { %2804 = vmatpush1.bf16.msra.mxu1 %v5193_v15  ;;  %v234_v15 = vld [vmem:[#allocation5 + $0x218] sm:$0xff] }
 0x1d5   :  { %2805 = vmatprep.subr.bf16.mxu1 %v5202_v17  ;;  %v238_v17 = vld [vmem:[#allocation5 + $0x238] sm:$0xff] }
 0x1d8   :  { %2806 = vmatpush1.bf16.msra.mxu1 %v5201_v23  ;;  %v4909_v23 = vcombine.low %v226_v1, %v230_v2 }
 0x1d9   :  { %2807 = vmatprep.subr.bf16.mxu1 %v5210_v25  ;;  %v4918_v25 = vcombine.high %v234_v15, %v238_v17 }
 0x1dc   :  { %2808 = vmatpush1.bf16.msra.mxu1 %v5209_v28 }
 0x1dd   :  { %2809 = vmatprep.subr.bf16.mxu1 %v5218_v29 }
 0x1e0   :  { %2810 = vmatpush1.bf16.msra.mxu1 %v5217_v32  ;;  %v250_v32 = vld [vmem:[#allocation5 + $0x298] sm:$0xff] }
 0x1e1   :  { %2811 = vmatprep.subr.bf16.mxu1 %v5226_v46  ;;  %v254_v46 = vld [vmem:[#allocation5 + $0x2b8] sm:$0xff] }
 0x1e2   :  { %v4934_v39 = vcombine.high %v250_v32, %v254_v46 }
 0x1e4   :  { %2812 = vmatpush1.bf16.msra.mxu1 %v5225_v36  ;;  %v4925_v36 = vcombine.low %v242_v26, %v246_v27  ;;  %v558_v26 = vld [vmem:[#allocation5 + $0xc38] sm:$0xff] }
 0x1e5   :  { %3039 = vmatprep.subr.bf16.mxu1 %v4854_v38 }
 0x1e7   :  { %2814 = vmatmul.mubr.bf16.vlgmr.msra.gmra.mrb[4].mxu1 %v6143_v37 }
 0x1e8   :  { %3040 = vmatpush1.bf16.msra.mxu1 %v4853_v41  ;;  %3071 = vmatprep.mubr.bf16.mxu1 %v6131_v34  ;;  %v4894_v34 = vcombine.high %v210_v56, %v214_v58  ;;  %v258_v41 = vld [vmem:[#allocation5 + $0x2d8] sm:$0xff] }
 0x1e9   :  { %3041 = vmatprep.subr.bf16.mxu1 %v4862_v42  ;;  %v262_v42 = vld [vmem:[#allocation5 + $0x2f8] sm:$0xff] }
 0x1ea   :  { %v4942_v48 = vcombine.high %v258_v41, %v262_v42  ;;  %v4941_v56 = vcombine.low %v258_v41, %v262_v42  ;;  %v306_v41 = vld [vmem:[#allocation5 + $0x458] sm:$0xff] }
 0x1eb   :  { %v310_v42 = vld [vmem:[#allocation5 + $0x478] sm:$0xff] }
 0x1ec   :  { %3042 = vmatpush1.bf16.msra.mxu1 %v4861_v45  ;;  %v4933_v45 = vcombine.low %v250_v32, %v254_v46 }
 0x1ed   :  { %3043 = vmatprep.subr.bf16.mxu1 %v4870_v47 }
 0x1f0   :  { %3044 = vmatpush1.bf16.msra.mxu1 %v4869_v50  ;;  %v266_v50 = vld [vmem:[#allocation5 + $0x318] sm:$0xff] }
 0x1f1   :  { %3045 = vmatprep.subr.bf16.mxu1 %v4878_v51  ;;  %v270_v51 = vld [vmem:[#allocation5 + $0x338] sm:$0xff] }
 0x1f2   :  { %v4949_v2 = vcombine.low %v266_v50, %v270_v51 }
 0x1f4   :  { %3046 = vmatpush1.bf16.msra.mxu1 %v4877_v54 }
 0x1f5   :  { %3047 = vmatprep.subr.bf16.mxu1 %v4886_v55 }
 0x1f8   :  { %3048 = vmatpush1.bf16.msra.mxu1 %v4885_v59 }
 0x1f9   :  { %3049 = vmatprep.subr.bf16.mxu1 %v4894_v34  ;;  %v4950_v34 = vcombine.high %v266_v50, %v270_v51  ;;  %v314_v50 = vld [vmem:[#allocation5 + $0x498] sm:$0xff] }
 0x1fa   :  { %v2600_v0 = vpop.f32.mrb[0].mxu1  ;;  %v318_v51 = vld [vmem:[#allocation5 + $0x4b8] sm:$0xff] }
 0x1fb   :  { %v5410_v3 = vadd.f32 %v6169_v13, %v2600_v0  ;;  %v2602_v4 = vpop.f32.mrb[1].mxu1 }
 0x1fc   :  { %v5411_v5 = vadd.f32 %v6173_v16, %v2602_v4  ;;  %v2604_v6 = vpop.f32.mrb[2].mxu1  ;;  %3050 = vmatpush1.bf16.msra.mxu1 %v4893_v62  ;;  %v274_v62 = vld [vmem:[#allocation5 + $0x358] sm:$0xff] }
 0x1fd   :  { %v5412_v9 = vadd.f32 %v6175_v19, %v2604_v6  ;;  %v2606_v10 = vpop.f32.mrb[3].mxu1  ;;  %3051 = vmatprep.subr.bf16.mxu1 %v4902_v63  ;;  %v4917_v19 = vcombine.low %v234_v15, %v238_v17  ;;  %v278_v63 = vld [vmem:[#allocation5 + $0x378] sm:$0xff] }
 0x1fe   :  { %v5413_v12 = vadd.f32 %v6178_v22, %v2606_v10  ;;  %v4958_v4 = vcombine.high %v274_v62, %v278_v63  ;;  %v282_v6 = vld [vmem:[#allocation5 + $0x398] sm:$0xff] }
 0x1ff   :  { %v3213_v20 = vadd.f32 %v5412_v9, %v5410_v3 }
 0x200   :  { %v3220_v21 = vadd.f32 %v5413_v12, %v5411_v5  ;;  %3052 = vmatpush1.bf16.msra.mxu1 %v4901_v7  ;;  %v286_v7 = vld [vmem:[#allocation5 + $0x3b8] sm:$0xff] }
 0x201   :  { %v3214_v13 = vrot.slane %v3213_v20, 4  ;;  %3053 = vmatprep.subr.bf16.mxu1 %v4910_v11  ;;  %v4957_v11 = vcombine.low %v274_v62, %v278_v63  ;;  %v4966_v15 = vcombine.high %v282_v6, %v286_v7  ;;  %v334_v62 = vld [vmem:[#allocation5 + $0x538] sm:$0xff] }
 0x202   :  { %v3221_v16 = vrot.slane %v3220_v21, 4 }
 0x203   :  { %v3215_v28 = vadd.f32 %v3214_v13, %v3213_v20  ;;  %v290_v20 = vld [vmem:[#allocation5 + $0x3d8] sm:$0xff] }
 0x204   :  { %v3222_v29 = vadd.f32 %v3221_v16, %v3220_v21  ;;  %3054 = vmatpush1.bf16.msra.mxu1 %v4909_v23  ;;  %v294_v21 = vld [vmem:[#allocation5 + $0x3f8] sm:$0xff] }
 0x205   :  { %v3216_v30 = vrot.slane %v3215_v28, 2  ;;  %3055 = vmatprep.subr.bf16.mxu1 %v4918_v25  ;;  %v4965_v25 = vcombine.low %v282_v6, %v286_v7  ;;  %v554_v16 = vld [vmem:[#allocation5 + $0xc18] sm:$0xff] }
 0x206   :  { %v3223_v22 = vrot.slane %v3222_v29, 2  ;;  %v346_v6 = vld [vmem:[#allocation5 + $0x598] sm:$0xff] }
 0x207   :  { %v3217_v33 = vadd.f32 %v3216_v30, %v3215_v28  ;;  %v4974_v28 = vcombine.high %v290_v20, %v294_v21  ;;  %v350_v7 = vld [vmem:[#allocation5 + $0x5b8] sm:$0xff] }
 0x208   :  { %v3224_v35 = vadd.f32 %v3223_v22, %v3222_v29  ;;  %3056 = vmatpush1.bf16.msra.mxu1 %v4917_v19  ;;  %v5237_v29 = vcombine.low %v554_v16, %v558_v26  ;;  %v5238_v19 = vcombine.high %v554_v16, %v558_v26  ;;  %v302_v22 = vld [vmem:[#allocation5 + $0x438] sm:$0xff] }
 0x209   :  { %v3218_v38 = vrot.slane %v3217_v33, 1  ;;  %3057 = vmatprep.subr.bf16.mxu1 %v4926_v31  ;;  %v298_v31 = vld [vmem:[#allocation5 + $0x418] sm:$0xff] }
 0x20a   :  { %v3225_v40 = vrot.slane %v3224_v35, 1  ;;  %3168 = vmatprep.subr.bf16.mxu0 %v5238_v19  ;;  %v374_v16 = vld [vmem:[#allocation5 + $0x678] sm:$0xff] }
 0x20b   :  { %v3219_v43 = vadd.f32 %v3218_v38, %v3217_v33  ;;  %v4973_v33 = vcombine.low %v290_v20, %v294_v21  ;;  %3169 = vmatpush1.bf16.msra.mxu0 %v5237_v29  ;;  %v4982_v38 = vcombine.high %v298_v31, %v302_v22  ;;  %v362_v20 = vld [vmem:[#allocation5 + $0x618] sm:$0xff] }
 0x20c   :  { %v3226_v44 = vadd.f32 %v3225_v40, %v3224_v35  ;;  %3058 = vmatpush1.bf16.msra.mxu1 %v4925_v36  ;;  %v6202_v35 = vpop.f32.mrb[4].mxu0  ;;  %v366_v21 = vld [vmem:[#allocation5 + $0x638] sm:$0xff] }
 0x20d   :  { %v3270_v47 = vmul.f32 0.0625, %v3219_v43  ;;  %3059 = vmatprep.subr.bf16.mxu1 %v4934_v39  ;;  %v6204_v39 = vpop.f32.mrb[5].mxu0  ;;  %v5045_v26 = vcombine.low %v362_v20, %v366_v21  ;;  %v382_v29 = vld [vmem:[#allocation5 + $0x6b8] sm:$0xff] }
 0x20e   :  { %v3271_v49 = vmul.f32 0.0625, %v3226_v44  ;;  %5242 = vmatmul.mubr.msk.bf16.vlgmr.msra.gmra.mrb[12].mxu0 %vm2519_vm0, %v6147_v57  ;;  %v4998_v57 = vcombine.high %v314_v50, %v318_v51 }
 0x20f   :  { %v6186_v52 = vsub.f32 %v5410_v3, %v3270_v47  ;;  %v6188_v53 = vsub.f32 %v5412_v9, %v3270_v47  ;;  %v6208_v47 = vpop.f32.mrb[6].mxu0 }
 0x210   :  { %v6190_v54 = vsub.f32 %v5411_v5, %v3271_v49  ;;  %v6192_v55 = vsub.f32 %v5413_v12, %v3271_v49  ;;  %3060 = vmatpush1.bf16.msra.mxu1 %v4933_v45  ;;  %v4981_v45 = vcombine.low %v298_v31, %v302_v22  ;;  %v6210_v49 = vpop.f32.mrb[7].mxu0  ;;  %v386_v31 = vld [vmem:[#allocation5 + $0x6d8] sm:$0xff] }
 0x211   :  { %v3294_v58 = vmul.f32 %v6186_v52, %v6186_v52  ;;  %v3302_v59 = vmul.f32 %v6188_v53, %v6188_v53  ;;  %3061 = vmatprep.subr.bf16.mxu1 %v4942_v48  ;;  %v4990_v48 = vcombine.high %v306_v41, %v310_v42  ;;  %v390_v22 = vld [vmem:[#allocation5 + $0x6f8] sm:$0xff] }
 0x212   :  { %v3295_v60 = vmul.f32 %v6190_v54, %v6190_v54  ;;  %v3303_v61 = vmul.f32 %v6192_v55, %v6192_v55 }
 0x213   :  { %v3310_v0 = vadd.f32 %v3302_v59, %v3294_v58  ;;  %v322_v58 = vld [vmem:[#allocation5 + $0x4d8] sm:$0xff] }
 0x214   :  { %v3317_v1 = vadd.f32 %v3303_v61, %v3295_v60  ;;  %3062 = vmatpush1.bf16.msra.mxu1 %v4941_v56  ;;  %v4989_v56 = vcombine.low %v306_v41, %v310_v42  ;;  %v326_v59 = vld [vmem:[#allocation5 + $0x4f8] sm:$0xff] }
 0x215   :  { %v3311_v3 = vrot.slane %v3310_v0, 4  ;;  %3063 = vmatprep.subr.bf16.mxu1 %v4950_v34  ;;  %v4997_v34 = vcombine.low %v314_v50, %v318_v51  ;;  %v5006_v60 = vcombine.high %v322_v58, %v326_v59  ;;  %v330_v61 = vld [vmem:[#allocation5 + $0x518] sm:$0xff] }
 0x216   :  { %v3318_v5 = vrot.slane %v3317_v1, 4  ;;  %v402_v41 = vld [vmem:[#allocation5 + $0x758] sm:$0xff] }
 0x217   :  { %v3312_v9 = vadd.f32 %v3311_v3, %v3310_v0  ;;  %v342_v3 = vld [vmem:[#allocation5 + $0x578] sm:$0xff] }
 0x218   :  { %v3319_v10 = vadd.f32 %v3318_v5, %v3317_v1  ;;  %3064 = vmatpush1.bf16.msra.mxu1 %v4949_v2  ;;  %v338_v2 = vld [vmem:[#allocation5 + $0x558] sm:$0xff] }
 0x219   :  { %v3313_v12 = vrot.slane %v3312_v9, 2  ;;  %3065 = vmatprep.subr.bf16.mxu1 %v4958_v4  ;;  %v5013_v4 = vcombine.low %v330_v61, %v334_v62  ;;  %v5022_v5 = vcombine.high %v338_v2, %v342_v3  ;;  %v406_v42 = vld [vmem:[#allocation5 + $0x778] sm:$0xff] }
 0x21a   :  { %v3320_v17 = vrot.slane %v3319_v10, 2  ;;  %v5085_v50 = vcombine.low %v402_v41, %v406_v42 }
 0x21b   :  { %v3314_v23 = vadd.f32 %v3313_v12, %v3312_v9  ;;  %v5021_v9 = vcombine.low %v338_v2, %v342_v3  ;;  %v358_v12 = vld [vmem:[#allocation5 + $0x5f8] sm:$0xff] }
 0x21c   :  { %v3321_v13 = vadd.f32 %v3320_v17, %v3319_v10  ;;  %3066 = vmatpush1.bf16.msra.mxu1 %v4957_v11  ;;  %v5030_v10 = vcombine.high %v346_v6, %v350_v7  ;;  %v354_v11 = vld [vmem:[#allocation5 + $0x5d8] sm:$0xff] }
 0x21d   :  { %v3315_v27 = vrot.slane %v3314_v23, 1  ;;  %3067 = vmatprep.subr.bf16.mxu1 %v4966_v15  ;;  %v5029_v15 = vcombine.low %v346_v6, %v350_v7  ;;  %v5038_v17 = vcombine.high %v354_v11, %v358_v12 }
 0x21e   :  { %v3322_v30 = vrot.slane %v3321_v13, 1 }
 0x21f   :  { %v3316_v32 = vadd.f32 %v3315_v27, %v3314_v23  ;;  %v5037_v23 = vcombine.low %v354_v11, %v358_v12 }
 0x220   :  { %v3323_v46 = vadd.f32 %v3322_v30, %v3321_v13  ;;  %3068 = vmatpush1.bf16.msra.mxu1 %v4965_v25  ;;  %v5046_v13 = vcombine.high %v362_v20, %v366_v21  ;;  %v370_v25 = vld [vmem:[#allocation5 + $0x658] sm:$0xff] }
 0x221   :  { %v3366_v36 = vmul.f32 0.0625, %v3316_v32  ;;  %3069 = vmatprep.subr.bf16.mxu1 %v4974_v28  ;;  %v5054_v27 = vcombine.high %v370_v25, %v374_v16  ;;  %v378_v28 = vld [vmem:[#allocation5 + $0x698] sm:$0xff]  ;;  %v5053_v19 = vcombine.low %v370_v25, %v374_v16 }
 0x222   :  { %v3367_v40 = vmul.f32 0.0625, %v3323_v46  ;;  %v5062_v30 = vcombine.high %v378_v28, %v382_v29  ;;  %v5061_v32 = vcombine.low %v378_v28, %v382_v29  ;;  %v5070_v46 = vcombine.high %v386_v31, %v390_v22  ;;  %v474_v25 = vld [vmem:[#allocation5 + $0x998] sm:$0xff] }
 0x223   :  { %v3374_v43 = vadd.f32 1e-05, %v3366_v36  ;;  %v398_v36 = vld [vmem:[#allocation5 + $0x738] sm:$0xff] }
 0x224   :  { %v3375_v44 = vadd.f32 1e-05, %v3367_v40  ;;  %3070 = vmatpush1.bf16.msra.mxu1 %v4973_v33  ;;  %v394_v33 = vld [vmem:[#allocation5 + $0x718] sm:$0xff] }
 0x225   :  { %5698 = vrsqrt.f32 %v3374_v43  ;;  %3082 = vmatprep.subr.bf16.mxu1 %v4982_v38  ;;  %v5069_v38 = vcombine.low %v386_v31, %v390_v22  ;;  %v5078_v40 = vcombine.high %v394_v33, %v398_v36  ;;  %v5077_v43 = vcombine.low %v394_v33, %v398_v36  ;;  %v478_v16 = vld [vmem:[#allocation5 + $0x9b8] sm:$0xff] }
 0x226   :  { %5700 = vrsqrt.f32 %v3375_v44  ;;  %v5086_v44 = vcombine.high %v402_v41, %v406_v42  ;;  %v482_v28 = vld [vmem:[#allocation5 + $0x9d8] sm:$0xff] }
 0x227   :  { %3072 = vmatmul.mubr.bf16.vlgmr.msra.gmra.mrb[8].mxu1 %v6137_v14  ;;  %v5005_v14 = vcombine.low %v322_v58, %v326_v59  ;;  %v486_v29 = vld [vmem:[#allocation5 + $0x9f8] sm:$0xff] }
 0x228   :  { %3083 = vmatpush1.bf16.msra.mxu1 %v4981_v45  ;;  %3114 = vmatprep.mubr.bf16.mxu1 %v6139_v18  ;;  %v5014_v18 = vcombine.high %v330_v61, %v334_v62  ;;  %v410_v45 = vld [vmem:[#allocation5 + $0x798] sm:$0xff] }
 0x229   :  { %3084 = vmatprep.subr.bf16.mxu1 %v4990_v48  ;;  %v414_v48 = vld [vmem:[#allocation5 + $0x7b8] sm:$0xff] }
 0x22a   :  { %v5094_v51 = vcombine.high %v410_v45, %v414_v48  ;;  %v5093_v58 = vcombine.low %v410_v45, %v414_v48  ;;  %v490_v31 = vld [vmem:[#allocation5 + $0xa18] sm:$0xff] }
 0x22b   :  { %v494_v22 = vld [vmem:[#allocation5 + $0xa38] sm:$0xff] }
 0x22c   :  { %3085 = vmatpush1.bf16.msra.mxu1 %v4989_v56  ;;  %v418_v56 = vld [vmem:[#allocation5 + $0x7d8] sm:$0xff] }
 0x22d   :  { %3086 = vmatprep.subr.bf16.mxu1 %v4998_v57  ;;  %v422_v57 = vld [vmem:[#allocation5 + $0x7f8] sm:$0xff] }
 0x22e   :  { %v5102_v59 = vcombine.high %v418_v56, %v422_v57  ;;  %v5101_v61 = vcombine.low %v418_v56, %v422_v57  ;;  %v498_v33 = vld [vmem:[#allocation5 + $0xa58] sm:$0xff] }
 0x22f   :  { %v6214_v63 = vpop.eup %5698  ;;  %v502_v36 = vld [vmem:[#allocation5 + $0xa78] sm:$0xff] }
 0x230   :  { %v6216_v0 = vpop.eup %5700  ;;  %3087 = vmatpush1.bf16.msra.mxu1 %v4997_v34  ;;  %v426_v34 = vld [vmem:[#allocation5 + $0x818] sm:$0xff] }
 0x231   :  { %v3398_v1 = vcombine.low %v6214_v63, %v6216_v0  ;;  %3088 = vmatprep.subr.bf16.mxu1 %v5006_v60  ;;  %v430_v60 = vld [vmem:[#allocation5 + $0x838] sm:$0xff]  ;;  %v5495_v63 = vld [vmem:[#allocation10 + $0x14] ss:$8 sps:$4 sm:$0xff]   ;;  %v5493_v0 = vld [vmem:[#allocation10 + $0x10] ss:$8 sps:$4 sm:$0xff]  }
 0x232   :  { %v5110_v62 = vcombine.high %v426_v34, %v430_v60  ;;  %v5109_v2 = vcombine.low %v426_v34, %v430_v60  ;;  %v506_v41 = vld [vmem:[#allocation5 + $0xa98] sm:$0xff] }
 0x233   :  { %v510_v42 = vld [vmem:[#allocation5 + $0xab8] sm:$0xff] }
 0x234   :  { %3089 = vmatpush1.bf16.msra.mxu1 %v5005_v14  ;;  %v434_v14 = vld [vmem:[#allocation5 + $0x858] sm:$0xff] }
 0x235   :  { %3090 = vmatprep.subr.bf16.mxu1 %v5014_v18  ;;  %v438_v18 = vld [vmem:[#allocation5 + $0x878] sm:$0xff] }
 0x236   :  { %v5118_v3 = vcombine.high %v434_v14, %v438_v18  ;;  %v5117_v6 = vcombine.low %v434_v14, %v438_v18  ;;  %v514_v45 = vld [vmem:[#allocation5 + $0xad8] sm:$0xff] }
 0x237   :  { %v518_v48 = vld [vmem:[#allocation5 + $0xaf8] sm:$0xff] }
 0x238   :  { %3091 = vmatpush1.bf16.msra.mxu1 %v5013_v4  ;;  %v442_v4 = vld [vmem:[#allocation5 + $0x898] sm:$0xff] }
 0x239   :  { %3092 = vmatprep.subr.bf16.mxu1 %v5022_v5  ;;  %v446_v5 = vld [vmem:[#allocation5 + $0x8b8] sm:$0xff] }
 0x23a   :  { %v5126_v7 = vcombine.high %v442_v4, %v446_v5  ;;  %v5125_v11 = vcombine.low %v442_v4, %v446_v5  ;;  %v522_v56 = vld [vmem:[#allocation5 + $0xb18] sm:$0xff] }
 0x23b   :  { %v526_v57 = vld [vmem:[#allocation5 + $0xb38] sm:$0xff] }
 0x23c   :  { %3093 = vmatpush1.bf16.msra.mxu1 %v5021_v9  ;;  %v450_v9 = vld [vmem:[#allocation5 + $0x8d8] sm:$0xff] }
 0x23d   :  { %3094 = vmatprep.subr.bf16.mxu1 %v5030_v10  ;;  %v454_v10 = vld [vmem:[#allocation5 + $0x8f8] sm:$0xff] }
 0x23e   :  { %v5134_v12 = vcombine.high %v450_v9, %v454_v10  ;;  %v5133_v20 = vcombine.low %v450_v9, %v454_v10  ;;  %v530_v34 = vld [vmem:[#allocation5 + $0xb58] sm:$0xff] }
 0x23f   :  { %v534_v60 = vld [vmem:[#allocation5 + $0xb78] sm:$0xff] }
 0x240   :  { %3095 = vmatpush1.bf16.msra.mxu1 %v5029_v15  ;;  %v458_v15 = vld [vmem:[#allocation5 + $0x918] sm:$0xff] }
 0x241   :  { %3096 = vmatprep.subr.bf16.mxu1 %v5038_v17  ;;  %v462_v17 = vld [vmem:[#allocation5 + $0x938] sm:$0xff] }
 0x242   :  { %v5142_v21 = vcombine.high %v458_v15, %v462_v17  ;;  %v538_v14 = vld [vmem:[#allocation5 + $0xb98] sm:$0xff] }
 0x243   :  { %v542_v18 = vld [vmem:[#allocation5 + $0xbb8] sm:$0xff] }
 0x244   :  { %3097 = vmatpush1.bf16.msra.mxu1 %v5037_v23  ;;  %v466_v23 = vld [vmem:[#allocation5 + $0x958] sm:$0xff] }
 0x245   :  { %3098 = vmatprep.subr.bf16.mxu1 %v5046_v13  ;;  %v5141_v13 = vcombine.low %v458_v15, %v462_v17  ;;  %v546_v4 = vld [vmem:[#allocation5 + $0xbd8] sm:$0xff] }
 0x246   :  { %v550_v5 = vld [vmem:[#allocation5 + $0xbf8] sm:$0xff] }
 0x247   :  { %v5229_v9 = vcombine.low %v546_v4, %v550_v5 }
 0x248   :  { %3099 = vmatpush1.bf16.msra.mxu1 %v5045_v26 }
 0x249   :  { %3100 = vmatprep.subr.bf16.mxu1 %v5054_v27  ;;  %v5158_v27 = vcombine.high %v474_v25, %v478_v16 }
 0x24c   :  { %3101 = vmatpush1.bf16.msra.mxu1 %v5053_v19  ;;  %v5157_v19 = vcombine.low %v474_v25, %v478_v16 }
 0x24d   :  { %3102 = vmatprep.subr.bf16.mxu1 %v5062_v30  ;;  %v5166_v30 = vcombine.high %v482_v28, %v486_v29 }
 0x250   :  { %3103 = vmatpush1.bf16.msra.mxu1 %v5061_v32  ;;  %v5165_v32 = vcombine.low %v482_v28, %v486_v29 }
 0x251   :  { %3104 = vmatprep.subr.bf16.mxu1 %v5070_v46  ;;  %v5174_v46 = vcombine.high %v490_v31, %v494_v22 }
 0x254   :  { %3105 = vmatpush1.bf16.msra.mxu1 %v5069_v38  ;;  %v5173_v38 = vcombine.low %v490_v31, %v494_v22 }
 0x255   :  { %3106 = vmatprep.subr.bf16.mxu1 %v5078_v40  ;;  %v5182_v40 = vcombine.high %v498_v33, %v502_v36 }
 0x258   :  { %3107 = vmatpush1.bf16.msra.mxu1 %v5077_v43  ;;  %v5181_v43 = vcombine.low %v498_v33, %v502_v36 }
 0x259   :  { %3108 = vmatprep.subr.bf16.mxu1 %v5086_v44  ;;  %v5190_v44 = vcombine.high %v506_v41, %v510_v42 }
 0x25c   :  { %3109 = vmatpush1.bf16.msra.mxu1 %v5085_v50  ;;  %v5189_v50 = vcombine.low %v506_v41, %v510_v42 }
 0x25d   :  { %3110 = vmatprep.subr.bf16.mxu1 %v5094_v51  ;;  %v5198_v51 = vcombine.high %v514_v45, %v518_v48 }
 0x260   :  { %3111 = vmatpush1.bf16.msra.mxu1 %v5093_v58  ;;  %v5197_v58 = vcombine.low %v514_v45, %v518_v48 }
 0x261   :  { %3112 = vmatprep.subr.bf16.mxu1 %v5102_v59  ;;  %v5206_v59 = vcombine.high %v522_v56, %v526_v57 }
 0x264   :  { %3113 = vmatpush1.bf16.msra.mxu1 %v5101_v61  ;;  %v5205_v61 = vcombine.low %v522_v56, %v526_v57 }
 0x265   :  { %3125 = vmatprep.subr.bf16.mxu1 %v5110_v62  ;;  %v5214_v62 = vcombine.high %v530_v34, %v534_v60 }
 0x267   :  { %3115 = vmatmul.mubr.bf16.vlgmr.msra.gmra.mrb[8].mxu1 %v6155_v24  ;;  %v470_v24 = vld [vmem:[#allocation5 + $0x978] sm:$0xff] }
 0x268   :  { %3126 = vmatpush1.bf16.msra.mxu1 %v5109_v2  ;;  %3157 = vmatprep.mubr.bf16.mxu1 %v6134_v8  ;;  %v5150_v8 = vcombine.high %v466_v23, %v470_v24  ;;  %v5149_v26 = vcombine.low %v466_v23, %v470_v24  ;;  %v5213_v2 = vcombine.low %v530_v34, %v534_v60 }
 0x269   :  { %3127 = vmatprep.subr.bf16.mxu1 %v5118_v3  ;;  %v5222_v3 = vcombine.high %v538_v14, %v542_v18 }
 0x26c   :  { %3128 = vmatpush1.bf16.msra.mxu1 %v5117_v6  ;;  %v5221_v6 = vcombine.low %v538_v14, %v542_v18 }
 0x26d   :  { %3129 = vmatprep.subr.bf16.mxu1 %v5126_v7  ;;  %v5230_v7 = vcombine.high %v546_v4, %v550_v5 }
 0x270   :  { %3130 = vmatpush1.bf16.msra.mxu1 %v5125_v11 }
 0x271   :  { %3131 = vmatprep.subr.bf16.mxu1 %v5134_v12 }
 0x274   :  { %3132 = vmatpush1.bf16.msra.mxu1 %v5133_v20 }
 0x275   :  { %3133 = vmatprep.subr.bf16.mxu1 %v5142_v21 }
 0x278   :  { %3134 = vmatpush1.bf16.msra.mxu1 %v5141_v13 }
 0x279   :  { %3135 = vmatprep.subr.bf16.mxu1 %v5150_v8 }
 0x27c   :  { %3136 = vmatpush1.bf16.msra.mxu1 %v5149_v26 }
 0x27d   :  { %3137 = vmatprep.subr.bf16.mxu1 %v5158_v27 }
 0x280   :  { %3138 = vmatpush1.bf16.msra.mxu1 %v5157_v19 }
 0x281   :  { %3139 = vmatprep.subr.bf16.mxu1 %v5166_v30 }
 0x284   :  { %3140 = vmatpush1.bf16.msra.mxu1 %v5165_v32 }
 0x285   :  { %3141 = vmatprep.subr.bf16.mxu1 %v5174_v46 }
 0x288   :  { %3142 = vmatpush1.bf16.msra.mxu1 %v5173_v38 }
 0x289   :  { %3143 = vmatprep.subr.bf16.mxu1 %v5182_v40 }
 0x28c   :  { %3144 = vmatpush1.bf16.msra.mxu1 %v5181_v43 }
 0x28d   :  { %3145 = vmatprep.subr.bf16.mxu1 %v5190_v44 }
 0x290   :  { %3146 = vmatpush1.bf16.msra.mxu1 %v5189_v50 }
 0x291   :  { %3147 = vmatprep.subr.bf16.mxu1 %v5198_v51 }
 0x294   :  { %3148 = vmatpush1.bf16.msra.mxu1 %v5197_v58 }
 0x295   :  { %3149 = vmatprep.subr.bf16.mxu1 %v5206_v59 }
 0x298   :  { %3150 = vmatpush1.bf16.msra.mxu1 %v5205_v61 }
 0x299   :  { %3151 = vmatprep.subr.bf16.mxu1 %v5214_v62 }
 0x29c   :  { %3152 = vmatpush1.bf16.msra.mxu1 %v5213_v2 }
 0x29d   :  { %3153 = vmatprep.subr.bf16.mxu1 %v5222_v3 }
 0x2a0   :  { %3154 = vmatpush1.bf16.msra.mxu1 %v5221_v6 }
 0x2a1   :  { %3155 = vmatprep.subr.bf16.mxu1 %v5230_v7 }
 0x2a3   :  { %v3030_v10 = vpop.f32.mrb[8].mxu0 }
 0x2a4   :  { %3156 = vmatpush1.bf16.msra.mxu1 %v5229_v9  ;;  %v3032_v11 = vpop.f32.mrb[9].mxu0 }
 0x2a5   :  { %v3034_v12 = vpop.f32.mrb[10].mxu0 }
 0x2a6   :  { %v3241_v15 = vadd.f32 %v3034_v12, %v3030_v10  ;;  %v3036_v17 = vpop.f32.mrb[11].mxu0 }
 0x2a7   :  { %3158 = vmatmul.mubr.bf16.vlgmr.msra.gmra.mrb[8].mxu1 %v6143_v37  ;;  %v3248_v20 = vadd.f32 %v3036_v17, %v3032_v11 }
 0x2a8   :  { %v3242_v21 = vrot.slane %v3241_v15, 4 }
 0x2a9   :  { %v3249_v23 = vrot.slane %v3248_v20, 4 }
 0x2aa   :  { %v3243_v24 = vadd.f32 %v3242_v21, %v3241_v15 }
 0x2ab   :  { %v3250_v13 = vadd.f32 %v3249_v23, %v3248_v20 }
 0x2ac   :  { %v3244_v8 = vrot.slane %v3243_v24, 2 }
 0x2ad   :  { %v3251_v25 = vrot.slane %v3250_v13, 2 }
 0x2ae   :  { %v3245_v16 = vadd.f32 %v3244_v8, %v3243_v24 }
 0x2af   :  { %v3252_v26 = vadd.f32 %v3251_v25, %v3250_v13 }
 0x2b0   :  { %v3246_v27 = vrot.slane %v3245_v16, 1 }
 0x2b1   :  { %v3253_v28 = vrot.slane %v3252_v26, 1 }
 0x2b2   :  { %v3247_v29 = vadd.f32 %v3246_v27, %v3245_v16 }
 0x2b3   :  { %v3254_v19 = vadd.f32 %v3253_v28, %v3252_v26 }
 0x2b4   :  { %v3274_v30 = vmul.f32 0.0625, %v3247_v29 }
 0x2b5   :  { %v3275_v31 = vmul.f32 0.0625, %v3254_v19  ;;  %v5968_v19 = vmov 1966171168  }
 0x2b6   :  { %v6223_v22 = vsub.f32 %v3030_v10, %v3274_v30  ;;  %v6225_v32 = vsub.f32 %v3034_v12, %v3274_v30  ;;  %v3403_v30 = vunpack.c.l.s4 %v5968_v19 }
 0x2b7   :  { %v6227_v37 = vsub.f32 %v3032_v11, %v3275_v31  ;;  %v6229_v46 = vsub.f32 %v3036_v17, %v3275_v31  ;;  %v3405_v31 = vlaneseq }
 0x2b9   :  { %v3307_v19 = vmul.f32 %v6229_v46, %v6229_v46 }
 0x2ba   :  { %v2815_v33 = vpop.f32.mrb[4].mxu1 }
 0x2bb   :  { %v5414_v36 = vadd.f32 %v6202_v35, %v2815_v33  ;;  %v2817_v38 = vpop.f32.mrb[5].mxu1  ;;  %v3404_v33 = vunpack.c.0.s8 %v3403_v30 }
 0x2bc   :  { %v5415_v40 = vadd.f32 %v6204_v39, %v2817_v38  ;;  %v2819_v41 = vpop.f32.mrb[6].mxu1 }
 0x2bd   :  { %v5416_v42 = vadd.f32 %v6208_v47, %v2819_v41  ;;  %v2821_v43 = vpop.f32.mrb[7].mxu1 }
 0x2be   :  { %v5417_v44 = vadd.f32 %v6210_v49, %v2821_v43 }
 0x2bf   :  { %v3227_v45 = vadd.f32 %v5416_v42, %v5414_v36 }
 0x2c0   :  { %v3234_v48 = vadd.f32 %v5417_v44, %v5415_v40 }
 0x2c1   :  { %v3228_v50 = vrot.slane %v3227_v45, 4 }
 0x2c2   :  { %v3235_v51 = vrot.slane %v3234_v48, 4 }
 0x2c3   :  { %v3229_v56 = vadd.f32 %v3228_v50, %v3227_v45 }
 0x2c4   :  { %v3236_v57 = vadd.f32 %v3235_v51, %v3234_v48 }
 0x2c5   :  { %v3230_v58 = vrot.slane %v3229_v56, 2 }
 0x2c6   :  { %v3237_v59 = vrot.slane %v3236_v57, 2 }
 0x2c7   :  { %v3231_v34 = vadd.f32 %v3230_v58, %v3229_v56  ;;  %v5490_v58 = vld [vmem:[#allocation10] ss:$8 sps:$4 sm:$0xff]  }
 0x2c8   :  { %v3238_v60 = vadd.f32 %v3237_v59, %v3236_v57  ;;  %v5492_v57 = vld [vmem:[#allocation10 + $0x4] ss:$8 sps:$4 sm:$0xff]   ;;  %v5496_v59 = vld [vmem:[#allocation10 + $0x20] ss:$8 sps:$4 sm:$0xff]  }
 0x2c9   :  { %v3232_v35 = vrot.slane %v3231_v34, 1  ;;  %4371 = vmatprep.subr.bf16.mxu0 %v5492_v57 }
 0x2ca   :  { %v3239_v61 = vrot.slane %v3238_v60, 1  ;;  %4372 = vmatpush1.bf16.msra.mxu0 %v5490_v58 }
 0x2cb   :  { %v3233_v62 = vadd.f32 %v3232_v35, %v3231_v34  ;;  %4373 = vmatprep.subr.bf16.mxu0 %v5495_v63  ;;  %v5501_v34 = vld [vmem:[#allocation10 + $0x34] ss:$8 sps:$4 sm:$0xff]   ;;  %v5504_v35 = vld [vmem:[#allocation10 + $0x44] ss:$8 sps:$4 sm:$0xff]  }
 0x2cc   :  { %v3240_v39 = vadd.f32 %v3239_v61, %v3238_v60  ;;  %v5499_v60 = vld [vmem:[#allocation10 + $0x30] ss:$8 sps:$4 sm:$0xff]   ;;  %v5502_v61 = vld [vmem:[#allocation10 + $0x40] ss:$8 sps:$4 sm:$0xff]  }
 0x2cd   :  { %v3272_v14 = vmul.f32 0.0625, %v3233_v62  ;;  %v5507_v62 = vld [vmem:[#allocation10 + $0x54] ss:$8 sps:$4 sm:$0xff]  }
 0x2ce   :  { %v3273_v18 = vmul.f32 0.0625, %v3240_v39  ;;  %4374 = vmatpush1.bf16.msra.mxu0 %v5493_v0  ;;  %v5505_v39 = vld [vmem:[#allocation10 + $0x50] ss:$8 sps:$4 sm:$0xff]  }
 0x2cf   :  { %v6235_v47 = vsub.f32 %v5414_v36, %v3272_v14  ;;  %v6237_v2 = vsub.f32 %v5416_v42, %v3272_v14  ;;  %v6251_v36 = vshrl.u32 %v3405_v31, 7  ;;  %v5510_v14 = vld [vmem:[#allocation10 + $0x64] ss:$8 sps:$4 sm:$0xff]  }
 0x2d0   :  { %v6239_v49 = vsub.f32 %v5415_v40, %v3273_v18  ;;  %v6241_v3 = vsub.f32 %v5417_v44, %v3273_v18  ;;  %v5508_v18 = vld [vmem:[#allocation10 + $0x60] ss:$8 sps:$4 sm:$0xff]  }
 0x2d1   :  { %v3296_v4 = vmul.f32 %v6235_v47, %v6235_v47  ;;  %v3304_v5 = vmul.f32 %v6237_v2, %v6237_v2  ;;  %v6254_v40 = vsub.s32 %v3404_v33, %v6251_v36 }
 0x2d2   :  { %v3297_v6 = vmul.f32 %v6239_v49, %v6239_v49  ;;  %v3305_v7 = vmul.f32 %v6241_v3, %v6241_v3 }
 0x2d3   :  { %v3324_v9 = vadd.f32 %v3304_v5, %v3296_v4  ;;  %v6260_v43 = vrot.slane %v3398_v1, %v6254_v40  ;;  %v5498_v1 = vld [vmem:[#allocation10 + $0x24] ss:$8 sps:$4 sm:$0xff]   ;;  %v5513_v4 = vld [vmem:[#allocation10 + $0x74] ss:$8 sps:$4 sm:$0xff]   ;;  %v5511_v5 = vld [vmem:[#allocation10 + $0x70] ss:$8 sps:$4 sm:$0xff]  }
 0x2d4   :  { %v3331_v10 = vadd.f32 %v3305_v7, %v3297_v6  ;;  %4375 = vmatprep.subr.bf16.mxu0 %v5498_v1  ;;  %v5516_v6 = vld [vmem:[#allocation10 + $0x84] ss:$8 sps:$4 sm:$0xff]   ;;  %v5514_v7 = vld [vmem:[#allocation10 + $0x80] ss:$8 sps:$4 sm:$0xff]  }
 0x2d5   :  { %v3325_v11 = vrot.slane %v3324_v9, 4  ;;  %4376 = vmatpush1.bf16.msra.mxu0 %v5496_v59 }
 0x2d6   :  { %v3332_v12 = vrot.slane %v3331_v10, 4  ;;  %4377 = vmatprep.subr.bf16.mxu0 %v5501_v34 }
 0x2d7   :  { %v3326_v15 = vadd.f32 %v3325_v11, %v3324_v9  ;;  %v5519_v9 = vld [vmem:[#allocation10 + $0x94] ss:$8 sps:$4 sm:$0xff]   ;;  %v5522_v11 = vld [vmem:[#allocation10 + $0xa4] ss:$8 sps:$4 sm:$0xff]  }
 0x2d8   :  { %v3333_v17 = vadd.f32 %v3332_v12, %v3331_v10  ;;  %v5517_v10 = vld [vmem:[#allocation10 + $0x90] ss:$8 sps:$4 sm:$0xff]   ;;  %v5520_v12 = vld [vmem:[#allocation10 + $0xa0] ss:$8 sps:$4 sm:$0xff]  }
 0x2d9   :  { %v3327_v20 = vrot.slane %v3326_v15, 2  ;;  %4378 = vmatpush1.bf16.msra.mxu0 %v5499_v60 }
 0x2da   :  { %v3334_v21 = vrot.slane %v3333_v17, 2  ;;  %4379 = vmatprep.subr.bf16.mxu0 %v5504_v35 }
 0x2db   :  { %v3328_v23 = vadd.f32 %v3327_v20, %v3326_v15  ;;  %v5525_v15 = vld [vmem:[#allocation10 + $0xb4] ss:$8 sps:$4 sm:$0xff]   ;;  %v5528_v20 = vld [vmem:[#allocation10 + $0xc4] ss:$8 sps:$4 sm:$0xff]  }
 0x2dc   :  { %v3335_v24 = vadd.f32 %v3334_v21, %v3333_v17  ;;  %v5523_v17 = vld [vmem:[#allocation10 + $0xb0] ss:$8 sps:$4 sm:$0xff]   ;;  %v5526_v21 = vld [vmem:[#allocation10 + $0xc0] ss:$8 sps:$4 sm:$0xff]  }
 0x2dd   :  { %v3329_v13 = vrot.slane %v3328_v23, 1  ;;  %4380 = vmatpush1.bf16.msra.mxu0 %v5502_v61 }
 0x2de   :  { %v3336_v8 = vrot.slane %v3335_v24, 1  ;;  %4381 = vmatprep.subr.bf16.mxu0 %v5507_v62 }
 0x2df   :  { %v3330_v25 = vadd.f32 %v3329_v13, %v3328_v23  ;;  %v5531_v23 = vld [vmem:[#allocation10 + $0xd4] ss:$8 sps:$4 sm:$0xff]   ;;  %v5534_v13 = vld [vmem:[#allocation10 + $0xe4] ss:$8 sps:$4 sm:$0xff]  }
 0x2e0   :  { %v3337_v16 = vadd.f32 %v3336_v8, %v3335_v24  ;;  %v5529_v24 = vld [vmem:[#allocation10 + $0xd0] ss:$8 sps:$4 sm:$0xff]   ;;  %v5532_v8 = vld [vmem:[#allocation10 + $0xe0] ss:$8 sps:$4 sm:$0xff]  }
 0x2e1   :  { %v3368_v26 = vmul.f32 0.0625, %v3330_v25  ;;  %v6267_v48 = vpop.f32.mrb[12].mxu0  ;;  %4382 = vmatpush1.bf16.msra.mxu0 %v5505_v39  ;;  %v5537_v25 = vld [vmem:[#allocation10 + $0xf4] ss:$8 sps:$4 sm:$0xff]  }
 0x2e2   :  { %v3369_v27 = vmul.f32 0.0625, %v3337_v16  ;;  %v6269_v50 = vpop.f32.mrb[13].mxu0  ;;  %4383 = vmatprep.subr.bf16.mxu0 %v5510_v14  ;;  %v5535_v16 = vld [vmem:[#allocation10 + $0xf0] ss:$8 sps:$4 sm:$0xff]  }
 0x2e3   :  { %v3376_v28 = vadd.f32 1e-05, %v3368_v26  ;;  %v6271_v51 = vpop.f32.mrb[14].mxu0  ;;  %v5540_v26 = vld [vmem:[#allocation10 + $0x104] ss:$8 sps:$4 sm:$0xff]  }
 0x2e4   :  { %v3377_v29 = vadd.f32 1e-05, %v3369_v27  ;;  %v6273_v56 = vpop.f32.mrb[15].mxu0  ;;  %v3298_v27 = vmul.f32 %v6223_v22, %v6223_v22 }
 0x2e5   :  { %5702 = vrsqrt.f32 %v3376_v28  ;;  %4384 = vmatpush1.bf16.msra.mxu0 %v5508_v18  ;;  %v3306_v28 = vmul.f32 %v6225_v32, %v6225_v32 }
 0x2e6   :  { %5704 = vrsqrt.f32 %v3377_v29  ;;  %4385 = vmatprep.subr.bf16.mxu0 %v5513_v4  ;;  %v3299_v29 = vmul.f32 %v6227_v37, %v6227_v37 }
 0x2e8   :  { %v3345_v63 = vadd.f32 %v3307_v19, %v3299_v29 }
 0x2e9   :  { %4386 = vmatpush1.bf16.msra.mxu0 %v5511_v5 }
 0x2ea   :  { %4387 = vmatprep.subr.bf16.mxu0 %v5516_v6  ;;  %v3346_v35 = vrot.slane %v3345_v63, 4 }
 0x2ec   :  { %v3347_v18 = vadd.f32 %v3346_v35, %v3345_v63 }
 0x2ed   :  { %4388 = vmatpush1.bf16.msra.mxu0 %v5514_v7 }
 0x2ee   :  { %4389 = vmatprep.subr.bf16.mxu0 %v5519_v9  ;;  %v3348_v7 = vrot.slane %v3347_v18, 2 }
 0x2ef   :  { %v5703_v38 = vpop.eup %5702 }
 0x2f0   :  { %v5705_v41 = vpop.eup %5704 }
 0x2f1   :  { %v3399_v42 = vcombine.low %v5703_v38, %v5705_v41  ;;  %4390 = vmatpush1.bf16.msra.mxu0 %v5517_v10 }
 0x2f2   :  { %4391 = vmatprep.subr.bf16.mxu0 %v5522_v11 }
 0x2f3   :  { %v6263_v44 = vrot.slane %v3399_v42, %v6254_v40  ;;  %v3338_v42 = vadd.f32 %v3306_v28, %v3298_v27 }
 0x2f5   :  { %v3430_v45 = vcombine.low %v6260_v43, %v6263_v44  ;;  %4392 = vmatpush1.bf16.msra.mxu0 %v5520_v12  ;;  %v3339_v34 = vrot.slane %v3338_v42, 4  ;;  %v3472_v43 = vsub.s32 5, %v6251_v36  ;;  %v3468_v44 = vsub.s32 4, %v6251_v36 }
 0x2f6   :  { %4393 = vmatprep.subr.bf16.mxu0 %v5525_v15  ;;  %v3349_v15 = vadd.f32 %v3348_v7, %v3347_v18 }
 0x2f9   :  { %4394 = vmatpush1.bf16.msra.mxu0 %v5523_v17 }
 0x2fa   :  { %4395 = vmatprep.subr.bf16.mxu0 %v5528_v20 }
 0x2fd   :  { %4396 = vmatpush1.bf16.msra.mxu0 %v5526_v21 }
 0x2fe   :  { %4397 = vmatprep.subr.bf16.mxu0 %v5531_v23 }
 0x301   :  { %4398 = vmatpush1.bf16.msra.mxu0 %v5529_v24 }
 0x302   :  { %4399 = vmatprep.subr.bf16.mxu0 %v5534_v13 }
 0x305   :  { %4400 = vmatpush1.bf16.msra.mxu0 %v5532_v8 }
 0x306   :  { %4401 = vmatprep.subr.bf16.mxu0 %v5537_v25 }
 0x309   :  { %4402 = vmatpush1.bf16.msra.mxu0 %v5535_v16  ;;  %v3350_v16 = vrot.slane %v3349_v15, 1 }
 0x30a   :  { %4414 = vmatprep.subr.bf16.mxu0 %v5540_v26 }
 0x37a   :  { %v3159_v30 = vpop.f32.mrb[8].mxu1 }
 0x37b   :  { %v5418_v31 = vadd.f32 %v6267_v48, %v3159_v30  ;;  %v3161_v33 = vpop.f32.mrb[9].mxu1  ;;  %v3340_v48 = vadd.f32 %v3339_v34, %v3338_v42 }
 0x37c   :  { %v5419_v38 = vadd.f32 %v6269_v50, %v3161_v33  ;;  %v3163_v41 = vpop.f32.mrb[10].mxu1 }
 0x37d   :  { %v5420_v57 = vadd.f32 %v6271_v51, %v3163_v41  ;;  %v3165_v58 = vpop.f32.mrb[11].mxu1  ;;  %v3341_v6 = vrot.slane %v3340_v48, 2 }
 0x37e   :  { %v5421_v0 = vadd.f32 %v6273_v56, %v3165_v58 }
 0x37f   :  { %v3255_v1 = vadd.f32 %v5420_v57, %v5418_v31  ;;  %v3342_v11 = vadd.f32 %v3341_v6, %v3340_v48 }
 0x380   :  { %v3262_v59 = vadd.f32 %v5421_v0, %v5419_v38 }
 0x381   :  { %v3256_v60 = vrot.slane %v3255_v1, 4  ;;  %v3343_v13 = vrot.slane %v3342_v11, 1 }
 0x382   :  { %v3263_v61 = vrot.slane %v3262_v59, 4 }
 0x383   :  { %v3257_v62 = vadd.f32 %v3256_v60, %v3255_v1  ;;  %v3344_v19 = vadd.f32 %v3343_v13, %v3342_v11  ;;  %v3438_v11 = vrot.slane %v3430_v45, %v6254_v40  ;;  %v3480_v13 = vsub.s32 7, %v6251_v36 }
 0x384   :  { %v3264_v39 = vadd.f32 %v3263_v61, %v3262_v59  ;;  %v3476_v45 = vsub.s32 6, %v6251_v36 }
 0x385   :  { %v3258_v14 = vrot.slane %v3257_v62, 2  ;;  %v3370_v42 = vmul.f32 0.0625, %v3344_v19 }
 0x386   :  { %v3265_v50 = vrot.slane %v3264_v39, 2 }
 0x387   :  { %v3259_v4 = vadd.f32 %v3258_v14, %v3257_v62  ;;  %v3378_v59 = vadd.f32 1e-05, %v3370_v42 }
 0x388   :  { %v3266_v5 = vadd.f32 %v3265_v50, %v3264_v39 }
 0x389   :  { %v3260_v51 = vrot.slane %v3259_v4, 1  ;;  %5706 = vrsqrt.f32 %v3378_v59 }
 0x38a   :  { %v3267_v9 = vrot.slane %v3266_v5, 1 }
 0x38b   :  { %v3261_v10 = vadd.f32 %v3260_v51, %v3259_v4 }
 0x38c   :  { %v3268_v56 = vadd.f32 %v3267_v9, %v3266_v5 }
 0x38d   :  { %v3276_v12 = vmul.f32 0.0625, %v3261_v10 }
 0x38e   :  { %v3277_v17 = vmul.f32 0.0625, %v3268_v56 }
 0x38f   :  { %v6287_v20 = vsub.f32 %v5418_v31, %v3276_v12  ;;  %v6289_v21 = vsub.f32 %v5420_v57, %v3276_v12  ;;  %v3351_v31 = vadd.f32 %v3350_v16, %v3349_v15  ;;  %v3212_v12 = vld [vmem:[#allocation8] sm:$0xff]  ;;  %v6315_v16 = vsub.s32 0, %v6251_v36 }
 0x390   :  { %v6291_v23 = vsub.f32 %v5419_v38, %v3277_v17  ;;  %v6293_v24 = vsub.f32 %v5421_v0, %v3277_v17  ;;  %v3211_v17 = vld [vmem:[#allocation7] sm:$0xff]  ;;  %v6328_v42 = vrot.slane %v3212_v12, %v3476_v45 }
 0x391   :  { %v3300_v8 = vmul.f32 %v6287_v20, %v6287_v20  ;;  %v3308_v25 = vmul.f32 %v6289_v21, %v6289_v21  ;;  %v3371_v58 = vmul.f32 0.0625, %v3351_v31 }
 0x392   :  { %v3301_v26 = vmul.f32 %v6291_v23, %v6291_v23  ;;  %v3309_v27 = vmul.f32 %v6293_v24, %v6293_v24 }
 0x393   :  { %v3352_v28 = vadd.f32 %v3308_v25, %v3300_v8  ;;  %v3379_v60 = vadd.f32 1e-05, %v3371_v58  ;;  %v5707_v50 = vpop.eup %5706  ;;  %v6312_v8 = vsub.s32 1, %v6251_v36 }
 0x394   :  { %v3359_v29 = vadd.f32 %v3309_v27, %v3301_v26  ;;  %v3464_v26 = vsub.s32 3, %v6251_v36  ;;  %v3460_v27 = vsub.s32 2, %v6251_v36 }
 0x395   :  { %v3353_v30 = vrot.slane %v3352_v28, 4  ;;  %5708 = vrsqrt.f32 %v3379_v60  ;;  %v3514_v19 = vrot.slane %v3212_v12, %v6312_v8 }
 0x396   :  { %v3360_v33 = vrot.slane %v3359_v29, 4  ;;  %v3522_v31 = vrot.slane %v3212_v12, %v3464_v26 }
 0x397   :  { %v3354_v38 = vadd.f32 %v3353_v30, %v3352_v28  ;;  %v6319_v28 = vrot.slane %v3212_v12, %v3480_v13  ;;  %v3510_v30 = vrot.slane %v3212_v12, %v6315_v16 }
 0x398   :  { %v3361_v41 = vadd.f32 %v3360_v33, %v3359_v29  ;;  %v3518_v33 = vrot.slane %v3212_v12, %v3460_v27 }
 0x399   :  { %v3355_v57 = vrot.slane %v3354_v38, 2 }
 0x39a   :  { %v3362_v63 = vrot.slane %v3361_v41, 2 }
 0x39b   :  { %v3356_v0 = vadd.f32 %v3355_v57, %v3354_v38  ;;  %v3530_v38 = vrot.slane %v3212_v12, %v3472_v43 }
 0x39c   :  { %v3363_v1 = vadd.f32 %v3362_v63, %v3361_v41  ;;  %v6326_v41 = vrot.slane %v3212_v12, %v3468_v44 }
 0x39d   :  { %v3357_v34 = vrot.slane %v3356_v0, 1 }
 0x39e   :  { %v3364_v35 = vrot.slane %v3363_v1, 1 }
 0x39f   :  { %v3358_v61 = vadd.f32 %v3357_v34, %v3356_v0  ;;  %v5709_v4 = vpop.eup %5708 }
 0x3a0   :  { %v3365_v62 = vadd.f32 %v3364_v35, %v3363_v1  ;;  %v3400_v6 = vcombine.low %v5707_v50, %v5709_v4 }
 0x3a1   :  { %v3372_v39 = vmul.f32 0.0625, %v3358_v61 }
 0x3a2   :  { %v3373_v48 = vmul.f32 0.0625, %v3365_v62  ;;  %v3422_v9 = vrot.slane %v3400_v6, %v6254_v40 }
 0x3a3   :  { %v3380_v14 = vadd.f32 1e-05, %v3372_v39 }
 0x3a4   :  { %v3381_v18 = vadd.f32 1e-05, %v3373_v48 }
 0x3a5   :  { %5710 = vrsqrt.f32 %v3380_v14 }
 0x3a6   :  { %5712 = vrsqrt.f32 %v3381_v18 }
 0x3af   :  { %v5711_v5 = vpop.eup %5710 }
 0x3b0   :  { %v5713_v51 = vpop.eup %5712 }
 0x3b1   :  { %v3401_v7 = vcombine.low %v5711_v5, %v5713_v51 }
 0x3b3   :  { %v3429_v10 = vrot.slane %v3401_v7, %v6254_v40 }
 0x3b5   :  { %v3431_v56 = vcombine.low %v3422_v9, %v3429_v10 }
 0x3b7   :  { %v3445_v15 = vrot.slane %v3431_v56, %v6254_v40 }
 0x3b9   :  { %v3446_v25 = vcombine.low %v3438_v11, %v3445_v15 }
 0x3bb   :  { %v3448_v29 = vmul.f32 %v3446_v25, %v3211_v17 }
 0x3bd   :  { %v3481_v57 = vrot.slane %v3448_v29, %v3480_v13  ;;  %v3457_v58 = vrot.slane %v3448_v29, %v6312_v8  ;;  %v3453_v63 = vrot.slane %v3448_v29, %v6315_v16  ;;  %v3465_v0 = vrot.slane %v3448_v29, %v3464_v26 }
 0x3be   :  { %v3461_v1 = vrot.slane %v3448_v29, %v3460_v27  ;;  %v3473_v36 = vrot.slane %v3448_v29, %v3472_v43  ;;  %v3469_v59 = vrot.slane %v3448_v29, %v3468_v44  ;;  %v6332_v34 = vrot.slane %v3448_v29, %v3476_v45  ;;  %v5538_v27 = vld [vmem:[#allocation10 + $0x100] ss:$8 sps:$4 sm:$0xff]   ;;  %v5543_v29 = vld [vmem:[#allocation10 + $0x114] ss:$8 sps:$4 sm:$0xff]  }
 0x3bf   :  { %v3497_v60 = vmul.f32 %v3481_v57, %v6291_v23  ;;  %v3505_v35 = vmul.f32 %v3481_v57, %v6293_v24  ;;  %v3491_v61 = vmul.f32 %v3457_v58, %v6190_v54  ;;  %v3499_v62 = vmul.f32 %v3457_v58, %v6192_v55 }
 0x3c0   :  { %v3490_v39 = vmul.f32 %v3453_v63, %v6186_v52  ;;  %v3498_v48 = vmul.f32 %v3453_v63, %v6188_v53  ;;  %v3493_v14 = vmul.f32 %v3465_v0, %v6239_v49  ;;  %v3501_v18 = vmul.f32 %v3465_v0, %v6241_v3 }
 0x3c1   :  { %v6343_v50 = vadd.f32 %v6319_v28, %v3505_v35  ;;  %v3548_v4 = vadd.f32 %v3514_v19, %v3491_v61  ;;  %v3556_v5 = vadd.f32 %v3514_v19, %v3499_v62  ;;  %v3492_v23 = vmul.f32 %v3461_v1, %v6235_v47 }
 0x3c2   :  { %v3547_v24 = vadd.f32 %v3510_v30, %v3490_v39  ;;  %v3555_v6 = vadd.f32 %v3510_v30, %v3498_v48  ;;  %v3550_v54 = vadd.f32 %v3522_v31, %v3493_v14  ;;  %v3558_v51 = vadd.f32 %v3522_v31, %v3501_v18 }
 0x3c3   :  { %v3564_v55 = vmul.f32 0.01, %v3548_v4  ;;  %v3572_v7 = vmul.f32 0.01, %v3556_v5  ;;  %v3500_v52 = vmul.f32 %v3461_v1, %v6237_v2  ;;  %v3549_v53 = vadd.f32 %v3518_v33, %v3492_v23 }
 0x3c4   :  { %v3563_v9 = vmul.f32 0.01, %v3547_v24  ;;  %v3571_v49 = vmul.f32 0.01, %v3555_v6  ;;  %v3566_v10 = vmul.f32 0.01, %v3550_v54  ;;  %v3495_v3 = vmul.f32 %v3473_v36, %v6227_v37 }
 0x3c5   :  { %v3580_v56 = vmax.f32 %v3548_v4, %v3564_v55  ;;  %v3588_v11 = vmax.f32 %v3556_v5, %v3572_v7  ;;  %v3574_v12 = vmul.f32 0.01, %v3558_v51  ;;  %v3557_v15 = vadd.f32 %v3518_v33, %v3500_v52  ;;  %v5544_v5 = vld [vmem:[#allocation10 + $0x120] ss:$8 sps:$4 sm:$0xff]   ;;  %v5547_v7 = vld [vmem:[#allocation10 + $0x130] ss:$8 sps:$4 sm:$0xff]  }
 0x3c6   :  { %v3579_v17 = vmax.f32 %v3547_v24, %v3563_v9  ;;  %v3587_v47 = vmax.f32 %v3555_v6, %v3571_v49  ;;  %v3582_v13 = vmax.f32 %v3550_v54, %v3566_v10  ;;  %v3565_v25 = vmul.f32 0.01, %v3549_v53  ;;  %v5549_v54 = vld [vmem:[#allocation10 + $0x134] ss:$8 sps:$4 sm:$0xff]   ;;  %v5552_v52 = vld [vmem:[#allocation10 + $0x144] ss:$8 sps:$4 sm:$0xff]  }
 0x3c7   :  { %v3596_v26 = vpack.c.bf16 %v3588_v11, %v3580_v56  ;;  %v3590_v43 = vmax.f32 %v3558_v51, %v3574_v12  ;;  %v3573_v44 = vmul.f32 0.01, %v3557_v15  ;;  %v3503_v2 = vmul.f32 %v3473_v36, %v6229_v46  ;;  %v5541_v36 = vld [vmem:[#allocation10 + $0x110] ss:$8 sps:$4 sm:$0xff]   ;;  %v5555_v9 = vld [vmem:[#allocation10 + $0x154] ss:$8 sps:$4 sm:$0xff]  }
 0x3c8   :  { %v3595_v45 = vpack.c.bf16 %v3587_v47, %v3579_v17  ;;  %v3581_v19 = vmax.f32 %v3549_v53, %v3565_v25  ;;  %v3552_v30 = vadd.f32 %v3530_v38, %v3495_v3  ;;  %v3494_v37 = vmul.f32 %v3469_v59, %v6223_v22  ;;  %v5550_v53 = vld [vmem:[#allocation10 + $0x140] ss:$8 sps:$4 sm:$0xff]   ;;  %v5553_v49 = vld [vmem:[#allocation10 + $0x150] ss:$8 sps:$4 sm:$0xff]   ;;  %v5558_v10 = vld [vmem:[#allocation10 + $0x164] ss:$8 sps:$4 sm:$0xff]  }
 0x3c9   :  { %4403 = vmatprep.mubr.bf16.mxu0 %v3596_v26  ;;  %v3598_v31 = vpack.c.bf16 %v3590_v43, %v3582_v13  ;;  %v3589_v57 = vmax.f32 %v3557_v15, %v3573_v44  ;;  %v3560_v33 = vadd.f32 %v3530_v38, %v3503_v2  ;;  %v3502_v58 = vmul.f32 %v3469_v59, %v6225_v32  ;;  %v5546_v32 = vld [vmem:[#allocation10 + $0x124] ss:$8 sps:$4 sm:$0xff]   ;;  %v5556_v3 = vld [vmem:[#allocation10 + $0x160] ss:$8 sps:$4 sm:$0xff]   ;;  %v5561_v56 = vld [vmem:[#allocation10 + $0x174] ss:$8 sps:$4 sm:$0xff]  }
 0x3ca   :  { %4404 = vmatmul.mubr.bf16.vlgmr.msra.gmra.mrb[16].mxu0 %v3595_v45  ;;  %v3568_v63 = vmul.f32 0.01, %v3552_v30  ;;  %v3551_v0 = vadd.f32 %v6326_v41, %v3494_v37  ;;  %v3554_v1 = vadd.f32 %v6319_v28, %v3497_v60  ;;  %v3496_v46 = vmul.f32 %v6332_v34, %v6287_v20  ;;  %v5559_v11 = vld [vmem:[#allocation10 + $0x170] ss:$8 sps:$4 sm:$0xff]   ;;  %v5564_v12 = vld [vmem:[#allocation10 + $0x184] ss:$8 sps:$4 sm:$0xff]  }
 0x3cb   :  { %4415 = vmatpush1.bf16.msra.mxu0 %v5538_v27  ;;  %4446 = vmatprep.mubr.bf16.mxu0 %v3598_v31  ;;  %v6355_v35 = vpack.c.bf16 %v3589_v57, %v3581_v19  ;;  %v3576_v22 = vmul.f32 0.01, %v3560_v33  ;;  %v3559_v61 = vadd.f32 %v6326_v41, %v3502_v58  ;;  %v3578_v38 = vmul.f32 0.01, %v6343_v50  ;;  %v5562_v15 = vld [vmem:[#allocation10 + $0x180] ss:$8 sps:$4 sm:$0xff]  }
 0x3cc   :  { %4416 = vmatprep.subr.bf16.mxu0 %v5543_v29  ;;  %v3584_v59 = vmax.f32 %v3552_v30, %v3568_v63  ;;  %v3567_v62 = vmul.f32 0.01, %v3551_v0  ;;  %v3570_v39 = vmul.f32 0.01, %v3554_v1  ;;  %v3504_v28 = vmul.f32 %v6332_v34, %v6289_v21  ;;  %v5567_v17 = vld [vmem:[#allocation10 + $0x194] ss:$8 sps:$4 sm:$0xff]  }
 0x3cd   :  { %v3592_v60 = vmax.f32 %v3560_v33, %v3576_v22  ;;  %v3575_v20 = vmul.f32 0.01, %v3559_v61  ;;  %v3594_v48 = vmax.f32 %v6343_v50, %v3578_v38  ;;  %v3553_v14 = vadd.f32 %v6328_v42, %v3496_v46  ;;  %v5565_v47 = vld [vmem:[#allocation10 + $0x190] ss:$8 sps:$4 sm:$0xff]   ;;  %v5570_v13 = vld [vmem:[#allocation10 + $0x1a4] ss:$8 sps:$4 sm:$0xff]  }
 0x3ce   :  { %v3583_v18 = vmax.f32 %v3551_v0, %v3567_v62  ;;  %v3586_v4 = vmax.f32 %v3554_v1, %v3570_v39  ;;  %v3561_v41 = vadd.f32 %v6328_v42, %v3504_v28  ;;  %v5568_v25 = vld [vmem:[#allocation10 + $0x1a0] ss:$8 sps:$4 sm:$0xff]   ;;  %v5573_v26 = vld [vmem:[#allocation10 + $0x1b4] ss:$8 sps:$4 sm:$0xff]   ;;  %v5571_v27 = vld [vmem:[#allocation10 + $0x1b0] ss:$8 sps:$4 sm:$0xff]  }
 0x3cf   :  { %4417 = vmatpush1.bf16.msra.mxu0 %v5541_v36  ;;  %v6364_v23 = vpack.c.bf16 %v3592_v60, %v3584_v59  ;;  %v3591_v24 = vmax.f32 %v3559_v61, %v3575_v20  ;;  %v3569_v6 = vmul.f32 0.01, %v3553_v14  ;;  %v5576_v43 = vld [vmem:[#allocation10 + $0x1c4] ss:$8 sps:$4 sm:$0xff]   ;;  %v5574_v44 = vld [vmem:[#allocation10 + $0x1c0] ss:$8 sps:$4 sm:$0xff]  }
 0x3d0   :  { %4418 = vmatprep.subr.bf16.mxu0 %v5546_v32  ;;  %v6366_v51 = vpack.c.bf16 %v3594_v48, %v3586_v4  ;;  %v3577_v21 = vmul.f32 0.01, %v3561_v41  ;;  %v5579_v2 = vld [vmem:[#allocation10 + $0x1d4] ss:$8 sps:$4 sm:$0xff]   ;;  %v5577_v45 = vld [vmem:[#allocation10 + $0x1d0] ss:$8 sps:$4 sm:$0xff]  }
 0x3d1   :  { %v6368_v34 = vpack.c.bf16 %v3591_v24, %v3583_v18  ;;  %v3585_v50 = vmax.f32 %v3553_v14, %v3569_v6  ;;  %v5582_v29 = vld [vmem:[#allocation10 + $0x1e4] ss:$8 sps:$4 sm:$0xff]   ;;  %v5580_v19 = vld [vmem:[#allocation10 + $0x1e0] ss:$8 sps:$4 sm:$0xff]   ;;  %v5585_v30 = vld [vmem:[#allocation10 + $0x1f4] ss:$8 sps:$4 sm:$0xff]  }
 0x3d2   :  { %v3593_v55 = vmax.f32 %v3561_v41, %v3577_v21  ;;  %v5583_v37 = vld [vmem:[#allocation10 + $0x1f0] ss:$8 sps:$4 sm:$0xff]   ;;  %v5588_v31 = vld [vmem:[#allocation10 + $0x204] ss:$8 sps:$4 sm:$0xff]   ;;  %v5586_v57 = vld [vmem:[#allocation10 + $0x200] ss:$8 sps:$4 sm:$0xff]  }
 0x3d3   :  { %4419 = vmatpush1.bf16.msra.mxu0 %v5544_v5  ;;  %v5591_v33 = vld [vmem:[#allocation10 + $0x214] ss:$8 sps:$4 sm:$0xff]   ;;  %v5589_v58 = vld [vmem:[#allocation10 + $0x210] ss:$8 sps:$4 sm:$0xff]   ;;  %v5594_v63 = vld [vmem:[#allocation10 + $0x224] ss:$8 sps:$4 sm:$0xff]  }
 0x3d4   :  { %4420 = vmatprep.subr.bf16.mxu0 %v5549_v54  ;;  %v6370_v42 = vpack.c.bf16 %v3593_v55, %v3585_v50  ;;  %v5592_v0 = vld [vmem:[#allocation10 + $0x220] ss:$8 sps:$4 sm:$0xff]   ;;  %v5597_v1 = vld [vmem:[#allocation10 + $0x234] ss:$8 sps:$4 sm:$0xff]   ;;  %v5595_v46 = vld [vmem:[#allocation10 + $0x230] ss:$8 sps:$4 sm:$0xff]  }
 0x3d5   :  { %v5600_v36 = vld [vmem:[#allocation10 + $0x244] ss:$8 sps:$4 sm:$0xff]   ;;  %v5598_v22 = vld [vmem:[#allocation10 + $0x240] ss:$8 sps:$4 sm:$0xff]   ;;  %v5603_v61 = vld [vmem:[#allocation10 + $0x254] ss:$8 sps:$4 sm:$0xff]  }
 0x3d6   :  { %v5606_v38 = vld [vmem:[#allocation10 + $0x264] ss:$8 sps:$4 sm:$0xff]   ;;  %v5604_v32 = vld [vmem:[#allocation10 + $0x260] ss:$8 sps:$4 sm:$0xff]   ;;  %v5609_v59 = vld [vmem:[#allocation10 + $0x274] ss:$8 sps:$4 sm:$0xff]  }
 0x3d7   :  { %4421 = vmatpush1.bf16.msra.mxu0 %v5547_v7  ;;  %v5607_v62 = vld [vmem:[#allocation10 + $0x270] ss:$8 sps:$4 sm:$0xff]   ;;  %v5612_v39 = vld [vmem:[#allocation10 + $0x284] ss:$8 sps:$4 sm:$0xff]   ;;  %v5610_v28 = vld [vmem:[#allocation10 + $0x280] ss:$8 sps:$4 sm:$0xff]  }
 0x3d8   :  { %4422 = vmatprep.subr.bf16.mxu0 %v5552_v52  ;;  %v5615_v60 = vld [vmem:[#allocation10 + $0x294] ss:$8 sps:$4 sm:$0xff]   ;;  %v5613_v20 = vld [vmem:[#allocation10 + $0x290] ss:$8 sps:$4 sm:$0xff]   ;;  %v5618_v48 = vld [vmem:[#allocation10 + $0x2a4] ss:$8 sps:$4 sm:$0xff]  }
 0x3d9   :  { %v5616_v14 = vld [vmem:[#allocation10 + $0x2a0] ss:$8 sps:$4 sm:$0xff]   ;;  %v5621_v18 = vld [vmem:[#allocation10 + $0x2b4] ss:$8 sps:$4 sm:$0xff]   ;;  %v5619_v4 = vld [vmem:[#allocation10 + $0x2b0] ss:$8 sps:$4 sm:$0xff]  }
 0x3da   :  { %v5624_v41 = vld [vmem:[#allocation10 + $0x2c4] ss:$8 sps:$4 sm:$0xff]   ;;  %v5622_v5 = vld [vmem:[#allocation10 + $0x2c0] ss:$8 sps:$4 sm:$0xff]   ;;  %v5625_v24 = vld [vmem:[#allocation10 + $0x2d0] ss:$8 sps:$4 sm:$0xff]  }
 0x3db   :  { %4423 = vmatpush1.bf16.msra.mxu0 %v5550_v53  ;;  %v5630_v6 = vld [vmem:[#allocation10 + $0x2e4] ss:$8 sps:$4 sm:$0xff]   ;;  %v5628_v54 = vld [vmem:[#allocation10 + $0x2e0] ss:$8 sps:$4 sm:$0xff]   ;;  %v5633_v21 = vld [vmem:[#allocation10 + $0x2f4] ss:$8 sps:$4 sm:$0xff]  }
 0x3dc   :  { %4424 = vmatprep.subr.bf16.mxu0 %v5555_v9  ;;  %v5631_v50 = vld [vmem:[#allocation10 + $0x2f0] ss:$8 sps:$4 sm:$0xff]   ;;  %v5636_v55 = vld [vmem:[#allocation10 + $0x304] ss:$8 sps:$4 sm:$0xff]   ;;  %v5634_v7 = vld [vmem:[#allocation10 + $0x300] ss:$8 sps:$4 sm:$0xff]  }
 0x3dd   :  { %v5639_v52 = vld [vmem:[#allocation10 + $0x314] ss:$8 sps:$4 sm:$0xff]   ;;  %v5637_v53 = vld [vmem:[#allocation10 + $0x310] ss:$8 sps:$4 sm:$0xff]   ;;  %v5642_v9 = vld [vmem:[#allocation10 + $0x324] ss:$8 sps:$4 sm:$0xff]  }
 0x3df   :  { %4425 = vmatpush1.bf16.msra.mxu0 %v5553_v49  ;;  %v5640_v49 = vld [vmem:[#allocation10 + $0x320] ss:$8 sps:$4 sm:$0xff]  }
 0x3e0   :  { %4426 = vmatprep.subr.bf16.mxu0 %v5558_v10  ;;  %v5645_v10 = vld [vmem:[#allocation10 + $0x334] ss:$8 sps:$4 sm:$0xff]  }
 0x3e3   :  { %4427 = vmatpush1.bf16.msra.mxu0 %v5556_v3  ;;  %v5643_v3 = vld [vmem:[#allocation10 + $0x330] ss:$8 sps:$4 sm:$0xff]  }
 0x3e4   :  { %4428 = vmatprep.subr.bf16.mxu0 %v5561_v56  ;;  %v5648_v56 = vld [vmem:[#allocation10 + $0x344] ss:$8 sps:$4 sm:$0xff]  }
 0x3e7   :  { %4429 = vmatpush1.bf16.msra.mxu0 %v5559_v11  ;;  %v5646_v11 = vld [vmem:[#allocation10 + $0x340] ss:$8 sps:$4 sm:$0xff]  }
 0x3e8   :  { %4430 = vmatprep.subr.bf16.mxu0 %v5564_v12  ;;  %v5651_v12 = vld [vmem:[#allocation10 + $0x354] ss:$8 sps:$4 sm:$0xff]  }
 0x3eb   :  { %4431 = vmatpush1.bf16.msra.mxu0 %v5562_v15  ;;  %v5654_v15 = vld [vmem:[#allocation10 + $0x364] ss:$8 sps:$4 sm:$0xff]  }
 0x3ec   :  { %4432 = vmatprep.subr.bf16.mxu0 %v5567_v17  ;;  %v5657_v17 = vld [vmem:[#allocation10 + $0x374] ss:$8 sps:$4 sm:$0xff]  }
 0x3ef   :  { %4433 = vmatpush1.bf16.msra.mxu0 %v5565_v47  ;;  %v5655_v47 = vld [vmem:[#allocation10 + $0x370] ss:$8 sps:$4 sm:$0xff]  }
 0x3f0   :  { %4434 = vmatprep.subr.bf16.mxu0 %v5570_v13  ;;  %v5660_v13 = vld [vmem:[#allocation10 + $0x384] ss:$8 sps:$4 sm:$0xff]  }
 0x3f3   :  { %4435 = vmatpush1.bf16.msra.mxu0 %v5568_v25  ;;  %v5658_v25 = vld [vmem:[#allocation10 + $0x380] ss:$8 sps:$4 sm:$0xff]  }
 0x3f4   :  { %4436 = vmatprep.subr.bf16.mxu0 %v5573_v26  ;;  %v5663_v26 = vld [vmem:[#allocation10 + $0x394] ss:$8 sps:$4 sm:$0xff]  }
 0x3f7   :  { %4437 = vmatpush1.bf16.msra.mxu0 %v5571_v27  ;;  %v5661_v27 = vld [vmem:[#allocation10 + $0x390] ss:$8 sps:$4 sm:$0xff]  }
 0x3f8   :  { %4438 = vmatprep.subr.bf16.mxu0 %v5576_v43  ;;  %v5666_v43 = vld [vmem:[#allocation10 + $0x3a4] ss:$8 sps:$4 sm:$0xff]  }
 0x3fb   :  { %4439 = vmatpush1.bf16.msra.mxu0 %v5574_v44  ;;  %v5664_v44 = vld [vmem:[#allocation10 + $0x3a0] ss:$8 sps:$4 sm:$0xff]  }
 0x3fc   :  { %4440 = vmatprep.subr.bf16.mxu0 %v5579_v2  ;;  %v5669_v2 = vld [vmem:[#allocation10 + $0x3b4] ss:$8 sps:$4 sm:$0xff]  }
 0x3ff   :  { %4441 = vmatpush1.bf16.msra.mxu0 %v5577_v45  ;;  %v5667_v45 = vld [vmem:[#allocation10 + $0x3b0] ss:$8 sps:$4 sm:$0xff]  }
 0x400   :  { %4442 = vmatprep.subr.bf16.mxu0 %v5582_v29  ;;  %v5672_v29 = vld [vmem:[#allocation10 + $0x3c4] ss:$8 sps:$4 sm:$0xff]  }
 0x403   :  { %4443 = vmatpush1.bf16.msra.mxu0 %v5580_v19  ;;  %v5670_v19 = vld [vmem:[#allocation10 + $0x3c0] ss:$8 sps:$4 sm:$0xff]  }
 0x404   :  { %4444 = vmatprep.subr.bf16.mxu0 %v5585_v30  ;;  %v5675_v30 = vld [vmem:[#allocation10 + $0x3d4] ss:$8 sps:$4 sm:$0xff]  }
 0x407   :  { %4445 = vmatpush1.bf16.msra.mxu0 %v5583_v37  ;;  %v5673_v37 = vld [vmem:[#allocation10 + $0x3d0] ss:$8 sps:$4 sm:$0xff]  }
 0x408   :  { %4457 = vmatprep.subr.bf16.mxu0 %v5588_v31  ;;  %v5678_v31 = vld [vmem:[#allocation10 + $0x3e4] ss:$8 sps:$4 sm:$0xff]  }
 0x40a   :  { %4447 = vmatmul.mubr.bf16.vlgmr.msra.gmra.mrb[16].mxu0 %v6355_v35  ;;  %v5601_v35 = vld [vmem:[#allocation10 + $0x250] ss:$8 sps:$4 sm:$0xff]  }
 0x40b   :  { %4458 = vmatpush1.bf16.msra.mxu0 %v5586_v57  ;;  %4489 = vmatprep.mubr.bf16.mxu0 %v6364_v23  ;;  %v5627_v23 = vld [vmem:[#allocation10 + $0x2d4] ss:$8 sps:$4 sm:$0xff]   ;;  %v5676_v57 = vld [vmem:[#allocation10 + $0x3e0] ss:$8 sps:$4 sm:$0xff]  }
 0x40c   :  { %4459 = vmatprep.subr.bf16.mxu0 %v5591_v33  ;;  %v5681_v33 = vld [vmem:[#allocation10 + $0x3f4] ss:$8 sps:$4 sm:$0xff]  }
 0x40f   :  { %4460 = vmatpush1.bf16.msra.mxu0 %v5589_v58  ;;  %v5679_v58 = vld [vmem:[#allocation10 + $0x3f0] ss:$8 sps:$4 sm:$0xff]  }
 0x410   :  { %4461 = vmatprep.subr.bf16.mxu0 %v5594_v63  ;;  %v5682_v63 = vld [vmem:[#allocation14 + $0x40] sm:$0xff]  }
 0x411   :  { %5388 = vmatprep.subr.bf16.mxu1 %v5682_v63 }
 0x413   :  { %4462 = vmatpush1.bf16.msra.mxu0 %v5592_v0  ;;  %v5683_v0 = vld [vmem:[#allocation14] sm:$0xff]  }
 0x414   :  { %4463 = vmatprep.subr.bf16.mxu0 %v5597_v1  ;;  %5389 = vmatpush3.bf16.msra.mxu1 %v5683_v0  ;;  %v5684_v1 = vld [vmem:[#allocation14 + $0x48] sm:$0xff]  }
 0x415   :  { %5390 = vmatprep.subr.bf16.mxu1 %v5684_v1 }
 0x417   :  { %4464 = vmatpush1.bf16.msra.mxu0 %v5595_v46  ;;  %v5685_v46 = vld [vmem:[#allocation14 + $0x8] sm:$0xff]  }
 0x418   :  { %4465 = vmatprep.subr.bf16.mxu0 %v5600_v36  ;;  %5391 = vmatpush3.bf16.msra.mxu1 %v5685_v46  ;;  %v5686_v36 = vld [vmem:[#allocation14 + $0x50] sm:$0xff]  }
 0x419   :  { %5392 = vmatprep.subr.bf16.mxu1 %v5686_v36 }
 0x41b   :  { %4466 = vmatpush1.bf16.msra.mxu0 %v5598_v22  ;;  %v5687_v22 = vld [vmem:[#allocation14 + $0x10] sm:$0xff]  }
 0x41c   :  { %4467 = vmatprep.subr.bf16.mxu0 %v5603_v61  ;;  %5393 = vmatpush3.bf16.msra.mxu1 %v5687_v22  ;;  %v5688_v61 = vld [vmem:[#allocation14 + $0x58] sm:$0xff]  }
 0x41d   :  { %5394 = vmatprep.subr.bf16.mxu1 %v5688_v61  ;;  %v4543_v22 = vld [vmem:[#allocation11] sm:$0x3] }
 0x41f   :  { %4468 = vmatpush1.bf16.msra.mxu0 %v5601_v35  ;;  %v5689_v35 = vld [vmem:[#allocation14 + $0x18] sm:$0xff]  }
 0x420   :  { %4469 = vmatprep.subr.bf16.mxu0 %v5606_v38  ;;  %5395 = vmatpush3.bf16.msra.mxu1 %v5689_v35  ;;  %v5690_v38 = vld [vmem:[#allocation14 + $0x60] sm:$0xff]   ;;  %v4544_v35 = vld [vmem:[#allocation13] sm:$0x3] }
 0x421   :  { %5396 = vmatprep.subr.bf16.mxu1 %v5690_v38 }
 0x423   :  { %4470 = vmatpush1.bf16.msra.mxu0 %v5604_v32  ;;  %v5691_v32 = vld [vmem:[#allocation14 + $0x20] sm:$0xff]  }
 0x424   :  { %4471 = vmatprep.subr.bf16.mxu0 %v5609_v59  ;;  %v5692_v59 = vld [vmem:[#allocation14 + $0x68] sm:$0xff]   ;;  %5397 = vmatpush3.bf16.msra.mxu1 %v5691_v32 }
 0x425   :  { %5398 = vmatprep.subr.bf16.mxu1 %v5692_v59 }
 0x427   :  { %4472 = vmatpush1.bf16.msra.mxu0 %v5607_v62  ;;  %v5694_v62 = vld [vmem:[#allocation14 + $0x70] sm:$0xff]  }
 0x428   :  { %4473 = vmatprep.subr.bf16.mxu0 %v5612_v39  ;;  %v5695_v39 = vld [vmem:[#allocation14 + $0x30] sm:$0xff]  }
 0x42b   :  { %4474 = vmatpush1.bf16.msra.mxu0 %v5610_v28  ;;  %v5696_v28 = vld [vmem:[#allocation14 + $0x78] sm:$0xff]  }
 0x42c   :  { %4475 = vmatprep.subr.bf16.mxu0 %v5615_v60  ;;  %v5697_v60 = vld [vmem:[#allocation14 + $0x38] sm:$0xff]  }
 0x42f   :  { %4476 = vmatpush1.bf16.msra.mxu0 %v5613_v20 }
 0x430   :  { %4477 = vmatprep.subr.bf16.mxu0 %v5618_v48 }
 0x433   :  { %4478 = vmatpush1.bf16.msra.mxu0 %v5616_v14 }
 0x434   :  { %4479 = vmatprep.subr.bf16.mxu0 %v5621_v18 }
 0x437   :  { %4480 = vmatpush1.bf16.msra.mxu0 %v5619_v4 }
 0x438   :  { %4481 = vmatprep.subr.bf16.mxu0 %v5624_v41 }
 0x43b   :  { %4482 = vmatpush1.bf16.msra.mxu0 %v5622_v5 }
 0x43c   :  { %4483 = vmatprep.subr.bf16.mxu0 %v5627_v23 }
 0x43f   :  { %4484 = vmatpush1.bf16.msra.mxu0 %v5625_v24 }
 0x440   :  { %4485 = vmatprep.subr.bf16.mxu0 %v5630_v6 }
 0x443   :  { %4486 = vmatpush1.bf16.msra.mxu0 %v5628_v54 }
 0x444   :  { %4487 = vmatprep.subr.bf16.mxu0 %v5633_v21 }
 0x447   :  { %4488 = vmatpush1.bf16.msra.mxu0 %v5631_v50 }
 0x448   :  { %4500 = vmatprep.subr.bf16.mxu0 %v5636_v55 }
 0x44a   :  { %4490 = vmatmul.mubr.bf16.vlgmr.msra.gmra.mrb[16].mxu0 %v6368_v34  ;;  %v5649_v34 = vld [vmem:[#allocation10 + $0x350] ss:$8 sps:$4 sm:$0xff]  }
 0x44b   :  { %4501 = vmatpush1.bf16.msra.mxu0 %v5634_v7  ;;  %4532 = vmatprep.mubr.bf16.mxu0 %v6366_v51  ;;  %v5652_v51 = vld [vmem:[#allocation10 + $0x360] ss:$8 sps:$4 sm:$0xff]  }
 0x44c   :  { %4502 = vmatprep.subr.bf16.mxu0 %v5639_v52 }
 0x44f   :  { %4503 = vmatpush1.bf16.msra.mxu0 %v5637_v53 }
 0x450   :  { %4504 = vmatprep.subr.bf16.mxu0 %v5642_v9 }
 0x453   :  { %4505 = vmatpush1.bf16.msra.mxu0 %v5640_v49 }
 0x454   :  { %4506 = vmatprep.subr.bf16.mxu0 %v5645_v10 }
 0x457   :  { %4507 = vmatpush1.bf16.msra.mxu0 %v5643_v3 }
 0x458   :  { %4508 = vmatprep.subr.bf16.mxu0 %v5648_v56 }
 0x45b   :  { %4509 = vmatpush1.bf16.msra.mxu0 %v5646_v11 }
 0x45c   :  { %4510 = vmatprep.subr.bf16.mxu0 %v5651_v12 }
 0x45f   :  { %4511 = vmatpush1.bf16.msra.mxu0 %v5649_v34 }
 0x460   :  { %4512 = vmatprep.subr.bf16.mxu0 %v5654_v15 }
 0x463   :  { %4513 = vmatpush1.bf16.msra.mxu0 %v5652_v51 }
 0x464   :  { %4514 = vmatprep.subr.bf16.mxu0 %v5657_v17 }
 0x467   :  { %4515 = vmatpush1.bf16.msra.mxu0 %v5655_v47 }
 0x468   :  { %4516 = vmatprep.subr.bf16.mxu0 %v5660_v13 }
 0x46b   :  { %4517 = vmatpush1.bf16.msra.mxu0 %v5658_v25 }
 0x46c   :  { %4518 = vmatprep.subr.bf16.mxu0 %v5663_v26 }
 0x46f   :  { %4519 = vmatpush1.bf16.msra.mxu0 %v5661_v27 }
 0x470   :  { %4520 = vmatprep.subr.bf16.mxu0 %v5666_v43 }
 0x473   :  { %4521 = vmatpush1.bf16.msra.mxu0 %v5664_v44 }
 0x474   :  { %4522 = vmatprep.subr.bf16.mxu0 %v5669_v2 }
 0x477   :  { %4523 = vmatpush1.bf16.msra.mxu0 %v5667_v45 }
 0x478   :  { %4524 = vmatprep.subr.bf16.mxu0 %v5672_v29 }
 0x47b   :  { %4525 = vmatpush1.bf16.msra.mxu0 %v5670_v19 }
 0x47c   :  { %4526 = vmatprep.subr.bf16.mxu0 %v5675_v30 }
 0x47f   :  { %4527 = vmatpush1.bf16.msra.mxu0 %v5673_v37 }
 0x480   :  { %4528 = vmatprep.subr.bf16.mxu0 %v5678_v31 }
 0x483   :  { %4529 = vmatpush1.bf16.msra.mxu0 %v5676_v57 }
 0x484   :  { %4530 = vmatprep.subr.bf16.mxu0 %v5681_v33 }
 0x487   :  { %4531 = vmatpush1.bf16.msra.mxu0 %v5679_v58 }
 0x48a   :  { %4533 = vmatmul.mubr.bf16.vlgmr.msra.gmra.mrb[16].mxu0 %v6370_v42  ;;  %v5693_v42 = vld [vmem:[#allocation14 + $0x28] sm:$0xff]  }
 0x48b   :  { %5399 = vmatpush3.bf16.msra.mxu1 %v5693_v42  ;;  %v4627_v42 = vrot.slane %v4544_v35, %v6315_v16 }
 0x48c   :  { %5400 = vmatprep.subr.bf16.mxu1 %v5694_v62  ;;  %v4631_v62 = vrot.slane %v4544_v35, %v6312_v8 }
 0x48f   :  { %5401 = vmatpush3.bf16.msra.mxu1 %v5695_v39 }
 0x490   :  { %5402 = vmatprep.subr.bf16.mxu1 %v5696_v28 }
 0x493   :  { %5403 = vmatpush3.bf16.msra.mxu1 %v5697_v60 }
 0x55d   :  { %v4534_v20 = vpop.f32.mrb[16].mxu0 }
 0x55e   :  { %v4536_v48 = vpop.f32.mrb[17].mxu0 }
 0x55f   :  { %v4538_v14 = vpop.f32.mrb[18].mxu0 }
 0x560   :  { %v4545_v18 = vadd.f32 %v4538_v14, %v4534_v20  ;;  %v4540_v4 = vpop.f32.mrb[19].mxu0 }
 0x561   :  { %v4552_v41 = vadd.f32 %v4540_v4, %v4536_v48 }
 0x562   :  { %v4546_v5 = vrot.slane %v4545_v18, 4 }
 0x563   :  { %v4553_v23 = vrot.slane %v4552_v41, 4 }
 0x564   :  { %v4547_v24 = vadd.f32 %v4546_v5, %v4545_v18 }
 0x565   :  { %v4554_v6 = vadd.f32 %v4553_v23, %v4552_v41 }
 0x566   :  { %v4548_v54 = vrot.slane %v4547_v24, 2 }
 0x567   :  { %v4555_v21 = vrot.slane %v4554_v6, 2 }
 0x568   :  { %v4549_v50 = vadd.f32 %v4548_v54, %v4547_v24 }
 0x569   :  { %v4556_v55 = vadd.f32 %v4555_v21, %v4554_v6 }
 0x56a   :  { %v4550_v7 = vrot.slane %v4549_v50, 1 }
 0x56b   :  { %v4557_v52 = vrot.slane %v4556_v55, 1 }
 0x56c   :  { %v4551_v53 = vadd.f32 %v4550_v7, %v4549_v50 }
 0x56d   :  { %v4558_v9 = vadd.f32 %v4557_v52, %v4556_v55  ;;  %v5371_v55 = vld [vmem:[#allocation16] ss:$0 sm:$0xff] }
 0x56e   :  { %v4559_v49 = vmul.f32 0.0625, %v4551_v53 }
 0x56f   :  { %v4560_v10 = vmul.f32 0.0625, %v4558_v9 }
 0x570   :  { %v4561_v3 = vsub.f32 %v4534_v20, %v4559_v49  ;;  %v4563_v56 = vsub.f32 %v4538_v14, %v4559_v49 }
 0x571   :  { %v4562_v11 = vsub.f32 %v4536_v48, %v4560_v10  ;;  %v4564_v12 = vsub.f32 %v4540_v4, %v4560_v10 }
 0x572   :  { %v4565_v34 = vmul.f32 %v4561_v3, %v4561_v3  ;;  %v4567_v15 = vmul.f32 %v4563_v56, %v4563_v56 }
 0x573   :  { %v4566_v51 = vmul.f32 %v4562_v11, %v4562_v11  ;;  %v4568_v17 = vmul.f32 %v4564_v12, %v4564_v12 }
 0x574   :  { %v4569_v47 = vadd.f32 %v4567_v15, %v4565_v34 }
 0x575   :  { %v4576_v13 = vadd.f32 %v4568_v17, %v4566_v51 }
 0x576   :  { %v4570_v25 = vrot.slane %v4569_v47, 4 }
 0x577   :  { %v4577_v26 = vrot.slane %v4576_v13, 4 }
 0x578   :  { %v4571_v27 = vadd.f32 %v4570_v25, %v4569_v47 }
 0x579   :  { %v4578_v43 = vadd.f32 %v4577_v26, %v4576_v13 }
 0x57a   :  { %v4572_v44 = vrot.slane %v4571_v27, 2 }
 0x57b   :  { %v4579_v2 = vrot.slane %v4578_v43, 2 }
 0x57c   :  { %v4573_v45 = vadd.f32 %v4572_v44, %v4571_v27 }
 0x57d   :  { %v4580_v29 = vadd.f32 %v4579_v2, %v4578_v43 }
 0x57e   :  { %v4574_v19 = vrot.slane %v4573_v45, 1 }
 0x57f   :  { %v4581_v30 = vrot.slane %v4580_v29, 1 }
 0x580   :  { %v4575_v37 = vadd.f32 %v4574_v19, %v4573_v45 }
 0x581   :  { %v4582_v31 = vadd.f32 %v4581_v30, %v4580_v29 }
 0x582   :  { %v4583_v57 = vmul.f32 0.0625, %v4575_v37 }
 0x583   :  { %v4584_v33 = vmul.f32 0.0625, %v4582_v31 }
 0x584   :  { %v4585_v58 = vadd.f32 1e-05, %v4583_v57 }
 0x585   :  { %v4586_v63 = vadd.f32 1e-05, %v4584_v33 }
 0x586   :  { %5714 = vrsqrt.f32 %v4585_v58 }
 0x587   :  { %5716 = vrsqrt.f32 %v4586_v63 }
 0x590   :  { %v5715_v0 = vpop.eup %5714 }
 0x591   :  { %v5717_v1 = vpop.eup %5716 }
 0x592   :  { %v4591_v46 = vcombine.low %v5715_v0, %v5717_v1 }
 0x594   :  { %v4598_v36 = vrot.slane %v4591_v46, %v6254_v40 }
 0x596   :  { %v4605_v61 = vrot.slane %v4598_v36, %v6254_v40 }
 0x598   :  { %v4607_v38 = vmul.f32 %v4605_v61, %v4543_v22 }
 0x59a   :  { %v4612_v32 = vrot.slane %v4607_v38, %v6315_v16  ;;  %v4616_v59 = vrot.slane %v4607_v38, %v6312_v8 }
 0x59c   :  { %v4619_v39 = vmul.f32 %v4612_v32, %v4561_v3  ;;  %v4620_v28 = vmul.f32 %v4616_v59, %v4562_v11  ;;  %v4621_v60 = vmul.f32 %v4612_v32, %v4563_v56  ;;  %v4622_v20 = vmul.f32 %v4616_v59, %v4564_v12 }
 0x59e   :  { %v4634_v48 = vadd.f32 %v4627_v42, %v4619_v39  ;;  %v4636_v14 = vadd.f32 %v4627_v42, %v4621_v60  ;;  %v4637_v18 = vadd.f32 %v4631_v62, %v4622_v20  ;;  %v4635_v4 = vadd.f32 %v4631_v62, %v4620_v28 }
 0x5a0   :  { %v4641_v41 = vmul.f32 0.01, %v4637_v18  ;;  %v4639_v40 = vmul.f32 0.01, %v4635_v4  ;;  %v4638_v5 = vmul.f32 0.01, %v4634_v48 }
 0x5a1   :  { %v4640_v23 = vmul.f32 0.01, %v4636_v14 }
 0x5a2   :  { %v4643_v24 = vmax.f32 %v4635_v4, %v4639_v40  ;;  %v4645_v6 = vmax.f32 %v4637_v18, %v4641_v41  ;;  %v4642_v54 = vmax.f32 %v4634_v48, %v4638_v5 }
 0x5a3   :  { %v4644_v21 = vmax.f32 %v4636_v14, %v4640_v23 }
 0x5a4   :  { %v4647_v50 = vpack.c.bf16 %v4645_v6, %v4643_v24 }
 0x5a5   :  { %v4646_v16 = vpack.c.bf16 %v4644_v21, %v4642_v54 }
 0x5a6   :  { %4815 = vmatprep.mubr.bf16.mxu1 %v4647_v50 }
 0x5a7   :  { %4816 = vmatmul.mubr.bf16.vlgmr.msra.gmra.mrb[12].mxu1 %v4646_v16 }
 0x67a   :  { %v5404_v8 = vpop.f32.mrb[12].mxu1 }
 0x67b   :  { %v5405_v7 = vpop.f32.mrb[13].mxu1 }
 0x67c   :  { %v5406_v52 = vadd.f32 %v5405_v7, %v5404_v8  ;;  %v5407_v53 = vpop.f32.mrb[14].mxu1 }
 0x67d   :  { %v5408_v9 = vpop.f32.mrb[15].mxu1 }
 0x67e   :  { %v4818_v49 = vadd.f32 %v5406_v52, %v5371_v55  ;;  %v5409_v10 = vadd.f32 %v5408_v9, %v5407_v53 }
 0x680   :  { %4824 = vst [vmem:[#allocation17] sm:$0xff] %v4818_v49  ;;  %v4821_v3 = vadd.f32 %v5409_v10, %v5371_v55 }
 0x682   :  { %4825 = vst [vmem:[#allocation17 + $0x8] sm:$0xff] %v4821_v3 }
 0x683   :  { %5927 = shalt.err (!%p5924_p6)
}
 0x684   :  { %s5928_s29 = scalar_lea.hbm %s6407_s9, 256 }
 0x685   :  { %p5929_p7 = scmp.ne.s32.totalorder %s6407_s9, %s5928_s29  ;;  %p5932_p8 = scmp.lt.u32.totalorder %s5928_s29, %s6407_s9 }
 0x687   :  { %p5934_p9 = pnand %p5932_p8, %p5929_p7 }
 0x689   :  { %5937 = shalt.err (!%p5934_p9)
}
 0x68a   :  { %4837 = dma.vmem_to_hbm [thread:$0]  %s4832_s24, 256, %s6407_s9, [#allocation4], %s5963_s2, %s5963_s2, %s5964_s7  }
 0x68b   :  { %5948 = dma.done.wait [#allocation4], 256  }
 0x68c   :  { %5949 = vsyncadd [#allocation4], 4294967040 }
 0x68d   :  { %4841 = vsyncpa [#allocation3], 1 }
 0x68e   :  { %4842 = vsyncpa [#allocation6], 1 }
 0x68f   :  { %4843 = vsyncpa [#allocation9], 1 }
 0x690   :  { %4844 = vsyncpa [#allocation12], 1 }
 0x691   :  { %4845 = vsyncpa [#allocation15], 1 }
 0x692   :  { %4846 = vsyncpa [#allocation4], 1 }

</bundles_post_ra>
